<compile_context>
chip_gen: v7x
topology: tpu7x:2x2x1
jax: 0.10.0
libtpu: 0.0.40
codegen_flags: <defaults>
</compile_context>

<pallas_src>
import math

import jax
import jax.numpy as jnp
from jax.experimental import pallas as pl
from jax.experimental.pallas import tpu as pltpu

# ----- synthetic (small) model dimensions -----------------------------------
S = 8          # segments (chunks) per document
H = 96         # hidden size (real finbert-tone uses 768; kept small, %6==0)
NH = 6         # num_heads (module default)
HD = H // NH   # head dim = 16
FFN = 256      # transformer feed-forward dim (PyTorch default 2048, shrunk)
L = 3          # num_layers (module default)
EPS = 1e-5     # LayerNorm eps (PyTorch default)
NVEC = 8       # rows in the per-layer bias/LN slab
NHROWS = 8     # rows in the head-parameter slab


def _layernorm(x, g, b):
    mu = jnp.mean(x, axis=-1, keepdims=True)
    var = jnp.mean((x - mu) ** 2, axis=-1, keepdims=True)
    return (x - mu) * jax.lax.rsqrt(var + EPS) * g + b


# ----------------------------- Pallas kernel --------------------------------
def hier_finbert_kernel(x_ref, qkvw_ref, outw_ref, ff1w_ref, ff2w_ref,
                        vec_ref, head_ref, out_ref):
    # x_ref block: (1, S, H) -> one document's segment embeddings.
    x = x_ref[0]                                               # (S, H) f32
    ones = jnp.ones((S, 1), jnp.float32)

    # ---- doc_encoder: L post-norm TransformerEncoderLayers (relu FFN) ------
    for l in range(L):                                         # static unroll
        x_aug = jnp.concatenate([x, ones], axis=-1)            # (S, H+1)
        xb = jnp.broadcast_to(x_aug, (NH, S, H + 1))           # (NH, S, H+1)

        def proj(part):
            w = qkvw_ref[l, part * NH:(part + 1) * NH].astype(jnp.float32)
            return jnp.einsum('nse,ned->nsd', xb, w,
                              preferred_element_type=jnp.float32)

        q3 = proj(0)   # (NH, S, HD); 1/sqrt(HD) already folded into Q weights
        k3 = proj(1)
        v3 = proj(2)

        sc = jnp.einsum('nqd,nkd->nqk', q3, k3,
                        preferred_element_type=jnp.float32)    # (NH, S, S)
        sc = sc - jnp.max(sc, axis=-1, keepdims=True)
        e = jnp.exp(sc)
        p = e * pl.reciprocal(jnp.sum(e, axis=-1, keepdims=True), approx=True)
        o3 = jnp.einsum('nqk,nkd->nqd', p, v3,
                        preferred_element_type=jnp.float32)    # (NH, S, HD)

        ow = outw_ref[l].astype(jnp.float32)                   # (NH, HD, H)
        proj3 = jnp.einsum('nqd,ndh->nqh', o3, ow,
                           preferred_element_type=jnp.float32)  # (NH, S, H)
        attn = jnp.sum(proj3, axis=0) + vec_ref[l, 0:1, 0:H]    # (S, H)

        x = _layernorm(x + attn, vec_ref[l, 1:2, 0:H], vec_ref[l, 2:3, 0:H])

        w1 = ff1w_ref[l].astype(jnp.float32)                   # (H, FFN)
        h1 = jnp.maximum(
            jnp.dot(x, w1, preferred_element_type=jnp.float32)
            + vec_ref[l, 3:4, :], 0.0)                         # relu
        w2 = ff2w_ref[l].astype(jnp.float32)                   # (FFN, H)
        h2 = (jnp.dot(h1, w2, preferred_element_type=jnp.float32)
              + vec_ref[l, 4:5, 0:H])
        x = _layernorm(x + h2, vec_ref[l, 5:6, 0:H], vec_ref[l, 6:7, 0:H])

    # ---- attn_pool: Linear(H,1) + Softmax(dim=0), done as VPU reductions ---
    # (pool bias omitted: Softmax over segments is invariant to a constant.)
    pool_logits = jnp.sum(x * head_ref[0:1, 0:H], axis=-1, keepdims=True)
    pool_logits = pool_logits - jnp.max(pool_logits, axis=0, keepdims=True)
    e0 = jnp.exp(pool_logits)
    w = e0 * pl.reciprocal(jnp.sum(e0, axis=0, keepdims=True), approx=True)
    attn_vec = jnp.sum(w * x, axis=0, keepdims=True)           # (1, H)

    # ---- doc_vector = cat([encoded[0], attn_vector]) -> LayerNorm -> head --
    doc = jnp.concatenate([x[0:1, :], attn_vec], axis=-1)      # (1, 2H)
    doc = _layernorm(doc, head_ref[1:2, :], head_ref[2:3, :])
    # dropout(p=0.3) is identity in eval mode.
    logits = jnp.einsum('ah,ch->ac', doc, head_ref[3:5, :],
                        preferred_element_type=jnp.float32) + head_ref[5:6, 0:2]
    out_ref[0] = logits                                        # (1, 2)


# ------------------------- parameter packing (plain JAX) --------------------
def _prep_args(params):
    scale = 1.0 / math.sqrt(HD)

    # QKV: per-head, input-major, bias folded in as extra input row, attention
    # scale folded into the Q projection; stored in bf16.
    w = params["in_w"].reshape(L, 3, NH, HD, H)
    w = jnp.swapaxes(w, -1, -2)                                # (L,3,NH,H,HD)
    b = params["in_b"].reshape(L, 3, NH, 1, HD)
    aug = jnp.concatenate([w, b], axis=-2)                     # (L,3,NH,H+1,HD)
    aug = aug * jnp.array([scale, 1.0, 1.0],
                          jnp.float32).reshape(1, 3, 1, 1, 1)
    qkv_w = aug.reshape(L, 3 * NH, H + 1, HD).astype(jnp.bfloat16)

    out_w = jnp.swapaxes(params["out_w"], -1, -2).reshape(
        L, NH, HD, H).astype(jnp.bfloat16)                     # (L,NH,HD,H)
    ff1_w = jnp.swapaxes(params["ff1_w"], -1, -2).astype(jnp.bfloat16)
    ff2_w = jnp.swapaxes(params["ff2_w"], -1, -2).astype(jnp.bfloat16)

    # Per-layer biases / LayerNorm params packed into one f32 slab.
    vec = jnp.zeros((L, NVEC, FFN), jnp.float32)
    vec = vec.at[:, 0, :H].set(params["out_b"])
    vec = vec.at[:, 1, :H].set(params["ln1_g"])
    vec = vec.at[:, 2, :H].set(params["ln1_b"])
    vec = vec.at[:, 3, :].set(params["ff1_b"])
    vec = vec.at[:, 4, :H].set(params["ff2_b"])
    vec = vec.at[:, 5, :H].set(params["ln2_g"])
    vec = vec.at[:, 6, :H].set(params["ln2_b"])

    # Head params (pool / final LayerNorm / classifier) packed into one slab.
    head = jnp.zeros((NHROWS, 2 * H), jnp.float32)
    head = head.at[0, :H].set(params["pool_w"][0])
    head = head.at[1, :].set(params["norm_g"])
    head = head.at[2, :].set(params["norm_b"])
    head = head.at[3:5, :].set(params["cls_w"])
    head = head.at[5, 0:2].set(params["cls_b"])
    # pool_b dropped: Softmax(dim=0) is shift-invariant.
    return qkv_w, out_w, ff1_w, ff2_w, vec, head


@jax.jit
def hier_finbert_forward(seg_emb, params):
    """seg_emb: (B, S, H) per-document segment CLS embeddings -> (B, 2)."""
    B = seg_emb.shape[0]
    qkv_w, out_w, ff1_w, ff2_w, vec, head = _prep_args(params)

    def resident(a):  # whole array, same block every grid step (stays in VMEM)
        n = a.ndim
        return pl.BlockSpec(a.shape, lambda b: (0,) * n)

    weight_bytes = sum(int(a.size) * a.dtype.itemsize
                       for a in (qkv_w, out_w, ff1_w, ff2_w, vec, head))
    flops_per_doc = L * (2 * 3 * NH * S * (H + 1) * HD      # qkv projections
                         + 2 * 2 * NH * S * S * HD          # scores + p@v
                         + 2 * NH * S * HD * H               # out projection
                         + 2 * 2 * S * H * FFN)              # FFN
    cost = pl.CostEstimate(
        flops=B * flops_per_doc,
        transcendentals=B * (L * NH * S * S + S),
        bytes_accessed=weight_bytes + B * (S * H + 2) * 4)

    out = pl.pallas_call(
        hier_finbert_kernel,
        out_shape=jax.ShapeDtypeStruct((B, 1, 2), jnp.float32),
        grid=(B,),
        in_specs=[
            pl.BlockSpec((1, S, H), lambda b: (b, 0, 0)),
            resident(qkv_w), resident(out_w), resident(ff1_w),
            resident(ff2_w), resident(vec), resident(head),
        ],
        out_specs=pl.BlockSpec((1, 1, 2), lambda b: (b, 0, 0)),
        compiler_params=pltpu.CompilerParams(
            dimension_semantics=("parallel",),
            vmem_limit_bytes=32 * 1024 * 1024),
        cost_estimate=cost,
    )(seg_emb, qkv_w, out_w, ff1_w, ff2_w, vec, head)
    return out[:, 0, :]


# ----------------------------- pure-JAX reference ---------------------------
def reference_forward(x, p):
    """Original module math (eval mode).  Matmul weights are round-tripped
    through bf16 exactly as the kernel stores them, so the comparison
    isolates Pallas-lowering differences (accum order, approx reciprocal)."""
    deq = lambda a: a.astype(jnp.bfloat16).astype(jnp.float32)
    scale = 1.0 / math.sqrt(HD)
    for l in range(L):
        in_w, in_b = p["in_w"][l], p["in_b"][l]
        q = x @ deq(in_w[:H] * scale).T + deq(in_b[:H] * scale)
        k = x @ deq(in_w[H:2 * H]).T + deq(in_b[H:2 * H])
        v = x @ deq(in_w[2 * H:]).T + deq(in_b[2 * H:])
        heads = []
        for h in range(NH):
            sl = slice(h * HD, (h + 1) * HD)
            s = q[:, sl] @ k[:, sl].T          # scale already folded into q
            heads.append(jax.nn.softmax(s, axis=-1) @ v[:, sl])
        attn = (jnp.concatenate(heads, -1) @ deq(p["out_w"][l]).T
                + p["out_b"][l])
        x = _layernorm(x + attn, p["ln1_g"][l], p["ln1_b"][l])
        h1 = jax.nn.relu(x @ deq(p["ff1_w"][l]).T + p["ff1_b"][l])
        h2 = h1 @ deq(p["ff2_w"][l]).T + p["ff2_b"][l]
        x = _layernorm(x + h2, p["ln2_g"][l], p["ln2_b"][l])
    pool = jax.nn.softmax(x @ p["pool_w"].T + p["pool_b"], axis=0)
    attn_vec = jnp.sum(pool * x, axis=0)
    doc = jnp.concatenate([x[0], attn_vec], axis=-1)
    doc = _layernorm(doc, p["norm_g"], p["norm_b"])
    return doc @ p["cls_w"].T + p["cls_b"]


def init_params(key):
    ks = jax.random.split(key, 16)
    std = 0.02
    return {
        "in_w":  std * jax.random.normal(ks[0], (L, 3 * H, H), jnp.float32),
        "in_b":  std * jax.random.normal(ks[1], (L, 3 * H), jnp.float32),
        "out_w": std * jax.random.normal(ks[2], (L, H, H), jnp.float32),
        "out_b": std * jax.random.normal(ks[3], (L, H), jnp.float32),
        "ln1_g": jnp.ones((L, H), jnp.float32),
        "ln1_b": jnp.zeros((L, H), jnp.float32),
        "ln2_g": jnp.ones((L, H), jnp.float32),
        "ln2_b": jnp.zeros((L, H), jnp.float32),
        "ff1_w": std * jax.random.normal(ks[4], (L, FFN, H), jnp.float32),
        "ff1_b": std * jax.random.normal(ks[5], (L, FFN), jnp.float32),
        "ff2_w": std * jax.random.normal(ks[6], (L, H, FFN), jnp.float32),
        "ff2_b": std * jax.random.normal(ks[7], (L, H), jnp.float32),
        "pool_w": std * jax.random.normal(ks[8], (1, H), jnp.float32),
        "pool_b": std * jax.random.normal(ks[9], (1,), jnp.float32),
        "norm_g": jnp.ones((2 * H,), jnp.float32),
        "norm_b": jnp.zeros((2 * H,), jnp.float32),
        "cls_w": std * jax.random.normal(ks[10], (2, 2 * H), jnp.float32),
        "cls_b": std * jax.random.normal(ks[11], (2,), jnp.float32),
    }


if __name__ == "__main__":
    key = jax.random.PRNGKey(0)
    k_x, k_p = jax.random.split(key)
    B = 4  # batch of documents (segment-embedding stacks), one per grid step
    seg_emb = jax.random.normal(k_x, (B, S, H), jnp.float32)
    params = init_params(k_p)

    logits = jax.block_until_ready(hier_finbert_forward(seg_emb, params))
    assert logits.shape == (B, 2), logits.shape

    ref = jnp.stack([reference_forward(seg_emb[b], params) for b in range(B)])
    # Tolerance covers approx-reciprocal softmax denominators + accum order.
    assert jnp.allclose(logits, ref, atol=5e-3, rtol=5e-3), (logits, ref)
    print("KERNEL_OK")
</pallas_src>

<mosaic_0001>
module attributes {stable_mosaic.version = 11 : i64} {
  func.func @hier_finbert_kernel(%arg0: i32, %arg1: memref<1x8x96xf32, #tpu.memory_space<vmem>>, %arg2: memref<3x18x97x16xbf16, #tpu.memory_space<vmem>>, %arg3: memref<3x6x16x96xbf16, #tpu.memory_space<vmem>>, %arg4: memref<3x96x256xbf16, #tpu.memory_space<vmem>>, %arg5: memref<3x256x96xbf16, #tpu.memory_space<vmem>>, %arg6: memref<3x8x256xf32, #tpu.memory_space<vmem>>, %arg7: memref<8x192xf32, #tpu.memory_space<vmem>>, %arg8: memref<1x1x2xf32, #tpu.memory_space<vmem>>) attributes {dimension_semantics = [#tpu.dimension_semantics<parallel>], iteration_bounds = array<i64: 4>, scalar_prefetch = 0 : i64, scratch_operands = 0 : i64, tpu.core_type = #tpu.core_type<tc>, window_params = [{transform_indices = @transform_0, window_bounds = array<i64: 1, 8, 96>}, {pipeline_mode = #tpu.pipeline_mode<synchronous>, transform_indices = @transform_1, window_bounds = array<i64: 3, 18, 97, 16>}, {pipeline_mode = #tpu.pipeline_mode<synchronous>, transform_indices = @transform_2, window_bounds = array<i64: 3, 6, 16, 96>}, {pipeline_mode = #tpu.pipeline_mode<synchronous>, transform_indices = @transform_3, window_bounds = array<i64: 3, 96, 256>}, {pipeline_mode = #tpu.pipeline_mode<synchronous>, transform_indices = @transform_4, window_bounds = array<i64: 3, 256, 96>}, {pipeline_mode = #tpu.pipeline_mode<synchronous>, transform_indices = @transform_5, window_bounds = array<i64: 3, 8, 256>}, {pipeline_mode = #tpu.pipeline_mode<synchronous>, transform_indices = @transform_6, window_bounds = array<i64: 8, 192>}, {transform_indices = @transform_7, window_bounds = array<i64: 1, 1, 2>}]} {
    %c0 = arith.constant 0 : index
    %c0_0 = arith.constant 0 : index
    %c0_1 = arith.constant 0 : index
    %0 = vector.load %arg1[%c0, %c0_0, %c0_1] : memref<1x8x96xf32, #tpu.memory_space<vmem>>, vector<1x8x96xf32>
    %1 = vector.shape_cast %0 : vector<1x8x96xf32> to vector<8x96xf32>
    %cst = arith.constant 1.000000e+00 : f32
    %2 = vector.broadcast %cst : f32 to vector<8x1xf32>
    %3 = tpu.concatenate %1, %2 in 1 : vector<8x96xf32>, vector<8x1xf32> -> vector<8x97xf32>
    %4 = vector.shape_cast %3 : vector<8x97xf32> to vector<1x8x97xf32>
    %5 = vector.broadcast %4 : vector<1x8x97xf32> to vector<6x8x97xf32>
    %c0_2 = arith.constant 0 : index
    %c0_3 = arith.constant 0 : index
    %c0_4 = arith.constant 0 : index
    %c0_5 = arith.constant 0 : index
    %6 = vector.load %arg2[%c0_2, %c0_3, %c0_4, %c0_5] : memref<3x18x97x16xbf16, #tpu.memory_space<vmem>>, vector<1x6x97x16xbf16>
    %7 = vector.shape_cast %6 : vector<1x6x97x16xbf16> to vector<6x97x16xbf16>
    %8 = arith.extf %7 : vector<6x97x16xbf16> to vector<6x97x16xf32>
    "tpu.trace_start"() <{level = 10 : i32, message = "nse,ned->nsd"}> : () -> ()
    %cst_6 = arith.constant dense<0.000000e+00> : vector<6x8x16xf32>
    %9 = tpu.matmul %5, %8, %cst_6 {dimension_numbers = #tpu.dot_dimension_numbers<[2], [1], [1], [2], [0, 0, 0, 1, 1, 2], [0], [0]>} : vector<6x8x97xf32>, vector<6x97x16xf32>, vector<6x8x16xf32> -> vector<6x8x16xf32>
    "tpu.trace_stop"() : () -> ()
    %c0_7 = arith.constant 0 : index
    %c6 = arith.constant 6 : index
    %c0_8 = arith.constant 0 : index
    %c0_9 = arith.constant 0 : index
    %10 = vector.load %arg2[%c0_7, %c6, %c0_8, %c0_9] : memref<3x18x97x16xbf16, #tpu.memory_space<vmem>>, vector<1x6x97x16xbf16>
    %11 = vector.shape_cast %10 : vector<1x6x97x16xbf16> to vector<6x97x16xbf16>
    %12 = arith.extf %11 : vector<6x97x16xbf16> to vector<6x97x16xf32>
    "tpu.trace_start"() <{level = 10 : i32, message = "nse,ned->nsd"}> : () -> ()
    %cst_10 = arith.constant dense<0.000000e+00> : vector<6x8x16xf32>
    %13 = tpu.matmul %5, %12, %cst_10 {dimension_numbers = #tpu.dot_dimension_numbers<[2], [1], [1], [2], [0, 0, 0, 1, 1, 2], [0], [0]>} : vector<6x8x97xf32>, vector<6x97x16xf32>, vector<6x8x16xf32> -> vector<6x8x16xf32>
    "tpu.trace_stop"() : () -> ()
    %c0_11 = arith.constant 0 : index
    %c12 = arith.constant 12 : index
    %c0_12 = arith.constant 0 : index
    %c0_13 = arith.constant 0 : index
    %14 = vector.load %arg2[%c0_11, %c12, %c0_12, %c0_13] : memref<3x18x97x16xbf16, #tpu.memory_space<vmem>>, vector<1x6x97x16xbf16>
    %15 = vector.shape_cast %14 : vector<1x6x97x16xbf16> to vector<6x97x16xbf16>
    %16 = arith.extf %15 : vector<6x97x16xbf16> to vector<6x97x16xf32>
    "tpu.trace_start"() <{level = 10 : i32, message = "nse,ned->nsd"}> : () -> ()
    %cst_14 = arith.constant dense<0.000000e+00> : vector<6x8x16xf32>
    %17 = tpu.matmul %5, %16, %cst_14 {dimension_numbers = #tpu.dot_dimension_numbers<[2], [1], [1], [2], [0, 0, 0, 1, 1, 2], [0], [0]>} : vector<6x8x97xf32>, vector<6x97x16xf32>, vector<6x8x16xf32> -> vector<6x8x16xf32>
    "tpu.trace_stop"() : () -> ()
    "tpu.trace_start"() <{level = 10 : i32, message = "nqd,nkd->nqk"}> : () -> ()
    %cst_15 = arith.constant dense<0.000000e+00> : vector<6x8x8xf32>
    %18 = tpu.matmul %9, %13, %cst_15 {dimension_numbers = #tpu.dot_dimension_numbers<[2], [2], [1], [1], [0, 0, 0, 1, 1, 1], [0], [0]>} : vector<6x8x16xf32>, vector<6x8x16xf32>, vector<6x8x8xf32> -> vector<6x8x8xf32>
    "tpu.trace_stop"() : () -> ()
    %cst_16 = arith.constant dense<0xFF800000> : vector<6x8xf32>
    %19 = vector.multi_reduction <maximumf>, %18, %cst_16 [2] : vector<6x8x8xf32> to vector<6x8xf32>
    %20 = vector.shape_cast %19 : vector<6x8xf32> to vector<6x8x1xf32>
    %21 = vector.broadcast %20 : vector<6x8x1xf32> to vector<6x8x8xf32>
    %22 = arith.subf %18, %21 : vector<6x8x8xf32>
    %23 = math.exp %22 : vector<6x8x8xf32>
    %cst_17 = arith.constant dense<0.000000e+00> : vector<6x8xf32>
    %24 = vector.multi_reduction <add>, %23, %cst_17 [2] : vector<6x8x8xf32> to vector<6x8xf32>
    %25 = vector.shape_cast %24 : vector<6x8xf32> to vector<6x8x1xf32>
    %26 = tpu.reciprocal %25 {approx = true} : vector<6x8x1xf32> -> vector<6x8x1xf32>
    %27 = vector.broadcast %26 : vector<6x8x1xf32> to vector<6x8x8xf32>
    %28 = arith.mulf %23, %27 : vector<6x8x8xf32>
    "tpu.trace_start"() <{level = 10 : i32, message = "nqk,nkd->nqd"}> : () -> ()
    %cst_18 = arith.constant dense<0.000000e+00> : vector<6x8x16xf32>
    %29 = tpu.matmul %28, %17, %cst_18 {dimension_numbers = #tpu.dot_dimension_numbers<[2], [1], [1], [2], [0, 0, 0, 1, 1, 2], [0], [0]>} : vector<6x8x8xf32>, vector<6x8x16xf32>, vector<6x8x16xf32> -> vector<6x8x16xf32>
    "tpu.trace_stop"() : () -> ()
    %c0_19 = arith.constant 0 : index
    %c0_20 = arith.constant 0 : index
    %c0_21 = arith.constant 0 : index
    %c0_22 = arith.constant 0 : index
    %30 = vector.load %arg3[%c0_19, %c0_20, %c0_21, %c0_22] : memref<3x6x16x96xbf16, #tpu.memory_space<vmem>>, vector<1x6x16x96xbf16>
    %31 = vector.shape_cast %30 : vector<1x6x16x96xbf16> to vector<6x16x96xbf16>
    %32 = arith.extf %31 : vector<6x16x96xbf16> to vector<6x16x96xf32>
    "tpu.trace_start"() <{level = 10 : i32, message = "nqd,ndh->nqh"}> : () -> ()
    %cst_23 = arith.constant dense<0.000000e+00> : vector<6x8x96xf32>
    %33 = tpu.matmul %29, %32, %cst_23 {dimension_numbers = #tpu.dot_dimension_numbers<[2], [1], [1], [2], [0, 0, 0, 1, 1, 2], [0], [0]>} : vector<6x8x16xf32>, vector<6x16x96xf32>, vector<6x8x96xf32> -> vector<6x8x96xf32>
    "tpu.trace_stop"() : () -> ()
    %cst_24 = arith.constant dense<0.000000e+00> : vector<8x96xf32>
    %34 = vector.multi_reduction <add>, %33, %cst_24 [0] : vector<6x8x96xf32> to vector<8x96xf32>
    %c0_25 = arith.constant 0 : index
    %c0_26 = arith.constant 0 : index
    %c0_27 = arith.constant 0 : index
    %35 = vector.load %arg6[%c0_25, %c0_26, %c0_27] : memref<3x8x256xf32, #tpu.memory_space<vmem>>, vector<1x1x96xf32>
    %36 = vector.shape_cast %35 : vector<1x1x96xf32> to vector<1x96xf32>
    %37 = vector.broadcast %36 : vector<1x96xf32> to vector<8x96xf32>
    %38 = arith.addf %34, %37 : vector<8x96xf32>
    %39 = arith.addf %1, %38 : vector<8x96xf32>
    %c0_28 = arith.constant 0 : index
    %c1 = arith.constant 1 : index
    %c0_29 = arith.constant 0 : index
    %40 = vector.load %arg6[%c0_28, %c1, %c0_29] : memref<3x8x256xf32, #tpu.memory_space<vmem>>, vector<1x1x96xf32>
    %41 = vector.shape_cast %40 : vector<1x1x96xf32> to vector<1x96xf32>
    %c0_30 = arith.constant 0 : index
    %c2 = arith.constant 2 : index
    %c0_31 = arith.constant 0 : index
    %42 = vector.load %arg6[%c0_30, %c2, %c0_31] : memref<3x8x256xf32, #tpu.memory_space<vmem>>, vector<1x1x96xf32>
    %43 = vector.shape_cast %42 : vector<1x1x96xf32> to vector<1x96xf32>
    %cst_32 = arith.constant dense<0.000000e+00> : vector<8xf32>
    %44 = vector.multi_reduction <add>, %39, %cst_32 [1] : vector<8x96xf32> to vector<8xf32>
    %45 = vector.shape_cast %44 : vector<8xf32> to vector<8x1xf32>
    %cst_33 = arith.constant 9.600000e+01 : f32
    %46 = vector.broadcast %cst_33 : f32 to vector<8x1xf32>
    %47 = arith.divf %45, %46 : vector<8x1xf32>
    %48 = vector.broadcast %47 : vector<8x1xf32> to vector<8x96xf32>
    %49 = arith.subf %39, %48 : vector<8x96xf32>
    %50 = arith.mulf %49, %49 : vector<8x96xf32>
    %cst_34 = arith.constant dense<0.000000e+00> : vector<8xf32>
    %51 = vector.multi_reduction <add>, %50, %cst_34 [1] : vector<8x96xf32> to vector<8xf32>
    %52 = vector.shape_cast %51 : vector<8xf32> to vector<8x1xf32>
    %cst_35 = arith.constant 9.600000e+01 : f32
    %53 = vector.broadcast %cst_35 : f32 to vector<8x1xf32>
    %54 = arith.divf %52, %53 : vector<8x1xf32>
    %55 = vector.broadcast %47 : vector<8x1xf32> to vector<8x96xf32>
    %56 = arith.subf %39, %55 : vector<8x96xf32>
    %cst_36 = arith.constant 9.99999974E-6 : f32
    %57 = vector.broadcast %cst_36 : f32 to vector<8x1xf32>
    %58 = arith.addf %54, %57 : vector<8x1xf32>
    %59 = math.rsqrt %58 : vector<8x1xf32>
    %60 = vector.broadcast %59 : vector<8x1xf32> to vector<8x96xf32>
    %61 = arith.mulf %56, %60 : vector<8x96xf32>
    %62 = vector.broadcast %41 : vector<1x96xf32> to vector<8x96xf32>
    %63 = arith.mulf %61, %62 : vector<8x96xf32>
    %64 = vector.broadcast %43 : vector<1x96xf32> to vector<8x96xf32>
    %65 = arith.addf %63, %64 : vector<8x96xf32>
    %c0_37 = arith.constant 0 : index
    %c0_38 = arith.constant 0 : index
    %c0_39 = arith.constant 0 : index
    %66 = vector.load %arg4[%c0_37, %c0_38, %c0_39] : memref<3x96x256xbf16, #tpu.memory_space<vmem>>, vector<1x96x256xbf16>
    %67 = vector.shape_cast %66 : vector<1x96x256xbf16> to vector<96x256xbf16>
    %68 = arith.extf %67 : vector<96x256xbf16> to vector<96x256xf32>
    %cst_40 = arith.constant dense<0.000000e+00> : vector<8x256xf32>
    %69 = tpu.matmul %65, %68, %cst_40 {dimension_numbers = #tpu.dot_dimension_numbers<[1], [0], [0], [1], [0, 0, 1, 1], [], []>} : vector<8x96xf32>, vector<96x256xf32>, vector<8x256xf32> -> vector<8x256xf32>
    %c0_41 = arith.constant 0 : index
    %c3 = arith.constant 3 : index
    %c0_42 = arith.constant 0 : index
    %70 = vector.load %arg6[%c0_41, %c3, %c0_42] : memref<3x8x256xf32, #tpu.memory_space<vmem>>, vector<1x1x256xf32>
    %71 = vector.shape_cast %70 : vector<1x1x256xf32> to vector<1x256xf32>
    %72 = vector.broadcast %71 : vector<1x256xf32> to vector<8x256xf32>
    %73 = arith.addf %69, %72 : vector<8x256xf32>
    %cst_43 = arith.constant 0.000000e+00 : f32
    %74 = vector.broadcast %cst_43 : f32 to vector<8x256xf32>
    %75 = arith.maximumf %73, %74 : vector<8x256xf32>
    %c0_44 = arith.constant 0 : index
    %c0_45 = arith.constant 0 : index
    %c0_46 = arith.constant 0 : index
    %76 = vector.load %arg5[%c0_44, %c0_45, %c0_46] : memref<3x256x96xbf16, #tpu.memory_space<vmem>>, vector<1x256x96xbf16>
    %77 = vector.shape_cast %76 : vector<1x256x96xbf16> to vector<256x96xbf16>
    %78 = arith.extf %77 : vector<256x96xbf16> to vector<256x96xf32>
    %cst_47 = arith.constant dense<0.000000e+00> : vector<8x96xf32>
    %79 = tpu.matmul %75, %78, %cst_47 {dimension_numbers = #tpu.dot_dimension_numbers<[1], [0], [0], [1], [0, 0, 1, 1], [], []>} : vector<8x256xf32>, vector<256x96xf32>, vector<8x96xf32> -> vector<8x96xf32>
    %c0_48 = arith.constant 0 : index
    %c4 = arith.constant 4 : index
    %c0_49 = arith.constant 0 : index
    %80 = vector.load %arg6[%c0_48, %c4, %c0_49] : memref<3x8x256xf32, #tpu.memory_space<vmem>>, vector<1x1x96xf32>
    %81 = vector.shape_cast %80 : vector<1x1x96xf32> to vector<1x96xf32>
    %82 = vector.broadcast %81 : vector<1x96xf32> to vector<8x96xf32>
    %83 = arith.addf %79, %82 : vector<8x96xf32>
    %84 = arith.addf %65, %83 : vector<8x96xf32>
    %c0_50 = arith.constant 0 : index
    %c5 = arith.constant 5 : index
    %c0_51 = arith.constant 0 : index
    %85 = vector.load %arg6[%c0_50, %c5, %c0_51] : memref<3x8x256xf32, #tpu.memory_space<vmem>>, vector<1x1x96xf32>
    %86 = vector.shape_cast %85 : vector<1x1x96xf32> to vector<1x96xf32>
    %c0_52 = arith.constant 0 : index
    %c6_53 = arith.constant 6 : index
    %c0_54 = arith.constant 0 : index
    %87 = vector.load %arg6[%c0_52, %c6_53, %c0_54] : memref<3x8x256xf32, #tpu.memory_space<vmem>>, vector<1x1x96xf32>
    %88 = vector.shape_cast %87 : vector<1x1x96xf32> to vector<1x96xf32>
    %cst_55 = arith.constant dense<0.000000e+00> : vector<8xf32>
    %89 = vector.multi_reduction <add>, %84, %cst_55 [1] : vector<8x96xf32> to vector<8xf32>
    %90 = vector.shape_cast %89 : vector<8xf32> to vector<8x1xf32>
    %cst_56 = arith.constant 9.600000e+01 : f32
    %91 = vector.broadcast %cst_56 : f32 to vector<8x1xf32>
    %92 = arith.divf %90, %91 : vector<8x1xf32>
    %93 = vector.broadcast %92 : vector<8x1xf32> to vector<8x96xf32>
    %94 = arith.subf %84, %93 : vector<8x96xf32>
    %95 = arith.mulf %94, %94 : vector<8x96xf32>
    %cst_57 = arith.constant dense<0.000000e+00> : vector<8xf32>
    %96 = vector.multi_reduction <add>, %95, %cst_57 [1] : vector<8x96xf32> to vector<8xf32>
    %97 = vector.shape_cast %96 : vector<8xf32> to vector<8x1xf32>
    %cst_58 = arith.constant 9.600000e+01 : f32
    %98 = vector.broadcast %cst_58 : f32 to vector<8x1xf32>
    %99 = arith.divf %97, %98 : vector<8x1xf32>
    %100 = vector.broadcast %92 : vector<8x1xf32> to vector<8x96xf32>
    %101 = arith.subf %84, %100 : vector<8x96xf32>
    %cst_59 = arith.constant 9.99999974E-6 : f32
    %102 = vector.broadcast %cst_59 : f32 to vector<8x1xf32>
    %103 = arith.addf %99, %102 : vector<8x1xf32>
    %104 = math.rsqrt %103 : vector<8x1xf32>
    %105 = vector.broadcast %104 : vector<8x1xf32> to vector<8x96xf32>
    %106 = arith.mulf %101, %105 : vector<8x96xf32>
    %107 = vector.broadcast %86 : vector<1x96xf32> to vector<8x96xf32>
    %108 = arith.mulf %106, %107 : vector<8x96xf32>
    %109 = vector.broadcast %88 : vector<1x96xf32> to vector<8x96xf32>
    %110 = arith.addf %108, %109 : vector<8x96xf32>
    %111 = tpu.concatenate %110, %2 in 1 : vector<8x96xf32>, vector<8x1xf32> -> vector<8x97xf32>
    %112 = vector.shape_cast %111 : vector<8x97xf32> to vector<1x8x97xf32>
    %113 = vector.broadcast %112 : vector<1x8x97xf32> to vector<6x8x97xf32>
    %c1_60 = arith.constant 1 : index
    %c0_61 = arith.constant 0 : index
    %c0_62 = arith.constant 0 : index
    %c0_63 = arith.constant 0 : index
    %114 = vector.load %arg2[%c1_60, %c0_61, %c0_62, %c0_63] : memref<3x18x97x16xbf16, #tpu.memory_space<vmem>>, vector<1x6x97x16xbf16>
    %115 = vector.shape_cast %114 : vector<1x6x97x16xbf16> to vector<6x97x16xbf16>
    %116 = arith.extf %115 : vector<6x97x16xbf16> to vector<6x97x16xf32>
    "tpu.trace_start"() <{level = 10 : i32, message = "nse,ned->nsd"}> : () -> ()
    %cst_64 = arith.constant dense<0.000000e+00> : vector<6x8x16xf32>
    %117 = tpu.matmul %113, %116, %cst_64 {dimension_numbers = #tpu.dot_dimension_numbers<[2], [1], [1], [2], [0, 0, 0, 1, 1, 2], [0], [0]>} : vector<6x8x97xf32>, vector<6x97x16xf32>, vector<6x8x16xf32> -> vector<6x8x16xf32>
    "tpu.trace_stop"() : () -> ()
    %c1_65 = arith.constant 1 : index
    %c6_66 = arith.constant 6 : index
    %c0_67 = arith.constant 0 : index
    %c0_68 = arith.constant 0 : index
    %118 = vector.load %arg2[%c1_65, %c6_66, %c0_67, %c0_68] : memref<3x18x97x16xbf16, #tpu.memory_space<vmem>>, vector<1x6x97x16xbf16>
    %119 = vector.shape_cast %118 : vector<1x6x97x16xbf16> to vector<6x97x16xbf16>
    %120 = arith.extf %119 : vector<6x97x16xbf16> to vector<6x97x16xf32>
    "tpu.trace_start"() <{level = 10 : i32, message = "nse,ned->nsd"}> : () -> ()
    %cst_69 = arith.constant dense<0.000000e+00> : vector<6x8x16xf32>
    %121 = tpu.matmul %113, %120, %cst_69 {dimension_numbers = #tpu.dot_dimension_numbers<[2], [1], [1], [2], [0, 0, 0, 1, 1, 2], [0], [0]>} : vector<6x8x97xf32>, vector<6x97x16xf32>, vector<6x8x16xf32> -> vector<6x8x16xf32>
    "tpu.trace_stop"() : () -> ()
    %c1_70 = arith.constant 1 : index
    %c12_71 = arith.constant 12 : index
    %c0_72 = arith.constant 0 : index
    %c0_73 = arith.constant 0 : index
    %122 = vector.load %arg2[%c1_70, %c12_71, %c0_72, %c0_73] : memref<3x18x97x16xbf16, #tpu.memory_space<vmem>>, vector<1x6x97x16xbf16>
    %123 = vector.shape_cast %122 : vector<1x6x97x16xbf16> to vector<6x97x16xbf16>
    %124 = arith.extf %123 : vector<6x97x16xbf16> to vector<6x97x16xf32>
    "tpu.trace_start"() <{level = 10 : i32, message = "nse,ned->nsd"}> : () -> ()
    %cst_74 = arith.constant dense<0.000000e+00> : vector<6x8x16xf32>
    %125 = tpu.matmul %113, %124, %cst_74 {dimension_numbers = #tpu.dot_dimension_numbers<[2], [1], [1], [2], [0, 0, 0, 1, 1, 2], [0], [0]>} : vector<6x8x97xf32>, vector<6x97x16xf32>, vector<6x8x16xf32> -> vector<6x8x16xf32>
    "tpu.trace_stop"() : () -> ()
    "tpu.trace_start"() <{level = 10 : i32, message = "nqd,nkd->nqk"}> : () -> ()
    %cst_75 = arith.constant dense<0.000000e+00> : vector<6x8x8xf32>
    %126 = tpu.matmul %117, %121, %cst_75 {dimension_numbers = #tpu.dot_dimension_numbers<[2], [2], [1], [1], [0, 0, 0, 1, 1, 1], [0], [0]>} : vector<6x8x16xf32>, vector<6x8x16xf32>, vector<6x8x8xf32> -> vector<6x8x8xf32>
    "tpu.trace_stop"() : () -> ()
    %cst_76 = arith.constant dense<0xFF800000> : vector<6x8xf32>
    %127 = vector.multi_reduction <maximumf>, %126, %cst_76 [2] : vector<6x8x8xf32> to vector<6x8xf32>
    %128 = vector.shape_cast %127 : vector<6x8xf32> to vector<6x8x1xf32>
    %129 = vector.broadcast %128 : vector<6x8x1xf32> to vector<6x8x8xf32>
    %130 = arith.subf %126, %129 : vector<6x8x8xf32>
    %131 = math.exp %130 : vector<6x8x8xf32>
    %cst_77 = arith.constant dense<0.000000e+00> : vector<6x8xf32>
    %132 = vector.multi_reduction <add>, %131, %cst_77 [2] : vector<6x8x8xf32> to vector<6x8xf32>
    %133 = vector.shape_cast %132 : vector<6x8xf32> to vector<6x8x1xf32>
    %134 = tpu.reciprocal %133 {approx = true} : vector<6x8x1xf32> -> vector<6x8x1xf32>
    %135 = vector.broadcast %134 : vector<6x8x1xf32> to vector<6x8x8xf32>
    %136 = arith.mulf %131, %135 : vector<6x8x8xf32>
    "tpu.trace_start"() <{level = 10 : i32, message = "nqk,nkd->nqd"}> : () -> ()
    %cst_78 = arith.constant dense<0.000000e+00> : vector<6x8x16xf32>
    %137 = tpu.matmul %136, %125, %cst_78 {dimension_numbers = #tpu.dot_dimension_numbers<[2], [1], [1], [2], [0, 0, 0, 1, 1, 2], [0], [0]>} : vector<6x8x8xf32>, vector<6x8x16xf32>, vector<6x8x16xf32> -> vector<6x8x16xf32>
    "tpu.trace_stop"() : () -> ()
    %c1_79 = arith.constant 1 : index
    %c0_80 = arith.constant 0 : index
    %c0_81 = arith.constant 0 : index
    %c0_82 = arith.constant 0 : index
    %138 = vector.load %arg3[%c1_79, %c0_80, %c0_81, %c0_82] : memref<3x6x16x96xbf16, #tpu.memory_space<vmem>>, vector<1x6x16x96xbf16>
    %139 = vector.shape_cast %138 : vector<1x6x16x96xbf16> to vector<6x16x96xbf16>
    %140 = arith.extf %139 : vector<6x16x96xbf16> to vector<6x16x96xf32>
    "tpu.trace_start"() <{level = 10 : i32, message = "nqd,ndh->nqh"}> : () -> ()
    %cst_83 = arith.constant dense<0.000000e+00> : vector<6x8x96xf32>
    %141 = tpu.matmul %137, %140, %cst_83 {dimension_numbers = #tpu.dot_dimension_numbers<[2], [1], [1], [2], [0, 0, 0, 1, 1, 2], [0], [0]>} : vector<6x8x16xf32>, vector<6x16x96xf32>, vector<6x8x96xf32> -> vector<6x8x96xf32>
    "tpu.trace_stop"() : () -> ()
    %cst_84 = arith.constant dense<0.000000e+00> : vector<8x96xf32>
    %142 = vector.multi_reduction <add>, %141, %cst_84 [0] : vector<6x8x96xf32> to vector<8x96xf32>
    %c1_85 = arith.constant 1 : index
    %c0_86 = arith.constant 0 : index
    %c0_87 = arith.constant 0 : index
    %143 = vector.load %arg6[%c1_85, %c0_86, %c0_87] : memref<3x8x256xf32, #tpu.memory_space<vmem>>, vector<1x1x96xf32>
    %144 = vector.shape_cast %143 : vector<1x1x96xf32> to vector<1x96xf32>
    %145 = vector.broadcast %144 : vector<1x96xf32> to vector<8x96xf32>
    %146 = arith.addf %142, %145 : vector<8x96xf32>
    %147 = arith.addf %110, %146 : vector<8x96xf32>
    %c1_88 = arith.constant 1 : index
    %c1_89 = arith.constant 1 : index
    %c0_90 = arith.constant 0 : index
    %148 = vector.load %arg6[%c1_88, %c1_89, %c0_90] : memref<3x8x256xf32, #tpu.memory_space<vmem>>, vector<1x1x96xf32>
    %149 = vector.shape_cast %148 : vector<1x1x96xf32> to vector<1x96xf32>
    %c1_91 = arith.constant 1 : index
    %c2_92 = arith.constant 2 : index
    %c0_93 = arith.constant 0 : index
    %150 = vector.load %arg6[%c1_91, %c2_92, %c0_93] : memref<3x8x256xf32, #tpu.memory_space<vmem>>, vector<1x1x96xf32>
    %151 = vector.shape_cast %150 : vector<1x1x96xf32> to vector<1x96xf32>
    %cst_94 = arith.constant dense<0.000000e+00> : vector<8xf32>
    %152 = vector.multi_reduction <add>, %147, %cst_94 [1] : vector<8x96xf32> to vector<8xf32>
    %153 = vector.shape_cast %152 : vector<8xf32> to vector<8x1xf32>
    %cst_95 = arith.constant 9.600000e+01 : f32
    %154 = vector.broadcast %cst_95 : f32 to vector<8x1xf32>
    %155 = arith.divf %153, %154 : vector<8x1xf32>
    %156 = vector.broadcast %155 : vector<8x1xf32> to vector<8x96xf32>
    %157 = arith.subf %147, %156 : vector<8x96xf32>
    %158 = arith.mulf %157, %157 : vector<8x96xf32>
    %cst_96 = arith.constant dense<0.000000e+00> : vector<8xf32>
    %159 = vector.multi_reduction <add>, %158, %cst_96 [1] : vector<8x96xf32> to vector<8xf32>
    %160 = vector.shape_cast %159 : vector<8xf32> to vector<8x1xf32>
    %cst_97 = arith.constant 9.600000e+01 : f32
    %161 = vector.broadcast %cst_97 : f32 to vector<8x1xf32>
    %162 = arith.divf %160, %161 : vector<8x1xf32>
    %163 = vector.broadcast %155 : vector<8x1xf32> to vector<8x96xf32>
    %164 = arith.subf %147, %163 : vector<8x96xf32>
    %cst_98 = arith.constant 9.99999974E-6 : f32
    %165 = vector.broadcast %cst_98 : f32 to vector<8x1xf32>
    %166 = arith.addf %162, %165 : vector<8x1xf32>
    %167 = math.rsqrt %166 : vector<8x1xf32>
    %168 = vector.broadcast %167 : vector<8x1xf32> to vector<8x96xf32>
    %169 = arith.mulf %164, %168 : vector<8x96xf32>
    %170 = vector.broadcast %149 : vector<1x96xf32> to vector<8x96xf32>
    %171 = arith.mulf %169, %170 : vector<8x96xf32>
    %172 = vector.broadcast %151 : vector<1x96xf32> to vector<8x96xf32>
    %173 = arith.addf %171, %172 : vector<8x96xf32>
    %c1_99 = arith.constant 1 : index
    %c0_100 = arith.constant 0 : index
    %c0_101 = arith.constant 0 : index
    %174 = vector.load %arg4[%c1_99, %c0_100, %c0_101] : memref<3x96x256xbf16, #tpu.memory_space<vmem>>, vector<1x96x256xbf16>
    %175 = vector.shape_cast %174 : vector<1x96x256xbf16> to vector<96x256xbf16>
    %176 = arith.extf %175 : vector<96x256xbf16> to vector<96x256xf32>
    %cst_102 = arith.constant dense<0.000000e+00> : vector<8x256xf32>
    %177 = tpu.matmul %173, %176, %cst_102 {dimension_numbers = #tpu.dot_dimension_numbers<[1], [0], [0], [1], [0, 0, 1, 1], [], []>} : vector<8x96xf32>, vector<96x256xf32>, vector<8x256xf32> -> vector<8x256xf32>
    %c1_103 = arith.constant 1 : index
    %c3_104 = arith.constant 3 : index
    %c0_105 = arith.constant 0 : index
    %178 = vector.load %arg6[%c1_103, %c3_104, %c0_105] : memref<3x8x256xf32, #tpu.memory_space<vmem>>, vector<1x1x256xf32>
    %179 = vector.shape_cast %178 : vector<1x1x256xf32> to vector<1x256xf32>
    %180 = vector.broadcast %179 : vector<1x256xf32> to vector<8x256xf32>
    %181 = arith.addf %177, %180 : vector<8x256xf32>
    %cst_106 = arith.constant 0.000000e+00 : f32
    %182 = vector.broadcast %cst_106 : f32 to vector<8x256xf32>
    %183 = arith.maximumf %181, %182 : vector<8x256xf32>
    %c1_107 = arith.constant 1 : index
    %c0_108 = arith.constant 0 : index
    %c0_109 = arith.constant 0 : index
    %184 = vector.load %arg5[%c1_107, %c0_108, %c0_109] : memref<3x256x96xbf16, #tpu.memory_space<vmem>>, vector<1x256x96xbf16>
    %185 = vector.shape_cast %184 : vector<1x256x96xbf16> to vector<256x96xbf16>
    %186 = arith.extf %185 : vector<256x96xbf16> to vector<256x96xf32>
    %cst_110 = arith.constant dense<0.000000e+00> : vector<8x96xf32>
    %187 = tpu.matmul %183, %186, %cst_110 {dimension_numbers = #tpu.dot_dimension_numbers<[1], [0], [0], [1], [0, 0, 1, 1], [], []>} : vector<8x256xf32>, vector<256x96xf32>, vector<8x96xf32> -> vector<8x96xf32>
    %c1_111 = arith.constant 1 : index
    %c4_112 = arith.constant 4 : index
    %c0_113 = arith.constant 0 : index
    %188 = vector.load %arg6[%c1_111, %c4_112, %c0_113] : memref<3x8x256xf32, #tpu.memory_space<vmem>>, vector<1x1x96xf32>
    %189 = vector.shape_cast %188 : vector<1x1x96xf32> to vector<1x96xf32>
    %190 = vector.broadcast %189 : vector<1x96xf32> to vector<8x96xf32>
    %191 = arith.addf %187, %190 : vector<8x96xf32>
    %192 = arith.addf %173, %191 : vector<8x96xf32>
    %c1_114 = arith.constant 1 : index
    %c5_115 = arith.constant 5 : index
    %c0_116 = arith.constant 0 : index
    %193 = vector.load %arg6[%c1_114, %c5_115, %c0_116] : memref<3x8x256xf32, #tpu.memory_space<vmem>>, vector<1x1x96xf32>
    %194 = vector.shape_cast %193 : vector<1x1x96xf32> to vector<1x96xf32>
    %c1_117 = arith.constant 1 : index
    %c6_118 = arith.constant 6 : index
    %c0_119 = arith.constant 0 : index
    %195 = vector.load %arg6[%c1_117, %c6_118, %c0_119] : memref<3x8x256xf32, #tpu.memory_space<vmem>>, vector<1x1x96xf32>
    %196 = vector.shape_cast %195 : vector<1x1x96xf32> to vector<1x96xf32>
    %cst_120 = arith.constant dense<0.000000e+00> : vector<8xf32>
    %197 = vector.multi_reduction <add>, %192, %cst_120 [1] : vector<8x96xf32> to vector<8xf32>
    %198 = vector.shape_cast %197 : vector<8xf32> to vector<8x1xf32>
    %cst_121 = arith.constant 9.600000e+01 : f32
    %199 = vector.broadcast %cst_121 : f32 to vector<8x1xf32>
    %200 = arith.divf %198, %199 : vector<8x1xf32>
    %201 = vector.broadcast %200 : vector<8x1xf32> to vector<8x96xf32>
    %202 = arith.subf %192, %201 : vector<8x96xf32>
    %203 = arith.mulf %202, %202 : vector<8x96xf32>
    %cst_122 = arith.constant dense<0.000000e+00> : vector<8xf32>
    %204 = vector.multi_reduction <add>, %203, %cst_122 [1] : vector<8x96xf32> to vector<8xf32>
    %205 = vector.shape_cast %204 : vector<8xf32> to vector<8x1xf32>
    %cst_123 = arith.constant 9.600000e+01 : f32
    %206 = vector.broadcast %cst_123 : f32 to vector<8x1xf32>
    %207 = arith.divf %205, %206 : vector<8x1xf32>
    %208 = vector.broadcast %200 : vector<8x1xf32> to vector<8x96xf32>
    %209 = arith.subf %192, %208 : vector<8x96xf32>
    %cst_124 = arith.constant 9.99999974E-6 : f32
    %210 = vector.broadcast %cst_124 : f32 to vector<8x1xf32>
    %211 = arith.addf %207, %210 : vector<8x1xf32>
    %212 = math.rsqrt %211 : vector<8x1xf32>
    %213 = vector.broadcast %212 : vector<8x1xf32> to vector<8x96xf32>
    %214 = arith.mulf %209, %213 : vector<8x96xf32>
    %215 = vector.broadcast %194 : vector<1x96xf32> to vector<8x96xf32>
    %216 = arith.mulf %214, %215 : vector<8x96xf32>
    %217 = vector.broadcast %196 : vector<1x96xf32> to vector<8x96xf32>
    %218 = arith.addf %216, %217 : vector<8x96xf32>
    %219 = tpu.concatenate %218, %2 in 1 : vector<8x96xf32>, vector<8x1xf32> -> vector<8x97xf32>
    %220 = vector.shape_cast %219 : vector<8x97xf32> to vector<1x8x97xf32>
    %221 = vector.broadcast %220 : vector<1x8x97xf32> to vector<6x8x97xf32>
    %c2_125 = arith.constant 2 : index
    %c0_126 = arith.constant 0 : index
    %c0_127 = arith.constant 0 : index
    %c0_128 = arith.constant 0 : index
    %222 = vector.load %arg2[%c2_125, %c0_126, %c0_127, %c0_128] : memref<3x18x97x16xbf16, #tpu.memory_space<vmem>>, vector<1x6x97x16xbf16>
    %223 = vector.shape_cast %222 : vector<1x6x97x16xbf16> to vector<6x97x16xbf16>
    %224 = arith.extf %223 : vector<6x97x16xbf16> to vector<6x97x16xf32>
    "tpu.trace_start"() <{level = 10 : i32, message = "nse,ned->nsd"}> : () -> ()
    %cst_129 = arith.constant dense<0.000000e+00> : vector<6x8x16xf32>
    %225 = tpu.matmul %221, %224, %cst_129 {dimension_numbers = #tpu.dot_dimension_numbers<[2], [1], [1], [2], [0, 0, 0, 1, 1, 2], [0], [0]>} : vector<6x8x97xf32>, vector<6x97x16xf32>, vector<6x8x16xf32> -> vector<6x8x16xf32>
    "tpu.trace_stop"() : () -> ()
    %c2_130 = arith.constant 2 : index
    %c6_131 = arith.constant 6 : index
    %c0_132 = arith.constant 0 : index
    %c0_133 = arith.constant 0 : index
    %226 = vector.load %arg2[%c2_130, %c6_131, %c0_132, %c0_133] : memref<3x18x97x16xbf16, #tpu.memory_space<vmem>>, vector<1x6x97x16xbf16>
    %227 = vector.shape_cast %226 : vector<1x6x97x16xbf16> to vector<6x97x16xbf16>
    %228 = arith.extf %227 : vector<6x97x16xbf16> to vector<6x97x16xf32>
    "tpu.trace_start"() <{level = 10 : i32, message = "nse,ned->nsd"}> : () -> ()
    %cst_134 = arith.constant dense<0.000000e+00> : vector<6x8x16xf32>
    %229 = tpu.matmul %221, %228, %cst_134 {dimension_numbers = #tpu.dot_dimension_numbers<[2], [1], [1], [2], [0, 0, 0, 1, 1, 2], [0], [0]>} : vector<6x8x97xf32>, vector<6x97x16xf32>, vector<6x8x16xf32> -> vector<6x8x16xf32>
    "tpu.trace_stop"() : () -> ()
    %c2_135 = arith.constant 2 : index
    %c12_136 = arith.constant 12 : index
    %c0_137 = arith.constant 0 : index
    %c0_138 = arith.constant 0 : index
    %230 = vector.load %arg2[%c2_135, %c12_136, %c0_137, %c0_138] : memref<3x18x97x16xbf16, #tpu.memory_space<vmem>>, vector<1x6x97x16xbf16>
    %231 = vector.shape_cast %230 : vector<1x6x97x16xbf16> to vector<6x97x16xbf16>
    %232 = arith.extf %231 : vector<6x97x16xbf16> to vector<6x97x16xf32>
    "tpu.trace_start"() <{level = 10 : i32, message = "nse,ned->nsd"}> : () -> ()
    %cst_139 = arith.constant dense<0.000000e+00> : vector<6x8x16xf32>
    %233 = tpu.matmul %221, %232, %cst_139 {dimension_numbers = #tpu.dot_dimension_numbers<[2], [1], [1], [2], [0, 0, 0, 1, 1, 2], [0], [0]>} : vector<6x8x97xf32>, vector<6x97x16xf32>, vector<6x8x16xf32> -> vector<6x8x16xf32>
    "tpu.trace_stop"() : () -> ()
    "tpu.trace_start"() <{level = 10 : i32, message = "nqd,nkd->nqk"}> : () -> ()
    %cst_140 = arith.constant dense<0.000000e+00> : vector<6x8x8xf32>
    %234 = tpu.matmul %225, %229, %cst_140 {dimension_numbers = #tpu.dot_dimension_numbers<[2], [2], [1], [1], [0, 0, 0, 1, 1, 1], [0], [0]>} : vector<6x8x16xf32>, vector<6x8x16xf32>, vector<6x8x8xf32> -> vector<6x8x8xf32>
    "tpu.trace_stop"() : () -> ()
    %cst_141 = arith.constant dense<0xFF800000> : vector<6x8xf32>
    %235 = vector.multi_reduction <maximumf>, %234, %cst_141 [2] : vector<6x8x8xf32> to vector<6x8xf32>
    %236 = vector.shape_cast %235 : vector<6x8xf32> to vector<6x8x1xf32>
    %237 = vector.broadcast %236 : vector<6x8x1xf32> to vector<6x8x8xf32>
    %238 = arith.subf %234, %237 : vector<6x8x8xf32>
    %239 = math.exp %238 : vector<6x8x8xf32>
    %cst_142 = arith.constant dense<0.000000e+00> : vector<6x8xf32>
    %240 = vector.multi_reduction <add>, %239, %cst_142 [2] : vector<6x8x8xf32> to vector<6x8xf32>
    %241 = vector.shape_cast %240 : vector<6x8xf32> to vector<6x8x1xf32>
    %242 = tpu.reciprocal %241 {approx = true} : vector<6x8x1xf32> -> vector<6x8x1xf32>
    %243 = vector.broadcast %242 : vector<6x8x1xf32> to vector<6x8x8xf32>
    %244 = arith.mulf %239, %243 : vector<6x8x8xf32>
    "tpu.trace_start"() <{level = 10 : i32, message = "nqk,nkd->nqd"}> : () -> ()
    %cst_143 = arith.constant dense<0.000000e+00> : vector<6x8x16xf32>
    %245 = tpu.matmul %244, %233, %cst_143 {dimension_numbers = #tpu.dot_dimension_numbers<[2], [1], [1], [2], [0, 0, 0, 1, 1, 2], [0], [0]>} : vector<6x8x8xf32>, vector<6x8x16xf32>, vector<6x8x16xf32> -> vector<6x8x16xf32>
    "tpu.trace_stop"() : () -> ()
    %c2_144 = arith.constant 2 : index
    %c0_145 = arith.constant 0 : index
    %c0_146 = arith.constant 0 : index
    %c0_147 = arith.constant 0 : index
    %246 = vector.load %arg3[%c2_144, %c0_145, %c0_146, %c0_147] : memref<3x6x16x96xbf16, #tpu.memory_space<vmem>>, vector<1x6x16x96xbf16>
    %247 = vector.shape_cast %246 : vector<1x6x16x96xbf16> to vector<6x16x96xbf16>
    %248 = arith.extf %247 : vector<6x16x96xbf16> to vector<6x16x96xf32>
    "tpu.trace_start"() <{level = 10 : i32, message = "nqd,ndh->nqh"}> : () -> ()
    %cst_148 = arith.constant dense<0.000000e+00> : vector<6x8x96xf32>
    %249 = tpu.matmul %245, %248, %cst_148 {dimension_numbers = #tpu.dot_dimension_numbers<[2], [1], [1], [2], [0, 0, 0, 1, 1, 2], [0], [0]>} : vector<6x8x16xf32>, vector<6x16x96xf32>, vector<6x8x96xf32> -> vector<6x8x96xf32>
    "tpu.trace_stop"() : () -> ()
    %cst_149 = arith.constant dense<0.000000e+00> : vector<8x96xf32>
    %250 = vector.multi_reduction <add>, %249, %cst_149 [0] : vector<6x8x96xf32> to vector<8x96xf32>
    %c2_150 = arith.constant 2 : index
    %c0_151 = arith.constant 0 : index
    %c0_152 = arith.constant 0 : index
    %251 = vector.load %arg6[%c2_150, %c0_151, %c0_152] : memref<3x8x256xf32, #tpu.memory_space<vmem>>, vector<1x1x96xf32>
    %252 = vector.shape_cast %251 : vector<1x1x96xf32> to vector<1x96xf32>
    %253 = vector.broadcast %252 : vector<1x96xf32> to vector<8x96xf32>
    %254 = arith.addf %250, %253 : vector<8x96xf32>
    %255 = arith.addf %218, %254 : vector<8x96xf32>
    %c2_153 = arith.constant 2 : index
    %c1_154 = arith.constant 1 : index
    %c0_155 = arith.constant 0 : index
    %256 = vector.load %arg6[%c2_153, %c1_154, %c0_155] : memref<3x8x256xf32, #tpu.memory_space<vmem>>, vector<1x1x96xf32>
    %257 = vector.shape_cast %256 : vector<1x1x96xf32> to vector<1x96xf32>
    %c2_156 = arith.constant 2 : index
    %c2_157 = arith.constant 2 : index
    %c0_158 = arith.constant 0 : index
    %258 = vector.load %arg6[%c2_156, %c2_157, %c0_158] : memref<3x8x256xf32, #tpu.memory_space<vmem>>, vector<1x1x96xf32>
    %259 = vector.shape_cast %258 : vector<1x1x96xf32> to vector<1x96xf32>
    %cst_159 = arith.constant dense<0.000000e+00> : vector<8xf32>
    %260 = vector.multi_reduction <add>, %255, %cst_159 [1] : vector<8x96xf32> to vector<8xf32>
    %261 = vector.shape_cast %260 : vector<8xf32> to vector<8x1xf32>
    %cst_160 = arith.constant 9.600000e+01 : f32
    %262 = vector.broadcast %cst_160 : f32 to vector<8x1xf32>
    %263 = arith.divf %261, %262 : vector<8x1xf32>
    %264 = vector.broadcast %263 : vector<8x1xf32> to vector<8x96xf32>
    %265 = arith.subf %255, %264 : vector<8x96xf32>
    %266 = arith.mulf %265, %265 : vector<8x96xf32>
    %cst_161 = arith.constant dense<0.000000e+00> : vector<8xf32>
    %267 = vector.multi_reduction <add>, %266, %cst_161 [1] : vector<8x96xf32> to vector<8xf32>
    %268 = vector.shape_cast %267 : vector<8xf32> to vector<8x1xf32>
    %cst_162 = arith.constant 9.600000e+01 : f32
    %269 = vector.broadcast %cst_162 : f32 to vector<8x1xf32>
    %270 = arith.divf %268, %269 : vector<8x1xf32>
    %271 = vector.broadcast %263 : vector<8x1xf32> to vector<8x96xf32>
    %272 = arith.subf %255, %271 : vector<8x96xf32>
    %cst_163 = arith.constant 9.99999974E-6 : f32
    %273 = vector.broadcast %cst_163 : f32 to vector<8x1xf32>
    %274 = arith.addf %270, %273 : vector<8x1xf32>
    %275 = math.rsqrt %274 : vector<8x1xf32>
    %276 = vector.broadcast %275 : vector<8x1xf32> to vector<8x96xf32>
    %277 = arith.mulf %272, %276 : vector<8x96xf32>
    %278 = vector.broadcast %257 : vector<1x96xf32> to vector<8x96xf32>
    %279 = arith.mulf %277, %278 : vector<8x96xf32>
    %280 = vector.broadcast %259 : vector<1x96xf32> to vector<8x96xf32>
    %281 = arith.addf %279, %280 : vector<8x96xf32>
    %c2_164 = arith.constant 2 : index
    %c0_165 = arith.constant 0 : index
    %c0_166 = arith.constant 0 : index
    %282 = vector.load %arg4[%c2_164, %c0_165, %c0_166] : memref<3x96x256xbf16, #tpu.memory_space<vmem>>, vector<1x96x256xbf16>
    %283 = vector.shape_cast %282 : vector<1x96x256xbf16> to vector<96x256xbf16>
    %284 = arith.extf %283 : vector<96x256xbf16> to vector<96x256xf32>
    %cst_167 = arith.constant dense<0.000000e+00> : vector<8x256xf32>
    %285 = tpu.matmul %281, %284, %cst_167 {dimension_numbers = #tpu.dot_dimension_numbers<[1], [0], [0], [1], [0, 0, 1, 1], [], []>} : vector<8x96xf32>, vector<96x256xf32>, vector<8x256xf32> -> vector<8x256xf32>
    %c2_168 = arith.constant 2 : index
    %c3_169 = arith.constant 3 : index
    %c0_170 = arith.constant 0 : index
    %286 = vector.load %arg6[%c2_168, %c3_169, %c0_170] : memref<3x8x256xf32, #tpu.memory_space<vmem>>, vector<1x1x256xf32>
    %287 = vector.shape_cast %286 : vector<1x1x256xf32> to vector<1x256xf32>
    %288 = vector.broadcast %287 : vector<1x256xf32> to vector<8x256xf32>
    %289 = arith.addf %285, %288 : vector<8x256xf32>
    %cst_171 = arith.constant 0.000000e+00 : f32
    %290 = vector.broadcast %cst_171 : f32 to vector<8x256xf32>
    %291 = arith.maximumf %289, %290 : vector<8x256xf32>
    %c2_172 = arith.constant 2 : index
    %c0_173 = arith.constant 0 : index
    %c0_174 = arith.constant 0 : index
    %292 = vector.load %arg5[%c2_172, %c0_173, %c0_174] : memref<3x256x96xbf16, #tpu.memory_space<vmem>>, vector<1x256x96xbf16>
    %293 = vector.shape_cast %292 : vector<1x256x96xbf16> to vector<256x96xbf16>
    %294 = arith.extf %293 : vector<256x96xbf16> to vector<256x96xf32>
    %cst_175 = arith.constant dense<0.000000e+00> : vector<8x96xf32>
    %295 = tpu.matmul %291, %294, %cst_175 {dimension_numbers = #tpu.dot_dimension_numbers<[1], [0], [0], [1], [0, 0, 1, 1], [], []>} : vector<8x256xf32>, vector<256x96xf32>, vector<8x96xf32> -> vector<8x96xf32>
    %c2_176 = arith.constant 2 : index
    %c4_177 = arith.constant 4 : index
    %c0_178 = arith.constant 0 : index
    %296 = vector.load %arg6[%c2_176, %c4_177, %c0_178] : memref<3x8x256xf32, #tpu.memory_space<vmem>>, vector<1x1x96xf32>
    %297 = vector.shape_cast %296 : vector<1x1x96xf32> to vector<1x96xf32>
    %298 = vector.broadcast %297 : vector<1x96xf32> to vector<8x96xf32>
    %299 = arith.addf %295, %298 : vector<8x96xf32>
    %300 = arith.addf %281, %299 : vector<8x96xf32>
    %c2_179 = arith.constant 2 : index
    %c5_180 = arith.constant 5 : index
    %c0_181 = arith.constant 0 : index
    %301 = vector.load %arg6[%c2_179, %c5_180, %c0_181] : memref<3x8x256xf32, #tpu.memory_space<vmem>>, vector<1x1x96xf32>
    %302 = vector.shape_cast %301 : vector<1x1x96xf32> to vector<1x96xf32>
    %c2_182 = arith.constant 2 : index
    %c6_183 = arith.constant 6 : index
    %c0_184 = arith.constant 0 : index
    %303 = vector.load %arg6[%c2_182, %c6_183, %c0_184] : memref<3x8x256xf32, #tpu.memory_space<vmem>>, vector<1x1x96xf32>
    %304 = vector.shape_cast %303 : vector<1x1x96xf32> to vector<1x96xf32>
    %cst_185 = arith.constant dense<0.000000e+00> : vector<8xf32>
    %305 = vector.multi_reduction <add>, %300, %cst_185 [1] : vector<8x96xf32> to vector<8xf32>
    %306 = vector.shape_cast %305 : vector<8xf32> to vector<8x1xf32>
    %cst_186 = arith.constant 9.600000e+01 : f32
    %307 = vector.broadcast %cst_186 : f32 to vector<8x1xf32>
    %308 = arith.divf %306, %307 : vector<8x1xf32>
    %309 = vector.broadcast %308 : vector<8x1xf32> to vector<8x96xf32>
    %310 = arith.subf %300, %309 : vector<8x96xf32>
    %311 = arith.mulf %310, %310 : vector<8x96xf32>
    %cst_187 = arith.constant dense<0.000000e+00> : vector<8xf32>
    %312 = vector.multi_reduction <add>, %311, %cst_187 [1] : vector<8x96xf32> to vector<8xf32>
    %313 = vector.shape_cast %312 : vector<8xf32> to vector<8x1xf32>
    %cst_188 = arith.constant 9.600000e+01 : f32
    %314 = vector.broadcast %cst_188 : f32 to vector<8x1xf32>
    %315 = arith.divf %313, %314 : vector<8x1xf32>
    %316 = vector.broadcast %308 : vector<8x1xf32> to vector<8x96xf32>
    %317 = arith.subf %300, %316 : vector<8x96xf32>
    %cst_189 = arith.constant 9.99999974E-6 : f32
    %318 = vector.broadcast %cst_189 : f32 to vector<8x1xf32>
    %319 = arith.addf %315, %318 : vector<8x1xf32>
    %320 = math.rsqrt %319 : vector<8x1xf32>
    %321 = vector.broadcast %320 : vector<8x1xf32> to vector<8x96xf32>
    %322 = arith.mulf %317, %321 : vector<8x96xf32>
    %323 = vector.broadcast %302 : vector<1x96xf32> to vector<8x96xf32>
    %324 = arith.mulf %322, %323 : vector<8x96xf32>
    %325 = vector.broadcast %304 : vector<1x96xf32> to vector<8x96xf32>
    %326 = arith.addf %324, %325 : vector<8x96xf32>
    %c0_190 = arith.constant 0 : index
    %c0_191 = arith.constant 0 : index
    %327 = vector.load %arg7[%c0_190, %c0_191] : memref<8x192xf32, #tpu.memory_space<vmem>>, vector<1x96xf32>
    %328 = vector.broadcast %327 : vector<1x96xf32> to vector<8x96xf32>
    %329 = arith.mulf %326, %328 : vector<8x96xf32>
    %cst_192 = arith.constant dense<0.000000e+00> : vector<8xf32>
    %330 = vector.multi_reduction <add>, %329, %cst_192 [1] : vector<8x96xf32> to vector<8xf32>
    %331 = vector.shape_cast %330 : vector<8xf32> to vector<8x1xf32>
    %cst_193 = arith.constant dense<0xFF800000> : vector<1xf32>
    %332 = vector.multi_reduction <maximumf>, %331, %cst_193 [0] : vector<8x1xf32> to vector<1xf32>
    %333 = vector.shape_cast %332 : vector<1xf32> to vector<1x1xf32>
    %334 = vector.broadcast %333 : vector<1x1xf32> to vector<8x1xf32>
    %335 = arith.subf %331, %334 : vector<8x1xf32>
    %336 = math.exp %335 : vector<8x1xf32>
    %cst_194 = arith.constant dense<0.000000e+00> : vector<1xf32>
    %337 = vector.multi_reduction <add>, %336, %cst_194 [0] : vector<8x1xf32> to vector<1xf32>
    %338 = vector.shape_cast %337 : vector<1xf32> to vector<1x1xf32>
    %339 = tpu.reciprocal %338 {approx = true} : vector<1x1xf32> -> vector<1x1xf32>
    %340 = vector.broadcast %339 : vector<1x1xf32> to vector<8x1xf32>
    %341 = arith.mulf %336, %340 : vector<8x1xf32>
    %342 = vector.broadcast %341 : vector<8x1xf32> to vector<8x96xf32>
    %343 = arith.mulf %342, %326 : vector<8x96xf32>
    %cst_195 = arith.constant dense<0.000000e+00> : vector<96xf32>
    %344 = vector.multi_reduction <add>, %343, %cst_195 [0] : vector<8x96xf32> to vector<96xf32>
    %345 = vector.shape_cast %344 : vector<96xf32> to vector<1x96xf32>
    %346 = vector.extract_strided_slice %326 {offsets = [0, 0], sizes = [1, 96], strides = [1, 1]} : vector<8x96xf32> to vector<1x96xf32>
    %347 = tpu.concatenate %346, %345 in 1 : vector<1x96xf32>, vector<1x96xf32> -> vector<1x192xf32>
    %c1_196 = arith.constant 1 : index
    %c0_197 = arith.constant 0 : index
    %348 = vector.load %arg7[%c1_196, %c0_197] : memref<8x192xf32, #tpu.memory_space<vmem>>, vector<1x192xf32>
    %c2_198 = arith.constant 2 : index
    %c0_199 = arith.constant 0 : index
    %349 = vector.load %arg7[%c2_198, %c0_199] : memref<8x192xf32, #tpu.memory_space<vmem>>, vector<1x192xf32>
    %cst_200 = arith.constant dense<0.000000e+00> : vector<1xf32>
    %350 = vector.multi_reduction <add>, %347, %cst_200 [1] : vector<1x192xf32> to vector<1xf32>
    %351 = vector.shape_cast %350 : vector<1xf32> to vector<1x1xf32>
    %cst_201 = arith.constant 1.920000e+02 : f32
    %352 = vector.broadcast %cst_201 : f32 to vector<1x1xf32>
    %353 = arith.divf %351, %352 : vector<1x1xf32>
    %354 = vector.broadcast %353 : vector<1x1xf32> to vector<1x192xf32>
    %355 = arith.subf %347, %354 : vector<1x192xf32>
    %356 = arith.mulf %355, %355 : vector<1x192xf32>
    %cst_202 = arith.constant dense<0.000000e+00> : vector<1xf32>
    %357 = vector.multi_reduction <add>, %356, %cst_202 [1] : vector<1x192xf32> to vector<1xf32>
    %358 = vector.shape_cast %357 : vector<1xf32> to vector<1x1xf32>
    %cst_203 = arith.constant 1.920000e+02 : f32
    %359 = vector.broadcast %cst_203 : f32 to vector<1x1xf32>
    %360 = arith.divf %358, %359 : vector<1x1xf32>
    %361 = vector.broadcast %353 : vector<1x1xf32> to vector<1x192xf32>
    %362 = arith.subf %347, %361 : vector<1x192xf32>
    %cst_204 = arith.constant 9.99999974E-6 : f32
    %363 = vector.broadcast %cst_204 : f32 to vector<1x1xf32>
    %364 = arith.addf %360, %363 : vector<1x1xf32>
    %365 = math.rsqrt %364 : vector<1x1xf32>
    %366 = vector.broadcast %365 : vector<1x1xf32> to vector<1x192xf32>
    %367 = arith.mulf %362, %366 : vector<1x192xf32>
    %368 = arith.mulf %367, %348 : vector<1x192xf32>
    %369 = arith.addf %368, %349 : vector<1x192xf32>
    %c3_205 = arith.constant 3 : index
    %c0_206 = arith.constant 0 : index
    %370 = vector.load %arg7[%c3_205, %c0_206] : memref<8x192xf32, #tpu.memory_space<vmem>>, vector<2x192xf32>
    "tpu.trace_start"() <{level = 10 : i32, message = "ah,ch->ac"}> : () -> ()
    %cst_207 = arith.constant dense<0.000000e+00> : vector<1x2xf32>
    %371 = tpu.matmul %369, %370, %cst_207 {dimension_numbers = #tpu.dot_dimension_numbers<[1], [1], [0], [0], [0, 0, 1, 0], [], []>} : vector<1x192xf32>, vector<2x192xf32>, vector<1x2xf32> -> vector<1x2xf32>
    "tpu.trace_stop"() : () -> ()
    %c5_208 = arith.constant 5 : index
    %c0_209 = arith.constant 0 : index
    %372 = vector.load %arg7[%c5_208, %c0_209] : memref<8x192xf32, #tpu.memory_space<vmem>>, vector<1x2xf32>
    %373 = arith.addf %371, %372 : vector<1x2xf32>
    %c0_210 = arith.constant 0 : index
    %c0_211 = arith.constant 0 : index
    %c0_212 = arith.constant 0 : index
    %374 = vector.load %arg8[%c0_210, %c0_211, %c0_212] : memref<1x1x2xf32, #tpu.memory_space<vmem>>, vector<1x1x2xf32>
    %375 = vector.shape_cast %374 : vector<1x1x2xf32> to vector<1x2xf32>
    %376 = vector.shape_cast %373 : vector<1x2xf32> to vector<1x1x2xf32>
    tpu.vector_store %arg8[%c0_210, %c0_211, %c0_212], %376 {strides = array<i32>} : memref<1x1x2xf32, #tpu.memory_space<vmem>>, vector<1x1x2xf32>,
    return
  }
  func.func @transform_0(%arg0: i32) -> (i32, i32, i32) {
    %c0_i32 = arith.constant 0 : i32
    %c0_i32_0 = arith.constant 0 : i32
    %c0_i32_1 = arith.constant 0 : i32
    return %arg0, %c0_i32, %c0_i32_0 : i32, i32, i32
  }
  func.func @transform_1(%arg0: i32) -> (i32, i32, i32, i32) {
    %c0_i32 = arith.constant 0 : i32
    %c0_i32_0 = arith.constant 0 : i32
    %c0_i32_1 = arith.constant 0 : i32
    %c0_i32_2 = arith.constant 0 : i32
    %c0_i32_3 = arith.constant 0 : i32
    return %c0_i32, %c0_i32_0, %c0_i32_1, %c0_i32_2 : i32, i32, i32, i32
  }
  func.func @transform_2(%arg0: i32) -> (i32, i32, i32, i32) {
    %c0_i32 = arith.constant 0 : i32
    %c0_i32_0 = arith.constant 0 : i32
    %c0_i32_1 = arith.constant 0 : i32
    %c0_i32_2 = arith.constant 0 : i32
    %c0_i32_3 = arith.constant 0 : i32
    return %c0_i32, %c0_i32_0, %c0_i32_1, %c0_i32_2 : i32, i32, i32, i32
  }
  func.func @transform_3(%arg0: i32) -> (i32, i32, i32) {
    %c0_i32 = arith.constant 0 : i32
    %c0_i32_0 = arith.constant 0 : i32
    %c0_i32_1 = arith.constant 0 : i32
    %c0_i32_2 = arith.constant 0 : i32
    return %c0_i32, %c0_i32_0, %c0_i32_1 : i32, i32, i32
  }
  func.func @transform_4(%arg0: i32) -> (i32, i32, i32) {
    %c0_i32 = arith.constant 0 : i32
    %c0_i32_0 = arith.constant 0 : i32
    %c0_i32_1 = arith.constant 0 : i32
    %c0_i32_2 = arith.constant 0 : i32
    return %c0_i32, %c0_i32_0, %c0_i32_1 : i32, i32, i32
  }
  func.func @transform_5(%arg0: i32) -> (i32, i32, i32) {
    %c0_i32 = arith.constant 0 : i32
    %c0_i32_0 = arith.constant 0 : i32
    %c0_i32_1 = arith.constant 0 : i32
    %c0_i32_2 = arith.constant 0 : i32
    return %c0_i32, %c0_i32_0, %c0_i32_1 : i32, i32, i32
  }
  func.func @transform_6(%arg0: i32) -> (i32, i32) {
    %c0_i32 = arith.constant 0 : i32
    %c0_i32_0 = arith.constant 0 : i32
    %c0_i32_1 = arith.constant 0 : i32
    return %c0_i32, %c0_i32_0 : i32, i32
  }
  func.func @transform_7(%arg0: i32) -> (i32, i32, i32) {
    %c0_i32 = arith.constant 0 : i32
    %c0_i32_0 = arith.constant 0 : i32
    %c0_i32_1 = arith.constant 0 : i32
    return %arg0, %c0_i32, %c0_i32_0 : i32, i32, i32
  }
}

</mosaic_0001>

<bundles_post_ra>
// kernel: hier_finbert_forward.1
= control target key start
LH: loop header
LB: loop body
LE: loop exit
PB: predicated region body
PF: predicated region fallthrough
CT: control target
= control target key end

     0   :  { %s19123_s24 = smov 0   ;;  %s21701_s0 = inlined_call_operand.vmem [shape: f32[4,8,96], index: 0, kind: input, shape index: {}]   ;;  %s21702_s1 = inlined_call_operand.vmem [shape: bf16[3,18,97,16], index: 1, kind: input, shape index: {}]   ;;  %s21703_s2 = inlined_call_operand.vmem [shape: bf16[3,6,16,96], index: 2, kind: input, shape index: {}]   ;;  %s21704_s3 = inlined_call_operand.vmem [shape: bf16[3,96,256], index: 3, kind: input, shape index: {}]   ;;  %s21705_s4 = inlined_call_operand.vmem [shape: bf16[3,256,96], index: 4, kind: input, shape index: {}]   ;;  %s21706_s5 = inlined_call_operand.vmem [shape: f32[3,8,256], index: 5, kind: input, shape index: {}]   ;;  %s21707_s6 = inlined_call_operand.vmem [shape: f32[8,192], index: 6, kind: input, shape index: {}]   ;;  %s21708_s7 = inlined_call_operand.vmem [shape: f32[4,1,2], index: 7, kind: output, shape index: {}]  }
   0x1 LB: > { %s11068_s25 = sadd.s32 4294967295, %s19077_s24   ;;  %p11072_p0 = scmp.ge.s32.totalorder %s19077_s24, 1  ;;  %s19077_s24 = sphi %s19123_s24, %s17_s24  }
   0x2   : > { %p236_p1 = scmp.lt.s32.totalorder %s19077_s24, 5 }
   0x4   : > { %p237_p2 = pnand %p11072_p0, %p236_p1 }
   0x5   : > { %v12015_v0 = vld [vmem:[%s21702_s1] sm:$0xff] (!%p237_p2)   ;;  %v19079_v1 = vmov (!%p237_p2), 0.0|0.0   ;;  %v18899_v2 = vld [vmem:[%s21702_s1 + $0x34] sm:$0xff] (!%p237_p2)   ;;  %vm19080_vm0 = vmmov (!%p237_p2), 0   ;;  %v19081_v3 = vmov (!%p237_p2), 0.0   ;;  %v13466_v4 = vld [vmem:[%s21702_s1 + $0x8] sm:$0xff] (!%p237_p2)  }
   0x6   : > { %240 = sbr.rel (%p237_p2) target bundleno = 8011 (0x1f4b), region = 48  ;;  %16685 = vmatprep.subr.bf16.mxu0 (!%p237_p2), %v19079_v1  ;;  %16703 = vmatprep.subr.bf16.mxu1 (!%p237_p2), %v19079_v1  ;;  %v18619_v5 = vld [vmem:[%s21702_s1 + $0x3c] sm:$0xff] (!%p237_p2)   ;;  %v13467_v6 = vld [vmem:[%s21702_s1 + $0x10] sm:$0xff] (!%p237_p2)   ;;  %v18621_v7 = vld [vmem:[%s21702_s1 + $0x44] sm:$0xff] (!%p237_p2)   ;;  %p265_p3 = scmp.lt.s32.totalorder (!%p237_p2), %s11068_s25, 3  ;;  %vm273_vm1 = vcmask (!%p237_p2), 785408  }
   0x7   : > { %16687 = vmatpush3.bf16.msra.mxu0 (!%p237_p2), %v12015_v0  ;;  %14839 = vmatprep.mubr.msk.f32.mxu0 (!%p237_p2), %vm19080_vm0, %v19081_v3  ;;  %v13468_v8 = vld [vmem:[%s21702_s1 + $0x18] sm:$0xff] (!%p237_p2)   ;;  %v18623_v9 = vld [vmem:[%s21702_s1 + $0x4c] sm:$0xff] (!%p237_p2)   ;;  %v13469_v10 = vld [vmem:[%s21702_s1 + $0x20] sm:$0xff] (!%p237_p2)   ;;  %vm435_vm2 = vcmask (!%p237_p2), 1040384   ;;  %vm431_vm3 = vcmask (!%p237_p2), 793600   ;;  %vm2064_vm4 = vcmask (!%p237_p2), 130048  }
   0x8   : > { %16705 = vmatpush3.bf16.msra.mxu1 (!%p237_p2), %v18899_v2  ;;  %16688 = vmatprep.subr.bf16.mxu0 (!%p237_p2), %v19079_v1  ;;  %v18625_v11 = vld [vmem:[%s21702_s1 + $0x54] sm:$0xff] (!%p237_p2)   ;;  %v13470_v12 = vld [vmem:[%s21702_s1 + $0x28] sm:$0xff] (!%p237_p2)   ;;  %v18626_v13 = vld [vmem:[%s21702_s1 + $0x5c] sm:$0xff] (!%p237_p2)  ;;  %vm2521_vm5 = vcmask (!%p237_p2), 64512   ;;  %s19082_s15 = smov (!%p237_p2), 96   ;;  %vm10886_vm6 = vcmask (!%p237_p2), 516096  }
   0x9   : > { %16706 = vmatprep.subr.bf16.mxu1 (!%p237_p2), %v19079_v1  ;;  %14868 = vmatprep.mubr.msk.f32.mxu1 (!%p237_p2), %vm19080_vm0, %v19081_v3  ;;  %v287_v14 = vld [vmem:[%s21702_s1 + $0x30] sm:$0x1] (!%p237_p2)  ;;  %v300_v15 = vld [vmem:[%s21702_s1 + $0x64] sm:$0x1] (!%p237_p2)  ;;  %v13476_v20 = vld [vmem:[%s21702_s1 + $0x68] sm:$0xff] (!%p237_p2)   ;;  %vm10941_vm7 = vcmask (!%p237_p2), 523264  }
   0xa   : > { %v365_v17 = vunpack.c.l.bf16 (!%p237_p2), %v287_v14  ;;  %v378_v18 = vunpack.c.l.bf16 (!%p237_p2), %v300_v15  ;;  %v18900_v21 = vld [vmem:[%s21702_s1 + $0x9c] sm:$0xff] (!%p237_p2)   ;;  %v13477_v22 = vld [vmem:[%s21702_s1 + $0x70] sm:$0xff] (!%p237_p2)   ;;  %v18629_v23 = vld [vmem:[%s21702_s1 + $0xa4] sm:$0xff] (!%p237_p2)   ;;  %vm11017_vm8 = vcmask (!%p237_p2), 8192  }
   0xb   : > { %16690 = vmatpush3.bf16.msra.mxu0 (!%p237_p2), %v13466_v4  ;;  %v13478_v24 = vld [vmem:[%s21702_s1 + $0x78] sm:$0xff] (!%p237_p2)   ;;  %v18631_v25 = vld [vmem:[%s21702_s1 + $0xac] sm:$0xff] (!%p237_p2)   ;;  %v13479_v26 = vld [vmem:[%s21702_s1 + $0x80] sm:$0xff] (!%p237_p2)  }
   0xc   : > { %16708 = vmatpush3.bf16.msra.mxu1 (!%p237_p2), %v18619_v5  ;;  %16691 = vmatprep.subr.bf16.mxu0 (!%p237_p2), %v19079_v1  ;;  %v18633_v27 = vld [vmem:[%s21702_s1 + $0xb4] sm:$0xff] (!%p237_p2)   ;;  %v13480_v28 = vld [vmem:[%s21702_s1 + $0x88] sm:$0xff] (!%p237_p2)   ;;  %v18635_v29 = vld [vmem:[%s21702_s1 + $0xbc] sm:$0xff] (!%p237_p2)  }
   0xd   : > { %16709 = vmatprep.subr.bf16.mxu1 %v19079_v1  ;;  %s21710_s25 = smov (!%p265_p3, %s11068_s25), 3  ;;  %v13481_v30 = vld [vmem:[%s21702_s1 + $0x90] sm:$0xff]   ;;  %v18636_v31 = vld [vmem:[%s21702_s1 + $0xc4] sm:$0xff]  ;;  %v313_v32 = vld [vmem:[%s21702_s1 + $0x98] sm:$0x1] }
   0xe   : > { %s11073_s23 = sshll.u32 %s21710_s25, 3  ;;  %v326_v33 = vld [vmem:[%s21702_s1 + $0xcc] sm:$0x1]  ;;  %v391_v34 = vunpack.c.l.bf16 %v313_v32  ;;  %v13487_v36 = vld [vmem:[%s21702_s1 + $0xd0] sm:$0xff]   ;;  %v18901_v37 = vld [vmem:[%s21702_s1 + $0x104] sm:$0xff]   ;;  %s271_s30 = scalar_lea.vmem %s21708_s7, %s21710_s25 }
   0xf   : > { %16693 = vmatpush3.bf16.msra.mxu0 %v13467_v6  ;;  %s19185_s28 = scalar_lea.vmem %s21701_s0, %s11073_s23  ;;  %v404_v35 = vunpack.c.l.bf16 %v326_v33  ;;  %v13488_v38 = vld [vmem:[%s21702_s1 + $0xd8] sm:$0xff]   ;;  %v18639_v39 = vld [vmem:[%s21702_s1 + $0x10c] sm:$0xff]   ;;  %v13489_v40 = vld [vmem:[%s21702_s1 + $0xe0] sm:$0xff]  }
  0x10   : > { %16711 = vmatpush3.bf16.msra.mxu1 %v18621_v7  ;;  %16694 = vmatprep.subr.bf16.mxu0 %v19079_v1  ;;  %v272_v16 = vld [vmem:[%s19185_s28] sm:$0xff]  ;;  %v18641_v41 = vld [vmem:[%s21702_s1 + $0x114] sm:$0xff]   ;;  %v13490_v42 = vld [vmem:[%s21702_s1 + $0xe8] sm:$0xff]  }
  0x11   : > { %16712 = vmatprep.subr.bf16.mxu1 %v19079_v1  ;;  %v19205_v19 = vsel %vm273_vm1, %v272_v16, 1.0  ;;  %v18643_v43 = vld [vmem:[%s21702_s1 + $0x11c] sm:$0xff]   ;;  %v13491_v44 = vld [vmem:[%s21702_s1 + $0xf0] sm:$0xff]   ;;  %v18645_v45 = vld [vmem:[%s21702_s1 + $0x124] sm:$0xff]  }
  0x12   : > { %v13492_v46 = vld [vmem:[%s21702_s1 + $0xf8] sm:$0xff]   ;;  %v18646_v47 = vld [vmem:[%s21702_s1 + $0x12c] sm:$0xff]  ;;  %v339_v48 = vld [vmem:[%s21702_s1 + $0x100] sm:$0x1] }
  0x13   : > { %16696 = vmatpush3.bf16.msra.mxu0 %v13468_v8  ;;  %v352_v49 = vld [vmem:[%s21702_s1 + $0x134] sm:$0x1]  ;;  %v417_v50 = vunpack.c.l.bf16 %v339_v48  ;;  %v13498_v52 = vld [vmem:[%s21702_s1 + $0x138] sm:$0xff]   ;;  %v18902_v53 = vld [vmem:[%s21702_s1 + $0x16c] sm:$0xff]  }
  0x14   : > { %16714 = vmatpush3.bf16.msra.mxu1 %v18623_v9  ;;  %16697 = vmatprep.subr.bf16.mxu0 %v19079_v1  ;;  %v430_v51 = vunpack.c.l.bf16 %v352_v49  ;;  %v13499_v54 = vld [vmem:[%s21702_s1 + $0x140] sm:$0xff]   ;;  %v18649_v55 = vld [vmem:[%s21702_s1 + $0x174] sm:$0xff]   ;;  %v13500_v56 = vld [vmem:[%s21702_s1 + $0x148] sm:$0xff]  }
  0x15   : > { %16715 = vmatprep.subr.bf16.mxu1 %v19079_v1  ;;  %v18651_v57 = vld [vmem:[%s21702_s1 + $0x17c] sm:$0xff]   ;;  %v13501_v58 = vld [vmem:[%s21702_s1 + $0x150] sm:$0xff]   ;;  %v18653_v59 = vld [vmem:[%s21702_s1 + $0x184] sm:$0xff]  }
  0x16   : > { %v13502_v60 = vld [vmem:[%s21702_s1 + $0x158] sm:$0xff]   ;;  %v18655_v61 = vld [vmem:[%s21702_s1 + $0x18c] sm:$0xff]   ;;  %v13503_v62 = vld [vmem:[%s21702_s1 + $0x160] sm:$0xff]  }
  0x17   : > { %16699 = vmatpush3.bf16.msra.mxu0 %v13469_v10  ;;  %v18656_v63 = vld [vmem:[%s21702_s1 + $0x194] sm:$0xff]  ;;  %v11098_v0 = vld [vmem:[%s21702_s1 + $0x168] sm:$0x1]  ;;  %v11111_v2 = vld [vmem:[%s21702_s1 + $0x19c] sm:$0x1] }
  0x18   : > { %16717 = vmatpush3.bf16.msra.mxu1 %v18625_v11  ;;  %16700 = vmatprep.subr.bf16.mxu0 %v19079_v1  ;;  %v965_v4 = vunpack.c.l.bf16 %v11098_v0  ;;  %v978_v5 = vunpack.c.l.bf16 %v11111_v2  ;;  %v13509_v6 = vld [vmem:[%s21702_s1 + $0x1a0] sm:$0xff]   ;;  %v18903_v7 = vld [vmem:[%s21702_s1 + $0x1d4] sm:$0xff]   ;;  %v13510_v8 = vld [vmem:[%s21702_s1 + $0x1a8] sm:$0xff]  }
  0x19   : > { %16718 = vmatprep.subr.bf16.mxu1 %v19079_v1  ;;  %v18659_v9 = vld [vmem:[%s21702_s1 + $0x1dc] sm:$0xff]   ;;  %v13511_v10 = vld [vmem:[%s21702_s1 + $0x1b0] sm:$0xff]   ;;  %v18661_v11 = vld [vmem:[%s21702_s1 + $0x1e4] sm:$0xff]  }
  0x1a   : > { %v13513_v14 = vld [vmem:[%s21702_s1 + $0x1c0] sm:$0xff]   ;;  %v18665_v15 = vld [vmem:[%s21702_s1 + $0x1f4] sm:$0xff]   ;;  %v13514_v16 = vld [vmem:[%s21702_s1 + $0x1c8] sm:$0xff]  }
  0x1b   : > { %16702 = vmatpush3.bf16.msra.mxu0 %v13470_v12  ;;  %v13512_v12 = vld [vmem:[%s21702_s1 + $0x1b8] sm:$0xff]   ;;  %v13525_v33 = vld [vmem:[%s21702_s1 + $0x230] sm:$0xff]   ;;  %v18685_v48 = vld [vmem:[%s21702_s1 + $0x2c4] sm:$0xff]  }
  0x1c   : > { %16720 = vmatpush3.bf16.msra.mxu1 %v18626_v13  ;;  %14837 = vmatprep.subr.mxu0 %v19081_v3  ;;  %v18663_v13 = vld [vmem:[%s21702_s1 + $0x1ec] sm:$0xff]   ;;  %v18675_v32 = vld [vmem:[%s21702_s1 + $0x25c] sm:$0xff]  }
  0x1d   : > { %14866 = vmatprep.subr.mxu1 %v19081_v3  ;;  %v13536_v49 = vld [vmem:[%s21702_s1 + $0x298] sm:$0xff]   ;;  %v18695_v0 = vld [vmem:[%s21702_s1 + $0x32c] sm:$0xff]   ;;  %v13547_v2 = vld [vmem:[%s21702_s1 + $0x300] sm:$0xff]  }
  0x1f   : > { %14838 = vmatpush3.msk.msra.mxu0 %vm435_vm2, %v365_v17  ;;  %v18666_v17 = vld [vmem:[%s21702_s1 + $0x1fc] sm:$0xff] }
  0x20   : > { %14840 = vmatmul.mubr.msk.f32.vlgmr.msra.gmra.mrb[0].mxu0 %vm431_vm3, %v19205_v19  ;;  %14867 = vmatpush3.msk.msra.mxu1 %vm435_vm2, %v378_v18  ;;  %v11124_v18 = vld [vmem:[%s21702_s1 + $0x1d0] sm:$0x1] }
  0x21   : > { %16721 = vmatprep.subr.bf16.mxu0 %v19079_v1  ;;  %16739 = vmatprep.subr.bf16.mxu1 %v19079_v1 }
  0x22   : > { %16723 = vmatpush3.bf16.msra.mxu0 %v13476_v20  ;;  %14869 = vmatmul.mubr.msk.f32.vlgmr.msra.gmra.mrb[0].mxu1 %vm431_vm3, %v19205_v19  ;;  %v11137_v20 = vld [vmem:[%s21702_s1 + $0x204] sm:$0x1] }
  0x23   : > { %16741 = vmatpush3.bf16.msra.mxu1 %v18900_v21  ;;  %16724 = vmatprep.subr.bf16.mxu0 %v19079_v1  ;;  %v991_v21 = vunpack.c.l.bf16 %v11124_v18  ;;  %v18705_v18 = vld [vmem:[%s21702_s1 + $0x394] sm:$0xff]  }
  0x24   : > { %16742 = vmatprep.subr.bf16.mxu1 %v19079_v1  ;;  %14897 = vmatprep.mubr.msk.f32.mxu0 %vm19080_vm0, %v19081_v3 }
  0x25   : > { %14926 = vmatprep.mubr.msk.f32.mxu1 %vm19080_vm0, %v19081_v3 }
  0x26   : > { %16726 = vmatpush3.bf16.msra.mxu0 %v13477_v22  ;;  %v1004_v22 = vunpack.c.l.bf16 %v11137_v20  ;;  %v13558_v20 = vld [vmem:[%s21702_s1 + $0x368] sm:$0xff]  }
  0x27   : > { %16744 = vmatpush3.bf16.msra.mxu1 %v18629_v23  ;;  %16727 = vmatprep.subr.bf16.mxu0 %v19079_v1  ;;  %v13520_v23 = vld [vmem:[%s21702_s1 + $0x208] sm:$0xff]  }
  0x28   : > { %16745 = vmatprep.subr.bf16.mxu1 %v19079_v1 }
  0x2a   : > { %16729 = vmatpush3.bf16.msra.mxu0 %v13478_v24  ;;  %v18904_v24 = vld [vmem:[%s21702_s1 + $0x23c] sm:$0xff]  }
  0x2b   : > { %16747 = vmatpush3.bf16.msra.mxu1 %v18631_v25  ;;  %16730 = vmatprep.subr.bf16.mxu0 %v19079_v1  ;;  %v13521_v25 = vld [vmem:[%s21702_s1 + $0x210] sm:$0xff]  }
  0x2c   : > { %16748 = vmatprep.subr.bf16.mxu1 %v19079_v1 }
  0x2e   : > { %16732 = vmatpush3.bf16.msra.mxu0 %v13479_v26  ;;  %v18669_v26 = vld [vmem:[%s21702_s1 + $0x244] sm:$0xff]  }
  0x2f   : > { %16750 = vmatpush3.bf16.msra.mxu1 %v18633_v27  ;;  %16733 = vmatprep.subr.bf16.mxu0 %v19079_v1  ;;  %v13522_v27 = vld [vmem:[%s21702_s1 + $0x218] sm:$0xff]  }
  0x30   : > { %16751 = vmatprep.subr.bf16.mxu1 %v19079_v1 }
  0x32   : > { %16735 = vmatpush3.bf16.msra.mxu0 %v13480_v28  ;;  %v18671_v28 = vld [vmem:[%s21702_s1 + $0x24c] sm:$0xff]  }
  0x33   : > { %16753 = vmatpush3.bf16.msra.mxu1 %v18635_v29  ;;  %16736 = vmatprep.subr.bf16.mxu0 %v19079_v1  ;;  %v13523_v29 = vld [vmem:[%s21702_s1 + $0x220] sm:$0xff]  }
  0x34   : > { %16754 = vmatprep.subr.bf16.mxu1 %v19079_v1 }
  0x36   : > { %16738 = vmatpush3.bf16.msra.mxu0 %v13481_v30  ;;  %v18673_v30 = vld [vmem:[%s21702_s1 + $0x254] sm:$0xff]  }
  0x37   : > { %16756 = vmatpush3.bf16.msra.mxu1 %v18636_v31  ;;  %14895 = vmatprep.subr.mxu0 %v19081_v3  ;;  %v13524_v31 = vld [vmem:[%s21702_s1 + $0x228] sm:$0xff]  }
  0x38   : > { %14924 = vmatprep.subr.mxu1 %v19081_v3 }
  0x3a   : > { %14896 = vmatpush3.msk.msra.mxu0 %vm435_vm2, %v391_v34  ;;  %v18676_v34 = vld [vmem:[%s21702_s1 + $0x264] sm:$0xff] }
  0x3b   : > { %14898 = vmatmul.mubr.msk.f32.vlgmr.msra.gmra.mrb[2].mxu0 %vm431_vm3, %v19205_v19  ;;  %14925 = vmatpush3.msk.msra.mxu1 %vm435_vm2, %v404_v35  ;;  %v11150_v35 = vld [vmem:[%s21702_s1 + $0x238] sm:$0x1] }
  0x3c   : > { %16757 = vmatprep.subr.bf16.mxu0 %v19079_v1  ;;  %16775 = vmatprep.subr.bf16.mxu1 %v19079_v1 }
  0x3d   : > { %16759 = vmatpush3.bf16.msra.mxu0 %v13487_v36  ;;  %14927 = vmatmul.mubr.msk.f32.vlgmr.msra.gmra.mrb[2].mxu1 %vm431_vm3, %v19205_v19  ;;  %v11163_v36 = vld [vmem:[%s21702_s1 + $0x26c] sm:$0x1] }
  0x3e   : > { %16777 = vmatpush3.bf16.msra.mxu1 %v18901_v37  ;;  %16760 = vmatprep.subr.bf16.mxu0 %v19079_v1  ;;  %v1017_v37 = vunpack.c.l.bf16 %v11150_v35 }
  0x3f   : > { %16778 = vmatprep.subr.bf16.mxu1 %v19079_v1  ;;  %14955 = vmatprep.mubr.msk.f32.mxu0 %vm19080_vm0, %v19081_v3 }
  0x40   : > { %14984 = vmatprep.mubr.msk.f32.mxu1 %vm19080_vm0, %v19081_v3 }
  0x41   : > { %16762 = vmatpush3.bf16.msra.mxu0 %v13488_v38  ;;  %v1030_v38 = vunpack.c.l.bf16 %v11163_v36 }
  0x42   : > { %16780 = vmatpush3.bf16.msra.mxu1 %v18639_v39  ;;  %16763 = vmatprep.subr.bf16.mxu0 %v19079_v1  ;;  %v13531_v39 = vld [vmem:[%s21702_s1 + $0x270] sm:$0xff]  }
  0x43   : > { %16781 = vmatprep.subr.bf16.mxu1 %v19079_v1 }
  0x45   : > { %16765 = vmatpush3.bf16.msra.mxu0 %v13489_v40  ;;  %v18905_v40 = vld [vmem:[%s21702_s1 + $0x2a4] sm:$0xff]  }
  0x46   : > { %16783 = vmatpush3.bf16.msra.mxu1 %v18641_v41  ;;  %16766 = vmatprep.subr.bf16.mxu0 %v19079_v1  ;;  %v13532_v41 = vld [vmem:[%s21702_s1 + $0x278] sm:$0xff]  }
  0x47   : > { %16784 = vmatprep.subr.bf16.mxu1 %v19079_v1 }
  0x49   : > { %16768 = vmatpush3.bf16.msra.mxu0 %v13490_v42  ;;  %v18679_v42 = vld [vmem:[%s21702_s1 + $0x2ac] sm:$0xff]  }
  0x4a   : > { %16786 = vmatpush3.bf16.msra.mxu1 %v18643_v43  ;;  %16769 = vmatprep.subr.bf16.mxu0 %v19079_v1  ;;  %v13533_v43 = vld [vmem:[%s21702_s1 + $0x280] sm:$0xff]  }
  0x4b   : > { %16787 = vmatprep.subr.bf16.mxu1 %v19079_v1 }
  0x4d   : > { %16771 = vmatpush3.bf16.msra.mxu0 %v13491_v44  ;;  %v18681_v44 = vld [vmem:[%s21702_s1 + $0x2b4] sm:$0xff]  }
  0x4e   : > { %16789 = vmatpush3.bf16.msra.mxu1 %v18645_v45  ;;  %16772 = vmatprep.subr.bf16.mxu0 %v19079_v1  ;;  %v13534_v45 = vld [vmem:[%s21702_s1 + $0x288] sm:$0xff]  }
  0x4f   : > { %16790 = vmatprep.subr.bf16.mxu1 %v19079_v1 }
  0x51   : > { %16774 = vmatpush3.bf16.msra.mxu0 %v13492_v46  ;;  %v18683_v46 = vld [vmem:[%s21702_s1 + $0x2bc] sm:$0xff]  }
  0x52   : > { %16792 = vmatpush3.bf16.msra.mxu1 %v18646_v47  ;;  %14953 = vmatprep.subr.mxu0 %v19081_v3  ;;  %v13535_v47 = vld [vmem:[%s21702_s1 + $0x290] sm:$0xff]  }
  0x53   : > { %14982 = vmatprep.subr.mxu1 %v19081_v3 }
  0x55   : > { %14954 = vmatpush3.msk.msra.mxu0 %vm435_vm2, %v417_v50  ;;  %v18686_v50 = vld [vmem:[%s21702_s1 + $0x2cc] sm:$0xff] }
  0x56   : > { %14956 = vmatmul.mubr.msk.f32.vlgmr.msra.gmra.mrb[4].mxu0 %vm431_vm3, %v19205_v19  ;;  %14983 = vmatpush3.msk.msra.mxu1 %vm435_vm2, %v430_v51  ;;  %v11188_v51 = vld [vmem:[%s21702_s1 + $0x2a0] sm:$0x1] }
  0x57   : > { %16793 = vmatprep.subr.bf16.mxu0 %v19079_v1  ;;  %16811 = vmatprep.subr.bf16.mxu1 %v19079_v1 }
  0x58   : > { %16795 = vmatpush3.bf16.msra.mxu0 %v13498_v52  ;;  %14985 = vmatmul.mubr.msk.f32.vlgmr.msra.gmra.mrb[4].mxu1 %vm431_vm3, %v19205_v19  ;;  %v11201_v52 = vld [vmem:[%s21702_s1 + $0x2d4] sm:$0x1] }
  0x59   : > { %16813 = vmatpush3.bf16.msra.mxu1 %v18902_v53  ;;  %16796 = vmatprep.subr.bf16.mxu0 %v19079_v1  ;;  %v1560_v53 = vunpack.c.l.bf16 %v11188_v51 }
  0x5a   : > { %16814 = vmatprep.subr.bf16.mxu1 %v19079_v1  ;;  %15013 = vmatprep.mubr.msk.f32.mxu0 %vm19080_vm0, %v19081_v3 }
  0x5b   : > { %15042 = vmatprep.mubr.msk.f32.mxu1 %vm19080_vm0, %v19081_v3 }
  0x5c   : > { %16798 = vmatpush3.bf16.msra.mxu0 %v13499_v54  ;;  %v1573_v54 = vunpack.c.l.bf16 %v11201_v52 }
  0x5d   : > { %16816 = vmatpush3.bf16.msra.mxu1 %v18649_v55  ;;  %16799 = vmatprep.subr.bf16.mxu0 %v19079_v1  ;;  %v13542_v55 = vld [vmem:[%s21702_s1 + $0x2d8] sm:$0xff]  }
  0x5e   : > { %16817 = vmatprep.subr.bf16.mxu1 %v19079_v1 }
  0x60   : > { %16801 = vmatpush3.bf16.msra.mxu0 %v13500_v56  ;;  %v18906_v56 = vld [vmem:[%s21702_s1 + $0x30c] sm:$0xff]  }
  0x61   : > { %16819 = vmatpush3.bf16.msra.mxu1 %v18651_v57  ;;  %16802 = vmatprep.subr.bf16.mxu0 %v19079_v1  ;;  %v13543_v57 = vld [vmem:[%s21702_s1 + $0x2e0] sm:$0xff]  }
  0x62   : > { %16820 = vmatprep.subr.bf16.mxu1 %v19079_v1 }
  0x64   : > { %16804 = vmatpush3.bf16.msra.mxu0 %v13501_v58  ;;  %v18689_v58 = vld [vmem:[%s21702_s1 + $0x314] sm:$0xff]  }
  0x65   : > { %16822 = vmatpush3.bf16.msra.mxu1 %v18653_v59  ;;  %16805 = vmatprep.subr.bf16.mxu0 %v19079_v1  ;;  %v13544_v59 = vld [vmem:[%s21702_s1 + $0x2e8] sm:$0xff]  }
  0x66   : > { %16823 = vmatprep.subr.bf16.mxu1 %v19079_v1 }
  0x68   : > { %16807 = vmatpush3.bf16.msra.mxu0 %v13502_v60  ;;  %v18691_v60 = vld [vmem:[%s21702_s1 + $0x31c] sm:$0xff]  }
  0x69   : > { %16825 = vmatpush3.bf16.msra.mxu1 %v18655_v61  ;;  %16808 = vmatprep.subr.bf16.mxu0 %v19079_v1  ;;  %v13545_v61 = vld [vmem:[%s21702_s1 + $0x2f0] sm:$0xff]  }
  0x6a   : > { %16826 = vmatprep.subr.bf16.mxu1 %v19079_v1 }
  0x6c   : > { %16810 = vmatpush3.bf16.msra.mxu0 %v13503_v62  ;;  %v18693_v62 = vld [vmem:[%s21702_s1 + $0x324] sm:$0xff]  }
  0x6d   : > { %16828 = vmatpush3.bf16.msra.mxu1 %v18656_v63  ;;  %15011 = vmatprep.subr.mxu0 %v19081_v3  ;;  %v13546_v63 = vld [vmem:[%s21702_s1 + $0x2f8] sm:$0xff]  }
  0x6e   : > { %15040 = vmatprep.subr.mxu1 %v19081_v3 }
  0x70   : > { %15012 = vmatpush3.msk.msra.mxu0 %vm435_vm2, %v965_v4  ;;  %v18696_v4 = vld [vmem:[%s21702_s1 + $0x334] sm:$0xff] }
  0x71   : > { %15014 = vmatmul.mubr.msk.f32.vlgmr.msra.gmra.mrb[6].mxu0 %vm431_vm3, %v19205_v19  ;;  %15041 = vmatpush3.msk.msra.mxu1 %vm435_vm2, %v978_v5  ;;  %v11214_v5 = vld [vmem:[%s21702_s1 + $0x308] sm:$0x1] }
  0x72   : > { %16829 = vmatprep.subr.bf16.mxu0 %v19079_v1  ;;  %15043 = vmatmul.mubr.msk.f32.vlgmr.msra.gmra.mrb[6].mxu1 %vm431_vm3, %v19205_v19 }
  0x73   : > { %16831 = vmatpush3.bf16.msra.mxu0 %v13509_v6  ;;  %16847 = vmatprep.subr.bf16.mxu1 %v19079_v1  ;;  %v11227_v6 = vld [vmem:[%s21702_s1 + $0x33c] sm:$0x1] }
  0x74   : > { %16849 = vmatpush3.bf16.msra.mxu1 %v18903_v7  ;;  %16832 = vmatprep.subr.bf16.mxu0 %v19079_v1  ;;  %v1586_v7 = vunpack.c.l.bf16 %v11214_v5 }
  0x75   : > { %16850 = vmatprep.subr.bf16.mxu1 %v19079_v1  ;;  %15071 = vmatprep.mubr.msk.f32.mxu0 %vm19080_vm0, %v19081_v3 }
  0x76   : > { %15100 = vmatprep.mubr.msk.f32.mxu1 %vm19080_vm0, %v19081_v3 }
  0x77   : > { %16834 = vmatpush3.bf16.msra.mxu0 %v13510_v8  ;;  %v1599_v8 = vunpack.c.l.bf16 %v11227_v6 }
  0x78   : > { %16852 = vmatpush3.bf16.msra.mxu1 %v18659_v9  ;;  %16835 = vmatprep.subr.bf16.mxu0 %v19079_v1  ;;  %v13553_v9 = vld [vmem:[%s21702_s1 + $0x340] sm:$0xff]  }
  0x79   : > { %16853 = vmatprep.subr.bf16.mxu1 %v19079_v1 }
  0x7b   : > { %16837 = vmatpush3.bf16.msra.mxu0 %v13511_v10  ;;  %v18907_v10 = vld [vmem:[%s21702_s1 + $0x374] sm:$0xff]  }
  0x7c   : > { %16855 = vmatpush3.bf16.msra.mxu1 %v18661_v11  ;;  %16838 = vmatprep.subr.bf16.mxu0 %v19079_v1  ;;  %v13554_v11 = vld [vmem:[%s21702_s1 + $0x348] sm:$0xff]  }
  0x7d   : > { %16856 = vmatprep.subr.bf16.mxu1 %v19079_v1 }
  0x7f   : > { %16840 = vmatpush3.bf16.msra.mxu0 %v13512_v12  ;;  %v18699_v12 = vld [vmem:[%s21702_s1 + $0x37c] sm:$0xff]  }
  0x80   : > { %16858 = vmatpush3.bf16.msra.mxu1 %v18663_v13  ;;  %16841 = vmatprep.subr.bf16.mxu0 %v19079_v1  ;;  %v13555_v13 = vld [vmem:[%s21702_s1 + $0x350] sm:$0xff]  }
  0x81   : > { %16859 = vmatprep.subr.bf16.mxu1 %v19079_v1 }
  0x83   : > { %16843 = vmatpush3.bf16.msra.mxu0 %v13513_v14  ;;  %v18701_v14 = vld [vmem:[%s21702_s1 + $0x384] sm:$0xff]  }
  0x84   : > { %16861 = vmatpush3.bf16.msra.mxu1 %v18665_v15  ;;  %16844 = vmatprep.subr.bf16.mxu0 %v19079_v1  ;;  %v13556_v15 = vld [vmem:[%s21702_s1 + $0x358] sm:$0xff]  }
  0x85   : > { %16862 = vmatprep.subr.bf16.mxu1 %v19079_v1 }
  0x87   : > { %16846 = vmatpush3.bf16.msra.mxu0 %v13514_v16  ;;  %v18703_v16 = vld [vmem:[%s21702_s1 + $0x38c] sm:$0xff]  }
  0x88   : > { %16864 = vmatpush3.bf16.msra.mxu1 %v18666_v17  ;;  %15069 = vmatprep.subr.mxu0 %v19081_v3  ;;  %v13557_v17 = vld [vmem:[%s21702_s1 + $0x360] sm:$0xff]  }
  0x89   : > { %15098 = vmatprep.subr.mxu1 %v19081_v3 }
  0x8b   : > { %15070 = vmatpush3.msk.msra.mxu0 %vm435_vm2, %v991_v21  ;;  %v18706_v21 = vld [vmem:[%s21702_s1 + $0x39c] sm:$0xff] }
  0x8c   : > { %15072 = vmatmul.mubr.msk.f32.vlgmr.msra.gmra.mrb[8].mxu0 %vm431_vm3, %v19205_v19  ;;  %15099 = vmatpush3.msk.msra.mxu1 %vm435_vm2, %v1004_v22  ;;  %v11240_v22 = vld [vmem:[%s21702_s1 + $0x370] sm:$0x1] }
  0x8d   : > { %16865 = vmatprep.subr.bf16.mxu0 %v19079_v1  ;;  %15101 = vmatmul.mubr.msk.f32.vlgmr.msra.gmra.mrb[8].mxu1 %vm431_vm3, %v19205_v19 }
  0x8e   : > { %16867 = vmatpush3.bf16.msra.mxu0 %v13520_v23  ;;  %16883 = vmatprep.subr.bf16.mxu1 %v19079_v1  ;;  %v11253_v23 = vld [vmem:[%s21702_s1 + $0x3a4] sm:$0x1] }
  0x8f   : > { %16885 = vmatpush3.bf16.msra.mxu1 %v18904_v24  ;;  %16868 = vmatprep.subr.bf16.mxu0 %v19079_v1 }
  0x90   : > { %16886 = vmatprep.subr.bf16.mxu1 %v19079_v1  ;;  %15129 = vmatprep.mubr.msk.f32.mxu0 %vm19080_vm0, %v19081_v3 }
  0x91   : > { %15158 = vmatprep.mubr.msk.f32.mxu1 %vm19080_vm0, %v19081_v3 }
  0x92   : > { %16870 = vmatpush3.bf16.msra.mxu0 %v13521_v25  ;;  %v1612_v25 = vunpack.c.l.bf16 %v11240_v22 }
  0x93   : > { %16888 = vmatpush3.bf16.msra.mxu1 %v18669_v26  ;;  %16871 = vmatprep.subr.bf16.mxu0 %v19079_v1 }
  0x94   : > { %16889 = vmatprep.subr.bf16.mxu1 %v19079_v1 }
  0x96   : > { %16873 = vmatpush3.bf16.msra.mxu0 %v13522_v27  ;;  %v1625_v27 = vunpack.c.l.bf16 %v11253_v23 }
  0x97   : > { %16891 = vmatpush3.bf16.msra.mxu1 %v18671_v28  ;;  %16874 = vmatprep.subr.bf16.mxu0 %v19079_v1 }
  0x98   : > { %16892 = vmatprep.subr.bf16.mxu1 %v19079_v1 }
  0x9a   : > { %16876 = vmatpush3.bf16.msra.mxu0 %v13523_v29 }
  0x9b   : > { %16894 = vmatpush3.bf16.msra.mxu1 %v18673_v30  ;;  %16877 = vmatprep.subr.bf16.mxu0 %v19079_v1 }
  0x9c   : > { %16895 = vmatprep.subr.bf16.mxu1 %v19079_v1 }
  0x9e   : > { %16879 = vmatpush3.bf16.msra.mxu0 %v13524_v31 }
  0x9f   : > { %16897 = vmatpush3.bf16.msra.mxu1 %v18675_v32  ;;  %16880 = vmatprep.subr.bf16.mxu0 %v19079_v1 }
  0xa0   : > { %16898 = vmatprep.subr.bf16.mxu1 %v19079_v1 }
  0xa2   : > { %16882 = vmatpush3.bf16.msra.mxu0 %v13525_v33 }
  0xa3   : > { %16900 = vmatpush3.bf16.msra.mxu1 %v18676_v34  ;;  %15127 = vmatprep.subr.mxu0 %v19081_v3 }
  0xa4   : > { %15156 = vmatprep.subr.mxu1 %v19081_v3 }
  0xa6   : > { %15128 = vmatpush3.msk.msra.mxu0 %vm435_vm2, %v1017_v37 }
  0xa7   : > { %15130 = vmatmul.mubr.msk.f32.vlgmr.msra.gmra.mrb[10].mxu0 %vm431_vm3, %v19205_v19  ;;  %15157 = vmatpush3.msk.msra.mxu1 %vm435_vm2, %v1030_v38 }
  0xa8   : > { %15159 = vmatmul.mubr.msk.f32.vlgmr.msra.gmra.mrb[10].mxu1 %vm431_vm3, %v19205_v19  ;;  %16901 = vmatprep.subr.bf16.mxu0 %v19079_v1 }
  0xa9   : > { %16903 = vmatpush3.bf16.msra.mxu0 %v13531_v39  ;;  %16919 = vmatprep.subr.bf16.mxu1 %v19079_v1 }
  0xaa   : > { %16921 = vmatpush3.bf16.msra.mxu1 %v18905_v40  ;;  %16904 = vmatprep.subr.bf16.mxu0 %v19079_v1 }
  0xab   : > { %16922 = vmatprep.subr.bf16.mxu1 %v19079_v1  ;;  %15187 = vmatprep.mubr.msk.f32.mxu0 %vm19080_vm0, %v19081_v3 }
  0xac   : > { %15216 = vmatprep.mubr.msk.f32.mxu1 %vm19080_vm0, %v19081_v3 }
  0xad   : > { %16906 = vmatpush3.bf16.msra.mxu0 %v13532_v41 }
  0xae   : > { %16924 = vmatpush3.bf16.msra.mxu1 %v18679_v42  ;;  %16907 = vmatprep.subr.bf16.mxu0 %v19079_v1 }
  0xaf   : > { %16925 = vmatprep.subr.bf16.mxu1 %v19079_v1 }
  0xb1   : > { %16909 = vmatpush3.bf16.msra.mxu0 %v13533_v43 }
  0xb2   : > { %16927 = vmatpush3.bf16.msra.mxu1 %v18681_v44  ;;  %16910 = vmatprep.subr.bf16.mxu0 %v19079_v1 }
  0xb3   : > { %16928 = vmatprep.subr.bf16.mxu1 %v19079_v1 }
  0xb5   : > { %16912 = vmatpush3.bf16.msra.mxu0 %v13534_v45 }
  0xb6   : > { %16930 = vmatpush3.bf16.msra.mxu1 %v18683_v46  ;;  %16913 = vmatprep.subr.bf16.mxu0 %v19079_v1 }
  0xb7   : > { %16931 = vmatprep.subr.bf16.mxu1 %v19079_v1 }
  0xb9   : > { %16915 = vmatpush3.bf16.msra.mxu0 %v13535_v47 }
  0xba   : > { %16933 = vmatpush3.bf16.msra.mxu1 %v18685_v48  ;;  %16916 = vmatprep.subr.bf16.mxu0 %v19079_v1 }
  0xbb   : > { %16934 = vmatprep.subr.bf16.mxu1 %v19079_v1 }
  0xbd   : > { %16918 = vmatpush3.bf16.msra.mxu0 %v13536_v49 }
  0xbe   : > { %16936 = vmatpush3.bf16.msra.mxu1 %v18686_v50  ;;  %15185 = vmatprep.subr.mxu0 %v19081_v3 }
  0xbf   : > { %15214 = vmatprep.subr.mxu1 %v19081_v3 }
  0xc1   : > { %15186 = vmatpush3.msk.msra.mxu0 %vm435_vm2, %v1560_v53 }
  0xc2   : > { %15215 = vmatpush3.msk.msra.mxu1 %vm435_vm2, %v1573_v54  ;;  %16937 = vmatprep.subr.bf16.mxu0 %v19079_v1 }
  0xc3   : > { %15188 = vmatmul.mubr.msk.f32.vlgmr.msra.gmra.mrb[12].mxu0 %vm431_vm3, %v19205_v19  ;;  %16955 = vmatprep.subr.bf16.mxu1 %v19079_v1 }
  0xc4   : > { %16939 = vmatpush3.bf16.msra.mxu0 %v13542_v55  ;;  %15217 = vmatmul.mubr.msk.f32.vlgmr.msra.gmra.mrb[12].mxu1 %vm431_vm3, %v19205_v19 }
  0xc5   : > { %16957 = vmatpush3.bf16.msra.mxu1 %v18906_v56  ;;  %16940 = vmatprep.subr.bf16.mxu0 %v19079_v1 }
  0xc6   : > { %16958 = vmatprep.subr.bf16.mxu1 %v19079_v1  ;;  %15245 = vmatprep.mubr.msk.f32.mxu0 %vm19080_vm0, %v19081_v3 }
  0xc7   : > { %15274 = vmatprep.mubr.msk.f32.mxu1 %vm19080_vm0, %v19081_v3 }
  0xc8   : > { %16942 = vmatpush3.bf16.msra.mxu0 %v13543_v57 }
  0xc9   : > { %16960 = vmatpush3.bf16.msra.mxu1 %v18689_v58  ;;  %16943 = vmatprep.subr.bf16.mxu0 %v19079_v1 }
  0xca   : > { %16961 = vmatprep.subr.bf16.mxu1 %v19079_v1 }
  0xcc   : > { %16945 = vmatpush3.bf16.msra.mxu0 %v13544_v59 }
  0xcd   : > { %16963 = vmatpush3.bf16.msra.mxu1 %v18691_v60  ;;  %16946 = vmatprep.subr.bf16.mxu0 %v19079_v1 }
  0xce   : > { %16964 = vmatprep.subr.bf16.mxu1 %v19079_v1 }
  0xd0   : > { %16948 = vmatpush3.bf16.msra.mxu0 %v13545_v61 }
  0xd1   : > { %16966 = vmatpush3.bf16.msra.mxu1 %v18693_v62  ;;  %16949 = vmatprep.subr.bf16.mxu0 %v19079_v1 }
  0xd2   : > { %16967 = vmatprep.subr.bf16.mxu1 %v19079_v1 }
  0xd4   : > { %16951 = vmatpush3.bf16.msra.mxu0 %v13546_v63 }
  0xd5   : > { %16969 = vmatpush3.bf16.msra.mxu1 %v18695_v0  ;;  %16952 = vmatprep.subr.bf16.mxu0 %v19079_v1 }
  0xd6   : > { %16970 = vmatprep.subr.bf16.mxu1 %v19079_v1 }
  0xd8   : > { %16954 = vmatpush3.bf16.msra.mxu0 %v13547_v2 }
  0xd9   : > { %16972 = vmatpush3.bf16.msra.mxu1 %v18696_v4  ;;  %15243 = vmatprep.subr.mxu0 %v19081_v3 }
  0xda   : > { %15272 = vmatprep.subr.mxu1 %v19081_v3 }
  0xdc   : > { %15244 = vmatpush3.msk.msra.mxu0 %vm435_vm2, %v1586_v7 }
  0xdd   : > { %15273 = vmatpush3.msk.msra.mxu1 %vm435_vm2, %v1599_v8  ;;  %16973 = vmatprep.subr.bf16.mxu0 %v19079_v1 }
  0xde   : > { %15246 = vmatmul.mubr.msk.f32.vlgmr.msra.gmra.mrb[14].mxu0 %vm431_vm3, %v19205_v19  ;;  %16991 = vmatprep.subr.bf16.mxu1 %v19079_v1 }
  0xdf   : > { %16975 = vmatpush3.bf16.msra.mxu0 %v13553_v9  ;;  %15275 = vmatmul.mubr.msk.f32.vlgmr.msra.gmra.mrb[14].mxu1 %vm431_vm3, %v19205_v19 }
  0xe0   : > { %16993 = vmatpush3.bf16.msra.mxu1 %v18907_v10  ;;  %16976 = vmatprep.subr.bf16.mxu0 %v19079_v1 }
  0xe1   : > { %16994 = vmatprep.subr.bf16.mxu1 %v19079_v1  ;;  %15303 = vmatprep.mubr.msk.f32.mxu0 %vm19080_vm0, %v19081_v3 }
  0xe2   : > { %15332 = vmatprep.mubr.msk.f32.mxu1 %vm19080_vm0, %v19081_v3 }
  0xe3   : > { %16978 = vmatpush3.bf16.msra.mxu0 %v13554_v11 }
  0xe4   : > { %16996 = vmatpush3.bf16.msra.mxu1 %v18699_v12  ;;  %16979 = vmatprep.subr.bf16.mxu0 %v19079_v1 }
  0xe5   : > { %16997 = vmatprep.subr.bf16.mxu1 %v19079_v1 }
  0xe7   : > { %16981 = vmatpush3.bf16.msra.mxu0 %v13555_v13 }
  0xe8   : > { %16999 = vmatpush3.bf16.msra.mxu1 %v18701_v14  ;;  %16982 = vmatprep.subr.bf16.mxu0 %v19079_v1 }
  0xe9   : > { %17000 = vmatprep.subr.bf16.mxu1 %v19079_v1 }
  0xeb   : > { %16984 = vmatpush3.bf16.msra.mxu0 %v13556_v15 }
  0xec   : > { %17002 = vmatpush3.bf16.msra.mxu1 %v18703_v16  ;;  %16985 = vmatprep.subr.bf16.mxu0 %v19079_v1 }
  0xed   : > { %17003 = vmatprep.subr.bf16.mxu1 %v19079_v1 }
  0xef   : > { %16987 = vmatpush3.bf16.msra.mxu0 %v13557_v17 }
  0xf0   : > { %17005 = vmatpush3.bf16.msra.mxu1 %v18705_v18  ;;  %16988 = vmatprep.subr.bf16.mxu0 %v19079_v1 }
  0xf1   : > { %17006 = vmatprep.subr.bf16.mxu1 %v19079_v1 }
  0xf3   : > { %v505_v24 = vpop.f32.mrb[0].mxu0  ;;  %16990 = vmatpush3.bf16.msra.mxu0 %v13558_v20 }
  0xf4   : > { %v14841_v26 = vpop.f32.mrb[1].mxu0  ;;  %17008 = vmatpush3.bf16.msra.mxu1 %v18706_v21  ;;  %15301 = vmatprep.subr.mxu0 %v19081_v3 }
  0xf5   : > { %v578_v28 = vpop.f32.mrb[0].mxu1  ;;  %15330 = vmatprep.subr.mxu1 %v19081_v3 }
  0xf6   : > { %v14870_v29 = vpop.f32.mrb[1].mxu1 }
  0xf7   : > { %15302 = vmatpush3.msk.msra.mxu0 %vm435_vm2, %v1612_v25 }
  0xf8   : > { %15331 = vmatpush3.msk.msra.mxu1 %vm435_vm2, %v1625_v27  ;;  %15304 = vmatmul.mubr.msk.f32.vlgmr.msra.gmra.mrb[16].mxu0 %vm431_vm3, %v19205_v19 }
  0xf9   : > { %15335 = vmatprep.subr.mxu0 %v19081_v3  ;;  %15333 = vmatmul.mubr.msk.f32.vlgmr.msra.gmra.mrb[16].mxu1 %vm431_vm3, %v19205_v19 }
  0xfa   : > { %15340 = vmatprep.subr.mxu1 %v19081_v3  ;;  %15337 = vmatprep.mubr.msk.f32.mxu0 %vm19080_vm0, %v19081_v3 }
  0xfb   : > { %15342 = vmatprep.mubr.msk.f32.mxu1 %vm19080_vm0, %v19081_v3 }
 0x10e   : > { %v651_v30 = vpop.f32.mrb[2].mxu0 }
 0x10f   : > { %v14899_v31 = vpop.f32.mrb[3].mxu0 }
 0x110   : > { %v724_v32 = vpop.f32.mrb[2].mxu1 }
 0x111   : > { %v14928_v33 = vpop.f32.mrb[3].mxu1 }
 0x129   : > { %v797_v34 = vpop.f32.mrb[4].mxu0 }
 0x12a   : > { %v14957_v35 = vpop.f32.mrb[5].mxu0 }
 0x12b   : > { %v870_v36 = vpop.f32.mrb[4].mxu1 }
 0x12c   : > { %v14986_v37 = vpop.f32.mrb[5].mxu1 }
 0x144   : > { %v1100_v38 = vpop.f32.mrb[6].mxu0 }
 0x145   : > { %v15015_v39 = vpop.f32.mrb[7].mxu0  ;;  %v1173_v19 = vpop.f32.mrb[6].mxu1  ;;  %15336 = vmatpush3.xpose.msk.msra.mxu0 %vm2064_vm4, %v1100_v38 }
 0x146   : > { %15341 = vmatpush3.xpose.msk.msra.mxu1 %vm2064_vm4, %v1173_v19  ;;  %v15044_v40 = vpop.f32.mrb[7].mxu1  ;;  %15345 = vmatprep.subr.mxu0 %v19081_v3 }
 0x147   : > { %15350 = vmatprep.subr.mxu1 %v19081_v3 }
 0x148   : > { %15338 = vmatmul.mubr.msk.f32.vlgmr.msra.gmra.mrb[18].mxu0 %vm2064_vm4, %v505_v24 }
 0x149   : > { %15343 = vmatmul.mubr.msk.f32.vlgmr.msra.gmra.mrb[18].mxu1 %vm2064_vm4, %v578_v28  ;;  %15347 = vmatprep.mubr.msk.f32.mxu0 %vm19080_vm0, %v19081_v3 }
 0x14a   : > { %15352 = vmatprep.mubr.msk.f32.mxu1 %vm19080_vm0, %v19081_v3 }
 0x15f   : > { %v1246_v41 = vpop.f32.mrb[8].mxu0 }
 0x160   : > { %v15073_v42 = vpop.f32.mrb[9].mxu0  ;;  %v1319_v43 = vpop.f32.mrb[8].mxu1  ;;  %15346 = vmatpush3.xpose.msk.msra.mxu0 %vm2064_vm4, %v1246_v41 }
 0x161   : > { %15351 = vmatpush3.xpose.msk.msra.mxu1 %vm2064_vm4, %v1319_v43  ;;  %v15102_v44 = vpop.f32.mrb[9].mxu1  ;;  %15355 = vmatprep.subr.mxu0 %v19081_v3 }
 0x162   : > { %15360 = vmatprep.subr.mxu1 %v19081_v3 }
 0x163   : > { %15348 = vmatmul.mubr.msk.f32.vlgmr.msra.gmra.mrb[20].mxu0 %vm2064_vm4, %v651_v30 }
 0x164   : > { %15353 = vmatmul.mubr.msk.f32.vlgmr.msra.gmra.mrb[20].mxu1 %vm2064_vm4, %v724_v32  ;;  %15357 = vmatprep.mubr.msk.f32.mxu0 %vm19080_vm0, %v19081_v3 }
 0x165   : > { %15362 = vmatprep.mubr.msk.f32.mxu1 %vm19080_vm0, %v19081_v3 }
 0x17a   : > { %v1392_v45 = vpop.f32.mrb[10].mxu0 }
 0x17b   : > { %v15131_v46 = vpop.f32.mrb[11].mxu0  ;;  %v1465_v47 = vpop.f32.mrb[10].mxu1  ;;  %15356 = vmatpush3.xpose.msk.msra.mxu0 %vm2064_vm4, %v1392_v45 }
 0x17c   : > { %v15160_v48 = vpop.f32.mrb[11].mxu1  ;;  %15361 = vmatpush3.xpose.msk.msra.mxu1 %vm2064_vm4, %v1465_v47  ;;  %15365 = vmatprep.subr.mxu0 %v19081_v3 }
 0x17d   : > { %15370 = vmatprep.subr.mxu1 %v19081_v3 }
 0x17e   : > { %15358 = vmatmul.mubr.msk.f32.vlgmr.msra.gmra.mrb[22].mxu0 %vm2064_vm4, %v797_v34 }
 0x17f   : > { %15363 = vmatmul.mubr.msk.f32.vlgmr.msra.gmra.mrb[22].mxu1 %vm2064_vm4, %v870_v36  ;;  %15367 = vmatprep.mubr.msk.f32.mxu0 %vm19080_vm0, %v19081_v3 }
 0x180   : > { %15372 = vmatprep.mubr.msk.f32.mxu1 %vm19080_vm0, %v19081_v3 }
 0x196   : > { %v1695_v49 = vpop.f32.mrb[12].mxu0 }
 0x197   : > { %v15189_v50 = vpop.f32.mrb[13].mxu0  ;;  %15366 = vmatpush3.msra.mxu0 %v1695_v49  ;;  %v1768_v51 = vpop.f32.mrb[12].mxu1 }
 0x198   : > { %v15218_v52 = vpop.f32.mrb[13].mxu1  ;;  %15371 = vmatpush3.msra.mxu1 %v1768_v51  ;;  %15375 = vmatprep.subr.mxu0 %v19081_v3 }
 0x199   : > { %15380 = vmatprep.subr.mxu1 %v19081_v3 }
 0x1b1   : > { %v19779_v53 = vpop.f32.mrb[14].mxu0 }
 0x1b2   : > { %v15247_v54 = vpop.f32.mrb[15].mxu0  ;;  %v19781_v55 = vpop.f32.mrb[14].mxu1 }
 0x1b3   : > { %v15276_v56 = vpop.f32.mrb[15].mxu1 }
 0x1cb   : > { %v19783_v57 = vpop.f32.mrb[16].mxu0 }
 0x1cc   : > { %v15305_v58 = vpop.f32.mrb[17].mxu0  ;;  %v19785_v59 = vpop.f32.mrb[16].mxu1 }
 0x1cd   : > { %v15334_v60 = vpop.f32.mrb[17].mxu1 }
 0x21b   : > { %v2137_v61 = vpop.f32.mrb[18].mxu0 }
 0x21c   : > { %v15339_v62 = vpop.f32.mrb[19].mxu0  ;;  %v2213_v63 = vpop.f32.mrb[18].mxu1  ;;  %v2522_v0 = vsel %vm2521_vm5, %v2137_v61, -inf }
 0x21d   : > { %v15344_v2 = vpop.f32.mrb[19].mxu1  ;;  %2523 = vmax.xlane.f32.xlu0 %v2522_v0  ;;  %v2525_v4 = vsel %vm2521_vm5, %v2213_v63, -inf }
 0x21e   : > { %v12411_v2 = vld [vmem:[%s21703_s2] sm:$0xff]  }
 0x221   : > { %2526 = vmax.xlane.f32.xlu0 %v2525_v4 }
 0x236   : > { %v2289_v5 = vpop.f32.mrb[20].mxu0 }
 0x237   : > { %v15349_v6 = vpop.f32.mrb[21].mxu0  ;;  %v2365_v7 = vpop.f32.mrb[20].mxu1  ;;  %v2528_v8 = vsel %vm2521_vm5, %v2289_v5, -inf }
 0x238   : > { %v15354_v9 = vpop.f32.mrb[21].mxu1  ;;  %2529 = vmax.xlane.f32.xlu1 %v2528_v8  ;;  %v2531_v10 = vsel %vm2521_vm5, %v2365_v7, -inf  ;;  %v13566_v8 = vld [vmem:[%s21703_s2 + $0x18] sm:$0xff]  }
 0x23c   : > { %2532 = vmax.xlane.f32.xlu1 %v2531_v10 }
 0x251   : > { %v2441_v11 = vpop.f32.mrb[22].mxu0 }
 0x252   : > { %v15359_v12 = vpop.f32.mrb[23].mxu0  ;;  %v2517_v13 = vpop.f32.mrb[22].mxu1  ;;  %v2534_v14 = vsel %vm2521_vm5, %v2441_v11, -inf }
 0x253   : > { %v15364_v15 = vpop.f32.mrb[23].mxu1  ;;  %2535 = vmax.xlane.f32.xlu0 %v2534_v14  ;;  %v2537_v16 = vsel %vm2521_vm5, %v2517_v13, -inf  ;;  %v13568_v14 = vld [vmem:[%s21703_s2 + $0x28] sm:$0xff]  }
 0x254   : > { %2538 = vmax.xlane.f32.xlu1 %v2537_v16 }
 0x2aa   : > { %v2524_v17 = vpop.xlane.xlu0 %2523 }
 0x2ab   : > { %v2540_v18 = vsub.f32 %v2137_v61, %v2524_v17 }
 0x2ad   : > { %v2546_v20 = vmul.f32 1.442695, %v2540_v18 }
 0x2ae   : > { %v2527_v21 = vpop.xlane.xlu0 %2526 }
 0x2af   : > { %18980 = vpow2.f32 %v2546_v20  ;;  %v2541_v22 = vsub.f32 %v2213_v63, %v2527_v21 }
 0x2b1   : > { %v2548_v23 = vmul.f32 1.442695, %v2541_v22 }
 0x2b3   : > { %18982 = vpow2.f32 %v2548_v23 }
 0x2b9   : > { %v18981_v24 = vpop.eup %18980 }
 0x2ba   : > { %v2558_v25 = vsel %vm2521_vm5, %v18981_v24, 0.0 }
 0x2bb   : > { %2559 = vadd.xlane.f32.xlu0 %v2558_v25 }
 0x2bd   : > { %v18983_v26 = vpop.eup %18982 }
 0x2be   : > { %v2561_v27 = vsel %vm2521_vm5, %v18983_v26, 0.0 }
 0x2bf   : > { %2562 = vadd.xlane.f32.xlu1 %v2561_v27 }
 0x2c5   : > { %v2530_v28 = vpop.xlane.xlu1 %2529 }
 0x2c6   : > { %v2542_v29 = vsub.f32 %v2289_v5, %v2530_v28  ;;  %v13565_v5 = vld [vmem:[%s21703_s2 + $0x10] sm:$0xff]  }
 0x2c8   : > { %v2550_v30 = vmul.f32 1.442695, %v2542_v29 }
 0x2c9   : > { %v2533_v31 = vpop.xlane.xlu1 %2532 }
 0x2ca   : > { %18984 = vpow2.f32 %v2550_v30  ;;  %v2543_v32 = vsub.f32 %v2365_v7, %v2533_v31 }
 0x2cc   : > { %v2552_v33 = vmul.f32 1.442695, %v2543_v32 }
 0x2ce   : > { %18986 = vpow2.f32 %v2552_v33 }
 0x2d4   : > { %v18985_v34 = vpop.eup %18984 }
 0x2d5   : > { %v2564_v35 = vsel %vm2521_vm5, %v18985_v34, 0.0 }
 0x2d6   : > { %2565 = vadd.xlane.f32.xlu0 %v2564_v35 }
 0x2d8   : > { %v18987_v36 = vpop.eup %18986 }
 0x2d9   : > { %v2567_v37 = vsel %vm2521_vm5, %v18987_v36, 0.0 }
 0x2da   : > { %2568 = vadd.xlane.f32.xlu1 %v2567_v37 }
 0x2e0   : > { %v2536_v38 = vpop.xlane.xlu0 %2535 }
 0x2e1   : > { %v2544_v39 = vsub.f32 %v2441_v11, %v2536_v38  ;;  %v2539_v19 = vpop.xlane.xlu1 %2538  ;;  %v13567_v11 = vld [vmem:[%s21703_s2 + $0x20] sm:$0xff]  }
 0x2e2   : > { %v2545_v40 = vsub.f32 %v2517_v13, %v2539_v19 }
 0x2e3   : > { %v2554_v41 = vmul.f32 1.442695, %v2544_v39 }
 0x2e4   : > { %v2556_v42 = vmul.f32 1.442695, %v2545_v40 }
 0x2e5   : > { %18988 = vpow2.f32 %v2554_v41 }
 0x2e6   : > { %18990 = vpow2.f32 %v2556_v42 }
 0x2ef   : > { %v18989_v43 = vpop.eup %18988 }
 0x2f0   : > { %v18991_v44 = vpop.eup %18990  ;;  %v2570_v45 = vsel %vm2521_vm5, %v18989_v43, 0.0 }
 0x2f1   : > { %2571 = vadd.xlane.f32.xlu0 %v2570_v45  ;;  %v2573_v46 = vsel %vm2521_vm5, %v18991_v44, 0.0 }
 0x2f2   : > { %2574 = vadd.xlane.f32.xlu1 %v2573_v46  ;;  %v19070_v46 = vld [vmem:[%s19185_s28] sm:$0xff] }
 0x348   : > { %v2560_v47 = vpop.xlane.xlu0 %2559 }
 0x349   : > { %18992 = vrcp.f32 %v2560_v47 }
 0x34c   : > { %v2563_v48 = vpop.xlane.xlu1 %2562 }
 0x34d   : > { %18994 = vrcp.f32 %v2563_v48 }
 0x353   : > { %v18993_v49 = vpop.eup %18992 }
 0x354   : > { %v2582_v50 = vmul.f32 %v18993_v49, %v18981_v24  ;;  %v18908_v49 = vld [vmem:[%s21704_s3 + $0x4] ss:$8 sps:$4 sm:$0xff]  }
 0x356   : > { %15368 = vmatmul.mubr.msk.f32.vlgmr.msra.gmra.mrb[24].mxu0 %vm2521_vm5, %v2582_v50  ;;  %v18910_v50 = vld [vmem:[%s21704_s3] ss:$8 sps:$4 sm:$0xff]  }
 0x357   : > { %v18995_v51 = vpop.eup %18994  ;;  %15376 = vmatpush3.msra.mxu0 %v19779_v53  ;;  %15377 = vmatprep.mubr.msk.f32.mxu0 %vm19080_vm0, %v19081_v3 }
 0x358   : > { %v2583_v52 = vmul.f32 %v18995_v51, %v18983_v26  ;;  %15385 = vmatprep.subr.mxu0 %v19081_v3 }
 0x35a   : > { %15373 = vmatmul.mubr.msk.f32.vlgmr.msra.gmra.mrb[24].mxu1 %vm2521_vm5, %v2583_v52 }
 0x35b   : > { %15381 = vmatpush3.msra.mxu1 %v19781_v55  ;;  %15382 = vmatprep.mubr.msk.f32.mxu1 %vm19080_vm0, %v19081_v3 }
 0x35c   : > { %15390 = vmatprep.subr.mxu1 %v19081_v3 }
 0x363   : > { %v2566_v54 = vpop.xlane.xlu0 %2565 }
 0x364   : > { %18996 = vrcp.f32 %v2566_v54 }
 0x367   : > { %v2569_v56 = vpop.xlane.xlu1 %2568 }
 0x368   : > { %18998 = vrcp.f32 %v2569_v56 }
 0x36e   : > { %v18997_v53 = vpop.eup %18996 }
 0x36f   : > { %v2584_v58 = vmul.f32 %v18997_v53, %v18985_v34 }
 0x371   : > { %15378 = vmatmul.mubr.msk.f32.vlgmr.msra.gmra.mrb[26].mxu0 %vm2521_vm5, %v2584_v58  ;;  %v18911_v58 = vld [vmem:[%s21704_s3 + $0x14] ss:$8 sps:$4 sm:$0xff]  }
 0x372   : > { %v18999_v60 = vpop.eup %18998  ;;  %15386 = vmatpush3.msra.mxu0 %v19783_v57  ;;  %15387 = vmatprep.mubr.msk.f32.mxu0 %vm19080_vm0, %v19081_v3 }
 0x373   : > { %v2585_v55 = vmul.f32 %v18999_v60, %v18987_v36  ;;  %17009 = vmatprep.subr.bf16.mxu0 %v19079_v1  ;;  %v18913_v60 = vld [vmem:[%s21704_s3 + $0x10] ss:$8 sps:$4 sm:$0xff]  }
 0x375   : > { %15383 = vmatmul.mubr.msk.f32.vlgmr.msra.gmra.mrb[26].mxu1 %vm2521_vm5, %v2585_v55  ;;  %v18914_v55 = vld [vmem:[%s21704_s3 + $0x24] ss:$8 sps:$4 sm:$0xff]  }
 0x376   : > { %15391 = vmatpush3.msra.mxu1 %v19785_v59  ;;  %15392 = vmatprep.mubr.msk.f32.mxu1 %vm19080_vm0, %v19081_v3  ;;  %v13564_v59 = vld [vmem:[%s21703_s2 + $0x8] sm:$0xff]  }
 0x377   : > { %17012 = vmatprep.subr.bf16.mxu1 %v19079_v1 }
 0x37e   : > { %v2572_v61 = vpop.xlane.xlu0 %2571 }
 0x37f   : > { %19000 = vrcp.f32 %v2572_v61  ;;  %v2575_v62 = vpop.xlane.xlu1 %2574  ;;  %v18916_v61 = vld [vmem:[%s21704_s3 + $0x20] ss:$8 sps:$4 sm:$0xff]  }
 0x380   : > { %19002 = vrcp.f32 %v2575_v62  ;;  %v18917_v62 = vld [vmem:[%s21704_s3 + $0x34] ss:$8 sps:$4 sm:$0xff]  }
 0x389   : > { %v19001_v57 = vpop.eup %19000 }
 0x38a   : > { %v19003_v63 = vpop.eup %19002  ;;  %v2586_v0 = vmul.f32 %v19001_v57, %v18989_v43  ;;  %v3499_v43 = vld [vmem:[%s21706_s5] ss:$0 sm:$0xff]  ;;  %v18919_v57 = vld [vmem:[%s21704_s3 + $0x30] ss:$8 sps:$4 sm:$0xff]  }
 0x38b   : > { %v2587_v4 = vmul.f32 %v19003_v63, %v18991_v44  ;;  %v18920_v63 = vld [vmem:[%s21704_s3 + $0x44] ss:$8 sps:$4 sm:$0xff]  }
 0x38c   : > { %15388 = vmatmul.mubr.msk.f32.vlgmr.msra.gmra.mrb[28].mxu0 %vm2521_vm5, %v2586_v0  ;;  %v18922_v0 = vld [vmem:[%s21704_s3 + $0x40] ss:$8 sps:$4 sm:$0xff]  }
 0x38d   : > { %15393 = vmatmul.mubr.msk.f32.vlgmr.msra.gmra.mrb[28].mxu1 %vm2521_vm5, %v2587_v4  ;;  %17011 = vmatpush3.bf16.msra.mxu0 %v12411_v2  ;;  %v18923_v2 = vld [vmem:[%s21704_s3 + $0x54] ss:$8 sps:$4 sm:$0xff]   ;;  %v18925_v4 = vld [vmem:[%s21704_s3 + $0x50] ss:$8 sps:$4 sm:$0xff]  }
 0x38e   : > { %15399 = vmatprep.mubr.msk.f32.mxu0 %vm19080_vm0, %v19081_v3  ;;  %15406 = vmatprep.mubr.msk.f32.mxu1 %vm19080_vm0, %v19081_v3 }
 0x38f   : > { %17015 = vmatprep.subr.bf16.mxu0 %v19079_v1  ;;  %17014 = vmatpush3.bf16.msra.mxu1 %v13564_v59  ;;  %v13576_v59 = vld [vmem:[%s21705_s4 + $0x40] sm:$0xff]  }
 0x390   : > { %17018 = vmatprep.subr.bf16.mxu1 %v19079_v1 }
 0x429   : > { %v2657_v6 = vpop.f32.mrb[24].mxu0 }
 0x42a   : > { %v15369_v7 = vpop.f32.mrb[25].mxu0  ;;  %15400 = vmatmul.mubr.msk.f32.vlgmr.msra.gmra.mrb[30].mxu0 %vm2064_vm4, %v2657_v6  ;;  %v13577_v6 = vld [vmem:[%s21705_s4 + $0x48] sm:$0xff]  }
 0x42b   : > { %17017 = vmatpush3.bf16.msra.mxu0 %v13565_v5  ;;  %15413 = vmatprep.mubr.msk.f32.mxu0 %vm19080_vm0, %v19081_v3  ;;  %v12435_v5 = vld [vmem:[%s21705_s4] sm:$0xff]   ;;  %v13569_v7 = vld [vmem:[%s21705_s4 + $0x8] sm:$0xff]  }
 0x42c   : > { %17021 = vmatprep.subr.bf16.mxu0 %v19079_v1 }
 0x42d   : > { %v2730_v9 = vpop.f32.mrb[24].mxu1 }
 0x42e   : > { %v15374_v10 = vpop.f32.mrb[25].mxu1  ;;  %15407 = vmatmul.mubr.msk.f32.vlgmr.msra.gmra.mrb[30].mxu1 %vm2064_vm4, %v2730_v9  ;;  %v13570_v9 = vld [vmem:[%s21705_s4 + $0x10] sm:$0xff]  }
 0x42f   : > { %17020 = vmatpush3.bf16.msra.mxu1 %v13566_v8  ;;  %15420 = vmatprep.mubr.msk.f32.mxu1 %vm19080_vm0, %v19081_v3  ;;  %v13578_v8 = vld [vmem:[%s21705_s4 + $0x50] sm:$0xff]   ;;  %v13579_v10 = vld [vmem:[%s21705_s4 + $0x58] sm:$0xff]  }
 0x430   : > { %17024 = vmatprep.subr.bf16.mxu1 %v19079_v1 }
 0x444   : > { %v2803_v12 = vpop.f32.mrb[26].mxu0 }
 0x445   : > { %v15379_v13 = vpop.f32.mrb[27].mxu0  ;;  %15414 = vmatmul.mubr.msk.f32.vlgmr.msra.gmra.mrb[32].mxu0 %vm2064_vm4, %v2803_v12  ;;  %v13580_v12 = vld [vmem:[%s21705_s4 + $0x60] sm:$0xff]  }
 0x446   : > { %17023 = vmatpush3.bf16.msra.mxu0 %v13567_v11  ;;  %15427 = vmatprep.mubr.msk.f32.mxu0 %vm19080_vm0, %v19081_v3  ;;  %v13571_v11 = vld [vmem:[%s21705_s4 + $0x18] sm:$0xff]   ;;  %v13572_v13 = vld [vmem:[%s21705_s4 + $0x20] sm:$0xff]  }
 0x447   : > { %17028 = vmatprep.subr.bf16.mxu0 %v18908_v49  ;;  %v13584_v49 = vld [vmem:[%s21702_s1 + $0x3a8] sm:$0xff]  }
 0x448   : > { %v2876_v15 = vpop.f32.mrb[26].mxu1 }
 0x449   : > { %v15384_v16 = vpop.f32.mrb[27].mxu1  ;;  %15421 = vmatmul.mubr.msk.f32.vlgmr.msra.gmra.mrb[32].mxu1 %vm2064_vm4, %v2876_v15  ;;  %v13573_v15 = vld [vmem:[%s21705_s4 + $0x28] sm:$0xff]  }
 0x44a   : > { %17026 = vmatpush3.bf16.msra.mxu1 %v13568_v14  ;;  %15434 = vmatprep.mubr.msk.f32.mxu1 %vm19080_vm0, %v19081_v3  ;;  %v13581_v14 = vld [vmem:[%s21705_s4 + $0x68] sm:$0xff]   ;;  %v13582_v16 = vld [vmem:[%s21705_s4 + $0x70] sm:$0xff]  }
 0x44b   : > { %17052 = vmatprep.subr.bf16.mxu1 %v13576_v59  ;;  %v11304_v59 = vld [vmem:[%s21702_s1 + $0x3d8] sm:$0x1] }
 0x45f   : > { %v2949_v17 = vpop.f32.mrb[28].mxu0 }
 0x460   : > { %v15389_v18 = vpop.f32.mrb[29].mxu0  ;;  %v3022_v20 = vpop.f32.mrb[28].mxu1  ;;  %15428 = vmatmul.mubr.msk.f32.vlgmr.msra.gmra.mrb[34].mxu0 %vm2064_vm4, %v2949_v17 }
 0x461   : > { %v15394_v21 = vpop.f32.mrb[29].mxu1  ;;  %15435 = vmatmul.mubr.msk.f32.vlgmr.msra.gmra.mrb[34].mxu1 %vm2064_vm4, %v3022_v20  ;;  %3636 = vmatprep.mubr.f32.mxu0 %v19081_v3 }
 0x462   : > { %17030 = vmatpush1.bf16.msra.mxu0 %v18910_v50  ;;  %17054 = vmatpush3.bf16.msra.mxu1 %v12435_v5  ;;  %v18926_v50 = vld [vmem:[%s21702_s1 + $0x3dc] sm:$0xff]   ;;  %v11317_v5 = vld [vmem:[%s21702_s1 + $0x40c] sm:$0x1] }
 0x463   : > { %17032 = vmatprep.subr.bf16.mxu0 %v18911_v58  ;;  %17056 = vmatprep.subr.bf16.mxu1 %v13577_v6  ;;  %v18709_v58 = vld [vmem:[%s21702_s1 + $0x3e4] sm:$0xff]   ;;  %v3890_v6 = vunpack.c.l.bf16 %v11304_v59 }
 0x466   : > { %17034 = vmatpush1.bf16.msra.mxu0 %v18913_v60  ;;  %17058 = vmatpush3.bf16.msra.mxu1 %v13569_v7  ;;  %v13585_v60 = vld [vmem:[%s21702_s1 + $0x3b0] sm:$0xff]   ;;  %v3903_v7 = vunpack.c.l.bf16 %v11317_v5 }
 0x467   : > { %17036 = vmatprep.subr.bf16.mxu0 %v18914_v55  ;;  %17060 = vmatprep.subr.bf16.mxu1 %v13578_v8  ;;  %v18711_v55 = vld [vmem:[%s21702_s1 + $0x3ec] sm:$0xff]  }
 0x46a   : > { %17038 = vmatpush1.bf16.msra.mxu0 %v18916_v61  ;;  %17062 = vmatpush3.bf16.msra.mxu1 %v13570_v9  ;;  %v13586_v61 = vld [vmem:[%s21702_s1 + $0x3b8] sm:$0xff]  }
 0x46b   : > { %17040 = vmatprep.subr.bf16.mxu0 %v18917_v62  ;;  %17064 = vmatprep.subr.bf16.mxu1 %v13579_v10  ;;  %v18713_v62 = vld [vmem:[%s21702_s1 + $0x3f4] sm:$0xff]  }
 0x46e   : > { %17042 = vmatpush1.bf16.msra.mxu0 %v18919_v57  ;;  %17066 = vmatpush3.bf16.msra.mxu1 %v13571_v11  ;;  %v13587_v57 = vld [vmem:[%s21702_s1 + $0x3c0] sm:$0xff]  }
 0x46f   : > { %17044 = vmatprep.subr.bf16.mxu0 %v18920_v63  ;;  %17068 = vmatprep.subr.bf16.mxu1 %v13580_v12  ;;  %v18715_v63 = vld [vmem:[%s21702_s1 + $0x3fc] sm:$0xff]   ;;  %v3781_v12 = vld [vmem:[%s21706_s5 + $0x5] ss:$0 sm:$0xff] }
 0x472   : > { %17046 = vmatpush1.bf16.msra.mxu0 %v18922_v0  ;;  %17070 = vmatpush3.bf16.msra.mxu1 %v13572_v13  ;;  %v13588_v0 = vld [vmem:[%s21702_s1 + $0x3c8] sm:$0xff]  }
 0x473   : > { %17048 = vmatprep.subr.bf16.mxu0 %v18923_v2  ;;  %17072 = vmatprep.subr.bf16.mxu1 %v13581_v14  ;;  %v18716_v2 = vld [vmem:[%s21702_s1 + $0x404] sm:$0xff] }
 0x474   : > { %v3782_v14 = vld [vmem:[%s21706_s5 + $0x6] ss:$0 sm:$0xff] }
 0x476   : > { %17050 = vmatpush1.bf16.msra.mxu0 %v18925_v4  ;;  %17074 = vmatpush3.bf16.msra.mxu1 %v13573_v15  ;;  %v13589_v4 = vld [vmem:[%s21702_s1 + $0x3d0] sm:$0xff]  }
 0x477   : > { %17083 = vmatprep.subr.bf16.mxu0 %v19079_v1  ;;  %17076 = vmatprep.subr.bf16.mxu1 %v13582_v16 }
 0x4fd   : > { %v3119_v22 = vpop.f32.mrb[30].mxu0 }
 0x4fe   : > { %v15401_v23 = vpop.f32.mrb[31].mxu0  ;;  %v3488_v25 = vsel %vm273_vm1, %v3119_v22, 0.0  ;;  %v3502_v22 = vld [vmem:[%s21706_s5 + $0x1] ss:$0 sm:$0xff] }
 0x501   : > { %v3192_v24 = vpop.f32.mrb[30].mxu1 }
 0x502   : > { %v3489_v26 = vsel %vm273_vm1, %v3192_v24, 0.0  ;;  %v15408_v27 = vpop.f32.mrb[31].mxu1  ;;  %v3503_v24 = vld [vmem:[%s21706_s5 + $0x2] ss:$0 sm:$0xff] }
 0x503   : > { %v3490_v28 = vadd.f32 %v3489_v26, %v3488_v25  ;;  %v13574_v27 = vld [vmem:[%s21705_s4 + $0x30] sm:$0xff]  }
 0x504   : > { %17078 = vmatpush3.bf16.msra.mxu1 %v13574_v27  ;;  %v18725_v27 = vld [vmem:[%s21702_s1 + $0x464] sm:$0xff]  }
 0x518   : > { %v3265_v29 = vpop.f32.mrb[32].mxu0 }
 0x519   : > { %v3491_v30 = vsel %vm273_vm1, %v3265_v29, 0.0  ;;  %v15415_v31 = vpop.f32.mrb[33].mxu0  ;;  %v13575_v29 = vld [vmem:[%s21705_s4 + $0x38] sm:$0xff]  }
 0x51a   : > { %v3492_v32 = vadd.f32 %v3491_v30, %v3490_v28  ;;  %v13583_v28 = vld [vmem:[%s21705_s4 + $0x78] sm:$0xff]   ;;  %v3559_v30 = vlaneseq }
 0x51b   : > { %17080 = vmatprep.subr.bf16.mxu1 %v13583_v28  ;;  %v13599_v28 = vld [vmem:[%s21702_s1 + $0x430] sm:$0xff]  }
 0x51c   : > { %v3338_v33 = vpop.f32.mrb[32].mxu1  ;;  %17082 = vmatpush3.bf16.msra.mxu1 %v13575_v29  ;;  %v3560_v31 = vshrl.u32 %v3559_v30, 7  ;;  %v18726_v29 = vld [vmem:[%s21702_s1 + $0x46c] sm:$0xff]  ;;  %v13600_v30 = vld [vmem:[%s21702_s1 + $0x438] sm:$0xff]  }
 0x51d   : > { %v3493_v34 = vsel %vm273_vm1, %v3338_v33, 0.0  ;;  %v15422_v35 = vpop.f32.mrb[33].mxu1  ;;  %17101 = vmatprep.subr.bf16.mxu1 %v19079_v1  ;;  %v11290_v33 = vld [vmem:[%s21706_s5 + $0x3] ss:$8 sm:$0x3] }
 0x51e   : > { %v3494_v36 = vadd.f32 %v3493_v34, %v3492_v32  ;;  %v19969_v32 = vsub.s32 0, %v3560_v31  ;;  %v19974_v34 = vsub.s32 1, %v3560_v31  ;;  %v11330_v31 = vld [vmem:[%s21702_s1 + $0x440] sm:$0x1] }
 0x520   : > { %v3562_v35 = vrot.slane %v11290_v33, %v19969_v32 }
 0x533   : > { %v3411_v37 = vpop.f32.mrb[34].mxu0 }
 0x534   : > { %v3495_v38 = vsel %vm273_vm1, %v3411_v37, 0.0  ;;  %v15429_v39 = vpop.f32.mrb[35].mxu0  ;;  %v3484_v19 = vpop.f32.mrb[34].mxu1 }
 0x535   : > { %v3496_v40 = vadd.f32 %v3495_v38, %v3494_v36  ;;  %v15436_v41 = vpop.f32.mrb[35].mxu1  ;;  %v3497_v42 = vsel %vm273_vm1, %v3484_v19, 0.0  ;;  %v3566_v36 = vrot.slane %v11290_v33, %v19974_v34  ;;  %v11343_v33 = vld [vmem:[%s21702_s1 + $0x474] sm:$0x1] }
 0x537   : > { %v3498_v44 = vadd.f32 %v3497_v42, %v3496_v40 }
 0x539   : > { %v3500_v45 = vadd.f32 %v3499_v43, %v3498_v44  ;;  %v3709_v43 = vld [vmem:[%s21706_s5 + $0x4] ss:$0 sm:$0xff] }
 0x53b   : > { %v3501_v47 = vadd.f32 %v19070_v46, %v3500_v45 }
 0x53d   : > { %v3504_v48 = vsel %vm273_vm1, %v3501_v47, 0.0 }
 0x53e   : > { %3505 = vadd.xlane.f32.xlu0 %v3504_v48 }
 0x5cb   : > { %v3506_v51 = vpop.xlane.xlu0 %3505 }
 0x5cc   : > { %v3508_v52 = vmul.f32 0.010416667, %v3506_v51 }
 0x5ce   : > { %v3509_v54 = vsub.f32 %v3501_v47, %v3508_v52 }
 0x5d0   : > { %v3510_v56 = vmul.f32 %v3509_v54, %v3509_v54 }
 0x5d2   : > { %v3511_v53 = vsel %vm273_vm1, %v3510_v56, 0.0 }
 0x5d3   : > { %3512 = vadd.xlane.f32.xlu1 %v3511_v53 }
 0x660   : > { %v3513_v17 = vpop.xlane.xlu1 %3512 }
 0x661   : > { %v3514_v18 = vmul.f32 0.010416667, %v3513_v17  ;;  %v18927_v17 = vld [vmem:[%s21702_s1 + $0x444] sm:$0xff]  }
 0x663   : > { %v3515_v20 = vadd.f32 1e-05, %v3514_v18  ;;  %v13595_v18 = vld [vmem:[%s21702_s1 + $0x410] sm:$0xff]  }
 0x665   : > { %19004 = vrsqrt.f32 %v3515_v20 }
 0x66f   : > { %v19005_v21 = vpop.eup %19004 }
 0x670   : > { %v3517_v23 = vmul.f32 %v19005_v21, %v3509_v54  ;;  %v18719_v21 = vld [vmem:[%s21702_s1 + $0x44c] sm:$0xff]  }
 0x672   : > { %v3518_v25 = vmul.f32 %v3517_v23, %v3502_v22  ;;  %v13596_v22 = vld [vmem:[%s21702_s1 + $0x418] sm:$0xff]  }
 0x673   : > { %v18721_v23 = vld [vmem:[%s21702_s1 + $0x454] sm:$0xff]  }
 0x674   : > { %v3519_v26 = vadd.f32 %v3518_v25, %v3503_v24  ;;  %v13597_v24 = vld [vmem:[%s21702_s1 + $0x420] sm:$0xff]  }
 0x675   : > { %v18723_v25 = vld [vmem:[%s21702_s1 + $0x45c] sm:$0xff]  }
 0x676   : > { %11291 = vmatmul.mubr.msk.f32.vlgmr.msra.gmra.mrb[36].mxu0 %vm273_vm1, %v3519_v26 }
 0x677   : > { %15463 = vmatprep.mubr.msk.f32.mxu0 %vm19080_vm0, %v19081_v3  ;;  %17085 = vmatpush3.bf16.msra.mxu0 %v13584_v49  ;;  %v11369_v49 = vld [vmem:[%s21702_s1 + $0x4dc] sm:$0x1] }
 0x678   : > { %17086 = vmatprep.subr.bf16.mxu0 %v19079_v1 }
 0x67b   : > { %17088 = vmatpush3.bf16.msra.mxu0 %v13585_v60  ;;  %v13619_v60 = vld [vmem:[%s21702_s1 + $0x4f0] sm:$0xff]  }
 0x67c   : > { %17089 = vmatprep.subr.bf16.mxu0 %v19079_v1 }
 0x67f   : > { %17091 = vmatpush3.bf16.msra.mxu0 %v13586_v61  ;;  %v13620_v61 = vld [vmem:[%s21702_s1 + $0x4f8] sm:$0xff]  }
 0x680   : > { %17092 = vmatprep.subr.bf16.mxu0 %v19079_v1 }
 0x683   : > { %17094 = vmatpush3.bf16.msra.mxu0 %v13587_v57  ;;  %v13621_v57 = vld [vmem:[%s21702_s1 + $0x500] sm:$0xff]  }
 0x684   : > { %17095 = vmatprep.subr.bf16.mxu0 %v19079_v1 }
 0x687   : > { %17097 = vmatpush3.bf16.msra.mxu0 %v13588_v0  ;;  %v13622_v0 = vld [vmem:[%s21702_s1 + $0x508] sm:$0xff]  }
 0x688   : > { %17098 = vmatprep.subr.bf16.mxu0 %v19079_v1 }
 0x68b   : > { %17100 = vmatpush3.bf16.msra.mxu0 %v13589_v4  ;;  %v11407_v4 = vld [vmem:[%s21702_s1 + $0x544] sm:$0x1] }
 0x68c   : > { %15461 = vmatprep.subr.mxu0 %v19081_v3  ;;  %v4501_v5 = vunpack.c.l.bf16 %v11407_v4  ;;  %v13664_v4 = vld [vmem:[%s21702_s1 + $0x698] sm:$0xff]  }
 0x68f   : > { %15462 = vmatpush3.msk.msra.mxu0 %vm435_vm2, %v3890_v6  ;;  %v18930_v6 = vld [vmem:[%s21702_s1 + $0x57c] sm:$0xff]  }
 0x690   : > { %17119 = vmatprep.subr.bf16.mxu0 %v19079_v1 }
 0x749   : > { %v3638_v37 = vpop.f32.mrb[36].mxu0 }
 0x74a   : > { %v3639_v38 = vadd.f32 %v3638_v37, %v3562_v35  ;;  %v3640_v39 = vpop.f32.mrb[37].mxu0  ;;  %v3916_v35 = vunpack.c.l.bf16 %v11330_v31  ;;  %v18928_v37 = vld [vmem:[%s21702_s1 + $0x4ac] sm:$0xff]   ;;  %v18763_v31 = vld [vmem:[%s21702_s1 + $0x5fc] sm:$0xff]  }
 0x74b   : > { %v3641_v19 = vadd.f32 %v3640_v39, %v3566_v36  ;;  %v3929_v36 = vunpack.c.l.bf16 %v11343_v33  ;;  %v18729_v39 = vld [vmem:[%s21702_s1 + $0x4b4] sm:$0xff]   ;;  %v13642_v33 = vld [vmem:[%s21702_s1 + $0x5c8] sm:$0xff]  }
 0x74c   : > { %v3643_v41 = vmax.f32 %v3639_v38, 0.0  ;;  %v13606_v38 = vld [vmem:[%s21702_s1 + $0x478] sm:$0xff]  }
 0x74d   : > { %v3644_v40 = vmax.f32 %v3641_v19, 0.0  ;;  %v13607_v19 = vld [vmem:[%s21702_s1 + $0x480] sm:$0xff]  }
 0x74f   : > { %3774 = vmatprep.mubr.f32.mxu1 %v3644_v40  ;;  %v18731_v40 = vld [vmem:[%s21702_s1 + $0x4bc] sm:$0xff]  }
 0x750   : > { %3775 = vmatmul.mubr.f32.vlgmr.msra.gmra.mrb[36].mxu1 %v3643_v41  ;;  %v13608_v41 = vld [vmem:[%s21702_s1 + $0x488] sm:$0xff]  }
 0x751   : > { %15492 = vmatprep.mubr.msk.f32.mxu1 %vm19080_vm0, %v19081_v3  ;;  %17103 = vmatpush3.bf16.msra.mxu1 %v18926_v50 }
 0x752   : > { %17104 = vmatprep.subr.bf16.mxu1 %v19079_v1 }
 0x755   : > { %17106 = vmatpush3.bf16.msra.mxu1 %v18709_v58  ;;  %v18741_v58 = vld [vmem:[%s21702_s1 + $0x524] sm:$0xff]  }
 0x756   : > { %17107 = vmatprep.subr.bf16.mxu1 %v19079_v1 }
 0x759   : > { %17109 = vmatpush3.bf16.msra.mxu1 %v18711_v55  ;;  %v18743_v55 = vld [vmem:[%s21702_s1 + $0x52c] sm:$0xff]  }
 0x75a   : > { %17110 = vmatprep.subr.bf16.mxu1 %v19079_v1 }
 0x75d   : > { %17112 = vmatpush3.bf16.msra.mxu1 %v18713_v62  ;;  %v18745_v62 = vld [vmem:[%s21702_s1 + $0x534] sm:$0xff]  }
 0x75e   : > { %17113 = vmatprep.subr.bf16.mxu1 %v19079_v1 }
 0x761   : > { %17115 = vmatpush3.bf16.msra.mxu1 %v18715_v63  ;;  %v18746_v63 = vld [vmem:[%s21702_s1 + $0x53c] sm:$0xff] }
 0x762   : > { %17116 = vmatprep.subr.bf16.mxu1 %v19079_v1 }
 0x765   : > { %17118 = vmatpush3.bf16.msra.mxu1 %v18716_v2  ;;  %v11394_v2 = vld [vmem:[%s21702_s1 + $0x510] sm:$0x1] }
 0x766   : > { %15490 = vmatprep.subr.mxu1 %v19081_v3  ;;  %v4488_v59 = vunpack.c.l.bf16 %v11394_v2  ;;  %v18783_v2 = vld [vmem:[%s21702_s1 + $0x6cc] sm:$0xff]  }
 0x769   : > { %15491 = vmatpush3.msk.msra.mxu1 %vm435_vm2, %v3903_v7  ;;  %v13628_v7 = vld [vmem:[%s21702_s1 + $0x548] sm:$0xff]  }
 0x76a   : > { %17137 = vmatprep.subr.bf16.mxu1 %v19079_v1 }
 0x823   : > { %v14152_v42 = vpop.f32.mrb[36].mxu1 }
 0x824   : > { %v14153_v44 = vpop.f32.mrb[37].mxu1 }
 0x825   : > { %v14154_v45 = vadd.f32 %v14153_v44, %v14152_v42  ;;  %v18733_v42 = vld [vmem:[%s21702_s1 + $0x4c4] sm:$0xff]   ;;  %v18735_v44 = vld [vmem:[%s21702_s1 + $0x4cc] sm:$0xff]  }
 0x827   : > { %v3777_v46 = vadd.f32 %v14154_v45, %v3709_v43  ;;  %v13609_v43 = vld [vmem:[%s21702_s1 + $0x490] sm:$0xff]   ;;  %v13610_v45 = vld [vmem:[%s21702_s1 + $0x498] sm:$0xff]  }
 0x829   : > { %v3780_v47 = vadd.f32 %v3777_v46, %v3519_v26  ;;  %v13598_v26 = vld [vmem:[%s21702_s1 + $0x428] sm:$0xff]   ;;  %v18736_v46 = vld [vmem:[%s21702_s1 + $0x4d4] sm:$0xff] }
 0x82b   : > { %v3783_v48 = vsel %vm273_vm1, %v3780_v47, 0.0 }
 0x82c   : > { %3784 = vadd.xlane.f32.xlu0 %v3783_v48  ;;  %v11356_v48 = vld [vmem:[%s21702_s1 + $0x4a8] sm:$0x1] }
 0x82d   : > { %v3942_v50 = vunpack.c.l.bf16 %v11356_v48  ;;  %v18773_v48 = vld [vmem:[%s21702_s1 + $0x664] sm:$0xff]  }
 0x8b9   : > { %v3785_v51 = vpop.xlane.xlu0 %3784 }
 0x8ba   : > { %v3786_v52 = vmul.f32 0.010416667, %v3785_v51  ;;  %v3955_v51 = vunpack.c.l.bf16 %v11369_v49  ;;  %v13653_v49 = vld [vmem:[%s21702_s1 + $0x630] sm:$0xff]  }
 0x8bc   : > { %v3787_v54 = vsub.f32 %v3780_v47, %v3786_v52  ;;  %v13611_v47 = vld [vmem:[%s21702_s1 + $0x4a0] sm:$0xff]   ;;  %v18929_v52 = vld [vmem:[%s21702_s1 + $0x514] sm:$0xff]  }
 0x8be   : > { %v3788_v56 = vmul.f32 %v3787_v54, %v3787_v54 }
 0x8c0   : > { %v3789_v53 = vsel %vm273_vm1, %v3788_v56, 0.0  ;;  %v18739_v56 = vld [vmem:[%s21702_s1 + $0x51c] sm:$0xff]  }
 0x8c1   : > { %3790 = vadd.xlane.f32.xlu1 %v3789_v53  ;;  %v13618_v53 = vld [vmem:[%s21702_s1 + $0x4e8] sm:$0xff]  }
 0x94e   : > { %v3791_v8 = vpop.xlane.xlu1 %3790 }
 0x94f   : > { %v3792_v9 = vmul.f32 0.010416667, %v3791_v8  ;;  %v18749_v8 = vld [vmem:[%s21702_s1 + $0x584] sm:$0xff]  }
 0x951   : > { %v3793_v10 = vadd.f32 1e-05, %v3792_v9  ;;  %v13629_v9 = vld [vmem:[%s21702_s1 + $0x550] sm:$0xff]  }
 0x953   : > { %19006 = vrsqrt.f32 %v3793_v10  ;;  %v18751_v10 = vld [vmem:[%s21702_s1 + $0x58c] sm:$0xff]  }
 0x95d   : > { %v19007_v11 = vpop.eup %19006 }
 0x95e   : > { %v3795_v13 = vmul.f32 %v19007_v11, %v3787_v54  ;;  %v13617_v54 = vld [vmem:[%s21702_s1 + $0x4e0] sm:$0xff]   ;;  %v13630_v11 = vld [vmem:[%s21702_s1 + $0x558] sm:$0xff]  }
 0x960   : > { %v3796_v15 = vmul.f32 %v3795_v13, %v3781_v12  ;;  %v18753_v12 = vld [vmem:[%s21702_s1 + $0x594] sm:$0xff]   ;;  %v13631_v13 = vld [vmem:[%s21702_s1 + $0x560] sm:$0xff]  }
 0x962   : > { %v20049_v16 = vadd.f32 %v3796_v15, %v3782_v14  ;;  %v18755_v14 = vld [vmem:[%s21702_s1 + $0x59c] sm:$0xff]   ;;  %v13632_v15 = vld [vmem:[%s21702_s1 + $0x568] sm:$0xff]  }
 0x964   : > { %v20059_v20 = vsel %vm273_vm1, %v20049_v16, 1.0 }
 0x965   : > { %15464 = vmatmul.mubr.msk.f32.vlgmr.msra.gmra.mrb[38].mxu0 %vm431_vm3, %v20059_v20  ;;  %15493 = vmatmul.mubr.msk.f32.vlgmr.msra.gmra.mrb[38].mxu1 %vm431_vm3, %v20059_v20 }
 0x966   : > { %17121 = vmatpush3.bf16.msra.mxu0 %v13595_v18  ;;  %17139 = vmatpush3.bf16.msra.mxu1 %v18927_v17  ;;  %v18756_v17 = vld [vmem:[%s21702_s1 + $0x5a4] sm:$0xff]  ;;  %v13633_v18 = vld [vmem:[%s21702_s1 + $0x570] sm:$0xff]  }
 0x967   : > { %17122 = vmatprep.subr.bf16.mxu0 %v19079_v1  ;;  %17140 = vmatprep.subr.bf16.mxu1 %v19079_v1 }
 0x968   : > { %15521 = vmatprep.mubr.msk.f32.mxu0 %vm19080_vm0, %v19081_v3  ;;  %15550 = vmatprep.mubr.msk.f32.mxu1 %vm19080_vm0, %v19081_v3 }
 0x96a   : > { %17124 = vmatpush3.bf16.msra.mxu0 %v13596_v22  ;;  %17142 = vmatpush3.bf16.msra.mxu1 %v18719_v21  ;;  %v11420_v21 = vld [vmem:[%s21702_s1 + $0x578] sm:$0x1]  ;;  %v11433_v22 = vld [vmem:[%s21702_s1 + $0x5ac] sm:$0x1] }
 0x96b   : > { %17125 = vmatprep.subr.bf16.mxu0 %v19079_v1  ;;  %17143 = vmatprep.subr.bf16.mxu1 %v19079_v1 }
 0x96e   : > { %17127 = vmatpush3.bf16.msra.mxu0 %v13597_v24  ;;  %17145 = vmatpush3.bf16.msra.mxu1 %v18721_v23  ;;  %v4514_v23 = vunpack.c.l.bf16 %v11420_v21  ;;  %v4527_v24 = vunpack.c.l.bf16 %v11433_v22  ;;  %v18793_v21 = vld [vmem:[%s21702_s1 + $0x734] sm:$0xff]   ;;  %v13675_v22 = vld [vmem:[%s21702_s1 + $0x700] sm:$0xff]  }
 0x96f   : > { %17128 = vmatprep.subr.bf16.mxu0 %v19079_v1  ;;  %17146 = vmatprep.subr.bf16.mxu1 %v19079_v1 }
 0x972   : > { %17130 = vmatpush3.bf16.msra.mxu0 %v13598_v26  ;;  %17148 = vmatpush3.bf16.msra.mxu1 %v18723_v25  ;;  %v18931_v25 = vld [vmem:[%s21702_s1 + $0x5e4] sm:$0xff]   ;;  %v13639_v26 = vld [vmem:[%s21702_s1 + $0x5b0] sm:$0xff]  }
 0x973   : > { %17131 = vmatprep.subr.bf16.mxu0 %v19079_v1  ;;  %17149 = vmatprep.subr.bf16.mxu1 %v19079_v1 }
 0x976   : > { %17133 = vmatpush3.bf16.msra.mxu0 %v13599_v28  ;;  %17151 = vmatpush3.bf16.msra.mxu1 %v18725_v27  ;;  %v18759_v27 = vld [vmem:[%s21702_s1 + $0x5ec] sm:$0xff]   ;;  %v13640_v28 = vld [vmem:[%s21702_s1 + $0x5b8] sm:$0xff]  }
 0x977   : > { %17134 = vmatprep.subr.bf16.mxu0 %v19079_v1  ;;  %17152 = vmatprep.subr.bf16.mxu1 %v19079_v1 }
 0x97a   : > { %17136 = vmatpush3.bf16.msra.mxu0 %v13600_v30  ;;  %17154 = vmatpush3.bf16.msra.mxu1 %v18726_v29  ;;  %v18761_v29 = vld [vmem:[%s21702_s1 + $0x5f4] sm:$0xff]   ;;  %v13641_v30 = vld [vmem:[%s21702_s1 + $0x5c0] sm:$0xff]  }
 0x97b   : > { %15519 = vmatprep.subr.mxu0 %v19081_v3  ;;  %15548 = vmatprep.subr.mxu1 %v19081_v3 }
 0x97e   : > { %15520 = vmatpush3.msk.msra.mxu0 %vm435_vm2, %v3916_v35  ;;  %15549 = vmatpush3.msk.msra.mxu1 %vm435_vm2, %v3929_v36  ;;  %v18765_v35 = vld [vmem:[%s21702_s1 + $0x604] sm:$0xff]   ;;  %v13643_v36 = vld [vmem:[%s21702_s1 + $0x5d0] sm:$0xff]  }
 0x97f   : > { %15522 = vmatmul.mubr.msk.f32.vlgmr.msra.gmra.mrb[40].mxu0 %vm431_vm3, %v20059_v20  ;;  %15551 = vmatmul.mubr.msk.f32.vlgmr.msra.gmra.mrb[40].mxu1 %vm431_vm3, %v20059_v20 }
 0x980   : > { %17155 = vmatprep.subr.bf16.mxu0 %v19079_v1  ;;  %17173 = vmatprep.subr.bf16.mxu1 %v19079_v1 }
 0x981   : > { %17157 = vmatpush3.bf16.msra.mxu0 %v13606_v38  ;;  %17175 = vmatpush3.bf16.msra.mxu1 %v18928_v37  ;;  %v18766_v37 = vld [vmem:[%s21702_s1 + $0x60c] sm:$0xff]  ;;  %v13644_v38 = vld [vmem:[%s21702_s1 + $0x5d8] sm:$0xff]  }
 0x982   : > { %17158 = vmatprep.subr.bf16.mxu0 %v19079_v1  ;;  %17176 = vmatprep.subr.bf16.mxu1 %v19079_v1 }
 0x983   : > { %15579 = vmatprep.mubr.msk.f32.mxu0 %vm19080_vm0, %v19081_v3  ;;  %15608 = vmatprep.mubr.msk.f32.mxu1 %vm19080_vm0, %v19081_v3 }
 0x985   : > { %17160 = vmatpush3.bf16.msra.mxu0 %v13607_v19  ;;  %17178 = vmatpush3.bf16.msra.mxu1 %v18729_v39  ;;  %v11446_v39 = vld [vmem:[%s21702_s1 + $0x5e0] sm:$0x1]  ;;  %v11459_v19 = vld [vmem:[%s21702_s1 + $0x614] sm:$0x1] }
 0x986   : > { %17161 = vmatprep.subr.bf16.mxu0 %v19079_v1  ;;  %17179 = vmatprep.subr.bf16.mxu1 %v19079_v1 }
 0x989   : > { %17163 = vmatpush3.bf16.msra.mxu0 %v13608_v41  ;;  %17181 = vmatpush3.bf16.msra.mxu1 %v18731_v40  ;;  %v4540_v40 = vunpack.c.l.bf16 %v11446_v39  ;;  %v4553_v41 = vunpack.c.l.bf16 %v11459_v19 }
 0x98a   : > { %17164 = vmatprep.subr.bf16.mxu0 %v19079_v1  ;;  %17182 = vmatprep.subr.bf16.mxu1 %v19079_v1 }
 0x98d   : > { %17166 = vmatpush3.bf16.msra.mxu0 %v13609_v43  ;;  %17184 = vmatpush3.bf16.msra.mxu1 %v18733_v42  ;;  %v18932_v42 = vld [vmem:[%s21702_s1 + $0x64c] sm:$0xff]   ;;  %v13650_v43 = vld [vmem:[%s21702_s1 + $0x618] sm:$0xff]  }
 0x98e   : > { %17167 = vmatprep.subr.bf16.mxu0 %v19079_v1  ;;  %17185 = vmatprep.subr.bf16.mxu1 %v19079_v1 }
 0x991   : > { %17169 = vmatpush3.bf16.msra.mxu0 %v13610_v45  ;;  %17187 = vmatpush3.bf16.msra.mxu1 %v18735_v44  ;;  %v18769_v44 = vld [vmem:[%s21702_s1 + $0x654] sm:$0xff]   ;;  %v13651_v45 = vld [vmem:[%s21702_s1 + $0x620] sm:$0xff]  }
 0x992   : > { %17170 = vmatprep.subr.bf16.mxu0 %v19079_v1  ;;  %17188 = vmatprep.subr.bf16.mxu1 %v19079_v1 }
 0x995   : > { %17172 = vmatpush3.bf16.msra.mxu0 %v13611_v47  ;;  %17190 = vmatpush3.bf16.msra.mxu1 %v18736_v46  ;;  %v18771_v46 = vld [vmem:[%s21702_s1 + $0x65c] sm:$0xff]   ;;  %v13652_v47 = vld [vmem:[%s21702_s1 + $0x628] sm:$0xff]  }
 0x996   : > { %15577 = vmatprep.subr.mxu0 %v19081_v3  ;;  %15606 = vmatprep.subr.mxu1 %v19081_v3 }
 0x999   : > { %15578 = vmatpush3.msk.msra.mxu0 %vm435_vm2, %v3942_v50  ;;  %15607 = vmatpush3.msk.msra.mxu1 %vm435_vm2, %v3955_v51  ;;  %v18775_v50 = vld [vmem:[%s21702_s1 + $0x66c] sm:$0xff]   ;;  %v13654_v51 = vld [vmem:[%s21702_s1 + $0x638] sm:$0xff]  }
 0x99a   : > { %15580 = vmatmul.mubr.msk.f32.vlgmr.msra.gmra.mrb[42].mxu0 %vm431_vm3, %v20059_v20  ;;  %15609 = vmatmul.mubr.msk.f32.vlgmr.msra.gmra.mrb[42].mxu1 %vm431_vm3, %v20059_v20 }
 0x99b   : > { %17191 = vmatprep.subr.bf16.mxu0 %v19079_v1  ;;  %17209 = vmatprep.subr.bf16.mxu1 %v19079_v1 }
 0x99c   : > { %17193 = vmatpush3.bf16.msra.mxu0 %v13617_v54  ;;  %17211 = vmatpush3.bf16.msra.mxu1 %v18929_v52  ;;  %v18776_v52 = vld [vmem:[%s21702_s1 + $0x674] sm:$0xff]  ;;  %v13655_v54 = vld [vmem:[%s21702_s1 + $0x640] sm:$0xff]  }
 0x99d   : > { %17194 = vmatprep.subr.bf16.mxu0 %v19079_v1  ;;  %17212 = vmatprep.subr.bf16.mxu1 %v19079_v1 }
 0x99e   : > { %15637 = vmatprep.mubr.msk.f32.mxu0 %vm19080_vm0, %v19081_v3  ;;  %15666 = vmatprep.mubr.msk.f32.mxu1 %vm19080_vm0, %v19081_v3 }
 0x9a0   : > { %17196 = vmatpush3.bf16.msra.mxu0 %v13618_v53  ;;  %17214 = vmatpush3.bf16.msra.mxu1 %v18739_v56  ;;  %v11484_v56 = vld [vmem:[%s21702_s1 + $0x648] sm:$0x1]  ;;  %v11497_v53 = vld [vmem:[%s21702_s1 + $0x67c] sm:$0x1] }
 0x9a1   : > { %17197 = vmatprep.subr.bf16.mxu0 %v19079_v1  ;;  %17215 = vmatprep.subr.bf16.mxu1 %v19079_v1 }
 0x9a4   : > { %17199 = vmatpush3.bf16.msra.mxu0 %v13619_v60  ;;  %17217 = vmatpush3.bf16.msra.mxu1 %v18741_v58  ;;  %v5083_v58 = vunpack.c.l.bf16 %v11484_v56  ;;  %v5096_v60 = vunpack.c.l.bf16 %v11497_v53 }
 0x9a5   : > { %17200 = vmatprep.subr.bf16.mxu0 %v19079_v1  ;;  %17218 = vmatprep.subr.bf16.mxu1 %v19079_v1 }
 0x9a8   : > { %17202 = vmatpush3.bf16.msra.mxu0 %v13620_v61  ;;  %17220 = vmatpush3.bf16.msra.mxu1 %v18743_v55  ;;  %v18933_v55 = vld [vmem:[%s21702_s1 + $0x6b4] sm:$0xff]   ;;  %v13661_v61 = vld [vmem:[%s21702_s1 + $0x680] sm:$0xff]  }
 0x9a9   : > { %17203 = vmatprep.subr.bf16.mxu0 %v19079_v1  ;;  %17221 = vmatprep.subr.bf16.mxu1 %v19079_v1 }
 0x9ac   : > { %17205 = vmatpush3.bf16.msra.mxu0 %v13621_v57  ;;  %17223 = vmatpush3.bf16.msra.mxu1 %v18745_v62  ;;  %v18779_v62 = vld [vmem:[%s21702_s1 + $0x6bc] sm:$0xff]   ;;  %v13662_v57 = vld [vmem:[%s21702_s1 + $0x688] sm:$0xff]  }
 0x9ad   : > { %17206 = vmatprep.subr.bf16.mxu0 %v19079_v1  ;;  %17224 = vmatprep.subr.bf16.mxu1 %v19079_v1 }
 0x9b0   : > { %17208 = vmatpush3.bf16.msra.mxu0 %v13622_v0  ;;  %17226 = vmatpush3.bf16.msra.mxu1 %v18746_v63  ;;  %v18781_v63 = vld [vmem:[%s21702_s1 + $0x6c4] sm:$0xff]   ;;  %v13663_v0 = vld [vmem:[%s21702_s1 + $0x690] sm:$0xff]  }
 0x9b1   : > { %15635 = vmatprep.subr.mxu0 %v19081_v3  ;;  %15664 = vmatprep.subr.mxu1 %v19081_v3 }
 0x9b4   : > { %15636 = vmatpush3.msk.msra.mxu0 %vm435_vm2, %v4488_v59  ;;  %15665 = vmatpush3.msk.msra.mxu1 %vm435_vm2, %v4501_v5  ;;  %v18785_v59 = vld [vmem:[%s21702_s1 + $0x6d4] sm:$0xff]   ;;  %v13665_v5 = vld [vmem:[%s21702_s1 + $0x6a0] sm:$0xff]  }
 0x9b5   : > { %15638 = vmatmul.mubr.msk.f32.vlgmr.msra.gmra.mrb[44].mxu0 %vm431_vm3, %v20059_v20  ;;  %15667 = vmatmul.mubr.msk.f32.vlgmr.msra.gmra.mrb[44].mxu1 %vm431_vm3, %v20059_v20 }
 0x9b6   : > { %17227 = vmatprep.subr.bf16.mxu0 %v19079_v1  ;;  %17245 = vmatprep.subr.bf16.mxu1 %v19079_v1 }
 0x9b7   : > { %17229 = vmatpush3.bf16.msra.mxu0 %v13628_v7  ;;  %17247 = vmatpush3.bf16.msra.mxu1 %v18930_v6  ;;  %v18786_v6 = vld [vmem:[%s21702_s1 + $0x6dc] sm:$0xff]  ;;  %v13666_v7 = vld [vmem:[%s21702_s1 + $0x6a8] sm:$0xff]  }
 0x9b8   : > { %17230 = vmatprep.subr.bf16.mxu0 %v19079_v1  ;;  %17248 = vmatprep.subr.bf16.mxu1 %v19079_v1 }
 0x9b9   : > { %15695 = vmatprep.mubr.msk.f32.mxu0 %vm19080_vm0, %v19081_v3  ;;  %15724 = vmatprep.mubr.msk.f32.mxu1 %vm19080_vm0, %v19081_v3 }
 0x9bb   : > { %17232 = vmatpush3.bf16.msra.mxu0 %v13629_v9  ;;  %17250 = vmatpush3.bf16.msra.mxu1 %v18749_v8  ;;  %v11510_v8 = vld [vmem:[%s21702_s1 + $0x6b0] sm:$0x1]  ;;  %v11523_v9 = vld [vmem:[%s21702_s1 + $0x6e4] sm:$0x1] }
 0x9bc   : > { %17233 = vmatprep.subr.bf16.mxu0 %v19079_v1  ;;  %17251 = vmatprep.subr.bf16.mxu1 %v19079_v1 }
 0x9bf   : > { %17235 = vmatpush3.bf16.msra.mxu0 %v13630_v11  ;;  %17253 = vmatpush3.bf16.msra.mxu1 %v18751_v10  ;;  %v5109_v10 = vunpack.c.l.bf16 %v11510_v8  ;;  %v5122_v11 = vunpack.c.l.bf16 %v11523_v9 }
 0x9c0   : > { %17236 = vmatprep.subr.bf16.mxu0 %v19079_v1  ;;  %17254 = vmatprep.subr.bf16.mxu1 %v19079_v1 }
 0x9c3   : > { %17238 = vmatpush3.bf16.msra.mxu0 %v13631_v13  ;;  %17256 = vmatpush3.bf16.msra.mxu1 %v18753_v12  ;;  %v18934_v12 = vld [vmem:[%s21702_s1 + $0x71c] sm:$0xff]   ;;  %v13672_v13 = vld [vmem:[%s21702_s1 + $0x6e8] sm:$0xff]  }
 0x9c4   : > { %17239 = vmatprep.subr.bf16.mxu0 %v19079_v1  ;;  %17257 = vmatprep.subr.bf16.mxu1 %v19079_v1 }
 0x9c7   : > { %17241 = vmatpush3.bf16.msra.mxu0 %v13632_v15  ;;  %17259 = vmatpush3.bf16.msra.mxu1 %v18755_v14  ;;  %v18789_v14 = vld [vmem:[%s21702_s1 + $0x724] sm:$0xff]   ;;  %v13673_v15 = vld [vmem:[%s21702_s1 + $0x6f0] sm:$0xff]  }
 0x9c8   : > { %17242 = vmatprep.subr.bf16.mxu0 %v19079_v1  ;;  %17260 = vmatprep.subr.bf16.mxu1 %v19079_v1 }
 0x9cb   : > { %17244 = vmatpush3.bf16.msra.mxu0 %v13633_v18  ;;  %17262 = vmatpush3.bf16.msra.mxu1 %v18756_v17  ;;  %v18791_v17 = vld [vmem:[%s21702_s1 + $0x72c] sm:$0xff]   ;;  %v13674_v18 = vld [vmem:[%s21702_s1 + $0x6f8] sm:$0xff]  }
 0x9cc   : > { %15693 = vmatprep.subr.mxu0 %v19081_v3  ;;  %15722 = vmatprep.subr.mxu1 %v19081_v3 }
 0x9cf   : > { %15694 = vmatpush3.msk.msra.mxu0 %vm435_vm2, %v4514_v23  ;;  %15723 = vmatpush3.msk.msra.mxu1 %vm435_vm2, %v4527_v24  ;;  %v18795_v23 = vld [vmem:[%s21702_s1 + $0x73c] sm:$0xff]   ;;  %v13676_v24 = vld [vmem:[%s21702_s1 + $0x708] sm:$0xff]  }
 0x9d0   : > { %15696 = vmatmul.mubr.msk.f32.vlgmr.msra.gmra.mrb[46].mxu0 %vm431_vm3, %v20059_v20  ;;  %15725 = vmatmul.mubr.msk.f32.vlgmr.msra.gmra.mrb[46].mxu1 %vm431_vm3, %v20059_v20 }
 0x9d1   : > { %17263 = vmatprep.subr.bf16.mxu0 %v19079_v1  ;;  %17281 = vmatprep.subr.bf16.mxu1 %v19079_v1 }
 0x9d2   : > { %17265 = vmatpush3.bf16.msra.mxu0 %v13639_v26  ;;  %17283 = vmatpush3.bf16.msra.mxu1 %v18931_v25  ;;  %v18796_v25 = vld [vmem:[%s21702_s1 + $0x744] sm:$0xff]  ;;  %v13677_v26 = vld [vmem:[%s21702_s1 + $0x710] sm:$0xff]  }
 0x9d3   : > { %17266 = vmatprep.subr.bf16.mxu0 %v19079_v1  ;;  %17284 = vmatprep.subr.bf16.mxu1 %v19079_v1 }
 0x9d4   : > { %15753 = vmatprep.mubr.msk.f32.mxu0 %vm19080_vm0, %v19081_v3  ;;  %15782 = vmatprep.mubr.msk.f32.mxu1 %vm19080_vm0, %v19081_v3 }
 0x9d6   : > { %17268 = vmatpush3.bf16.msra.mxu0 %v13640_v28  ;;  %17286 = vmatpush3.bf16.msra.mxu1 %v18759_v27  ;;  %v11536_v27 = vld [vmem:[%s21702_s1 + $0x718] sm:$0x1]  ;;  %v11549_v28 = vld [vmem:[%s21702_s1 + $0x74c] sm:$0x1] }
 0x9d7   : > { %17269 = vmatprep.subr.bf16.mxu0 %v19079_v1  ;;  %17287 = vmatprep.subr.bf16.mxu1 %v19079_v1 }
 0x9da   : > { %17271 = vmatpush3.bf16.msra.mxu0 %v13641_v30  ;;  %17289 = vmatpush3.bf16.msra.mxu1 %v18761_v29  ;;  %v5135_v29 = vunpack.c.l.bf16 %v11536_v27  ;;  %v5148_v30 = vunpack.c.l.bf16 %v11549_v28 }
 0x9db   : > { %17272 = vmatprep.subr.bf16.mxu0 %v19079_v1  ;;  %17290 = vmatprep.subr.bf16.mxu1 %v19079_v1 }
 0x9de   : > { %17274 = vmatpush3.bf16.msra.mxu0 %v13642_v33  ;;  %17292 = vmatpush3.bf16.msra.mxu1 %v18763_v31 }
 0x9df   : > { %17275 = vmatprep.subr.bf16.mxu0 %v19079_v1  ;;  %17293 = vmatprep.subr.bf16.mxu1 %v19079_v1 }
 0x9e2   : > { %17277 = vmatpush3.bf16.msra.mxu0 %v13643_v36  ;;  %17295 = vmatpush3.bf16.msra.mxu1 %v18765_v35 }
 0x9e3   : > { %17278 = vmatprep.subr.bf16.mxu0 %v19079_v1  ;;  %17296 = vmatprep.subr.bf16.mxu1 %v19079_v1 }
 0x9e6   : > { %17280 = vmatpush3.bf16.msra.mxu0 %v13644_v38  ;;  %17298 = vmatpush3.bf16.msra.mxu1 %v18766_v37 }
 0x9e7   : > { %15751 = vmatprep.subr.mxu0 %v19081_v3  ;;  %15780 = vmatprep.subr.mxu1 %v19081_v3 }
 0x9ea   : > { %15752 = vmatpush3.msk.msra.mxu0 %vm435_vm2, %v4540_v40  ;;  %15781 = vmatpush3.msk.msra.mxu1 %vm435_vm2, %v4553_v41 }
 0x9eb   : > { %15754 = vmatmul.mubr.msk.f32.vlgmr.msra.gmra.mrb[48].mxu0 %vm431_vm3, %v20059_v20  ;;  %15783 = vmatmul.mubr.msk.f32.vlgmr.msra.gmra.mrb[48].mxu1 %vm431_vm3, %v20059_v20 }
 0x9ec   : > { %17299 = vmatprep.subr.bf16.mxu0 %v19079_v1  ;;  %17317 = vmatprep.subr.bf16.mxu1 %v19079_v1 }
 0x9ed   : > { %17301 = vmatpush3.bf16.msra.mxu0 %v13650_v43  ;;  %17319 = vmatpush3.bf16.msra.mxu1 %v18932_v42 }
 0x9ee   : > { %17302 = vmatprep.subr.bf16.mxu0 %v19079_v1  ;;  %17320 = vmatprep.subr.bf16.mxu1 %v19079_v1 }
 0x9ef   : > { %15811 = vmatprep.mubr.msk.f32.mxu0 %vm19080_vm0, %v19081_v3  ;;  %15840 = vmatprep.mubr.msk.f32.mxu1 %vm19080_vm0, %v19081_v3 }
 0x9f1   : > { %17304 = vmatpush3.bf16.msra.mxu0 %v13651_v45  ;;  %17322 = vmatpush3.bf16.msra.mxu1 %v18769_v44 }
 0x9f2   : > { %17305 = vmatprep.subr.bf16.mxu0 %v19079_v1  ;;  %17323 = vmatprep.subr.bf16.mxu1 %v19079_v1 }
 0x9f5   : > { %17307 = vmatpush3.bf16.msra.mxu0 %v13652_v47  ;;  %17325 = vmatpush3.bf16.msra.mxu1 %v18771_v46 }
 0x9f6   : > { %17308 = vmatprep.subr.bf16.mxu0 %v19079_v1  ;;  %17326 = vmatprep.subr.bf16.mxu1 %v19079_v1 }
 0x9f9   : > { %17310 = vmatpush3.bf16.msra.mxu0 %v13653_v49  ;;  %17328 = vmatpush3.bf16.msra.mxu1 %v18773_v48 }
 0x9fa   : > { %17311 = vmatprep.subr.bf16.mxu0 %v19079_v1  ;;  %17329 = vmatprep.subr.bf16.mxu1 %v19079_v1 }
 0x9fd   : > { %17313 = vmatpush3.bf16.msra.mxu0 %v13654_v51  ;;  %17331 = vmatpush3.bf16.msra.mxu1 %v18775_v50 }
 0x9fe   : > { %17314 = vmatprep.subr.bf16.mxu0 %v19079_v1  ;;  %17332 = vmatprep.subr.bf16.mxu1 %v19079_v1 }
 0xa01   : > { %17316 = vmatpush3.bf16.msra.mxu0 %v13655_v54  ;;  %17334 = vmatpush3.bf16.msra.mxu1 %v18776_v52 }
 0xa02   : > { %15809 = vmatprep.subr.mxu0 %v19081_v3  ;;  %15838 = vmatprep.subr.mxu1 %v19081_v3 }
 0xa05   : > { %15810 = vmatpush3.msk.msra.mxu0 %vm435_vm2, %v5083_v58  ;;  %15839 = vmatpush3.msk.msra.mxu1 %vm435_vm2, %v5096_v60 }
 0xa06   : > { %15812 = vmatmul.mubr.msk.f32.vlgmr.msra.gmra.mrb[50].mxu0 %vm431_vm3, %v20059_v20  ;;  %15841 = vmatmul.mubr.msk.f32.vlgmr.msra.gmra.mrb[50].mxu1 %vm431_vm3, %v20059_v20 }
 0xa07   : > { %17335 = vmatprep.subr.bf16.mxu0 %v19079_v1  ;;  %17353 = vmatprep.subr.bf16.mxu1 %v19079_v1 }
 0xa08   : > { %17337 = vmatpush3.bf16.msra.mxu0 %v13661_v61  ;;  %17355 = vmatpush3.bf16.msra.mxu1 %v18933_v55 }
 0xa09   : > { %17338 = vmatprep.subr.bf16.mxu0 %v19079_v1  ;;  %17356 = vmatprep.subr.bf16.mxu1 %v19079_v1 }
 0xa0a   : > { %15869 = vmatprep.mubr.msk.f32.mxu0 %vm19080_vm0, %v19081_v3  ;;  %15898 = vmatprep.mubr.msk.f32.mxu1 %vm19080_vm0, %v19081_v3 }
 0xa0c   : > { %17340 = vmatpush3.bf16.msra.mxu0 %v13662_v57  ;;  %17358 = vmatpush3.bf16.msra.mxu1 %v18779_v62 }
 0xa0d   : > { %17341 = vmatprep.subr.bf16.mxu0 %v19079_v1  ;;  %17359 = vmatprep.subr.bf16.mxu1 %v19079_v1 }
 0xa10   : > { %17343 = vmatpush3.bf16.msra.mxu0 %v13663_v0  ;;  %17361 = vmatpush3.bf16.msra.mxu1 %v18781_v63 }
 0xa11   : > { %17344 = vmatprep.subr.bf16.mxu0 %v19079_v1  ;;  %17362 = vmatprep.subr.bf16.mxu1 %v19079_v1 }
 0xa14   : > { %17346 = vmatpush3.bf16.msra.mxu0 %v13664_v4  ;;  %17364 = vmatpush3.bf16.msra.mxu1 %v18783_v2 }
 0xa15   : > { %17347 = vmatprep.subr.bf16.mxu0 %v19079_v1  ;;  %17365 = vmatprep.subr.bf16.mxu1 %v19079_v1 }
 0xa18   : > { %17349 = vmatpush3.bf16.msra.mxu0 %v13665_v5  ;;  %17367 = vmatpush3.bf16.msra.mxu1 %v18785_v59 }
 0xa19   : > { %17350 = vmatprep.subr.bf16.mxu0 %v19079_v1  ;;  %17368 = vmatprep.subr.bf16.mxu1 %v19079_v1 }
 0xa1c   : > { %17352 = vmatpush3.bf16.msra.mxu0 %v13666_v7  ;;  %17370 = vmatpush3.bf16.msra.mxu1 %v18786_v6 }
 0xa1d   : > { %15867 = vmatprep.subr.mxu0 %v19081_v3  ;;  %15896 = vmatprep.subr.mxu1 %v19081_v3 }
 0xa20   : > { %15868 = vmatpush3.msk.msra.mxu0 %vm435_vm2, %v5109_v10  ;;  %15897 = vmatpush3.msk.msra.mxu1 %vm435_vm2, %v5122_v11 }
 0xa21   : > { %15870 = vmatmul.mubr.msk.f32.vlgmr.msra.gmra.mrb[52].mxu0 %vm431_vm3, %v20059_v20  ;;  %15899 = vmatmul.mubr.msk.f32.vlgmr.msra.gmra.mrb[52].mxu1 %vm431_vm3, %v20059_v20 }
 0xa22   : > { %17371 = vmatprep.subr.bf16.mxu0 %v19079_v1  ;;  %17389 = vmatprep.subr.bf16.mxu1 %v19079_v1 }
 0xa23   : > { %17373 = vmatpush3.bf16.msra.mxu0 %v13672_v13  ;;  %17391 = vmatpush3.bf16.msra.mxu1 %v18934_v12 }
 0xa24   : > { %17374 = vmatprep.subr.bf16.mxu0 %v19079_v1  ;;  %17392 = vmatprep.subr.bf16.mxu1 %v19079_v1 }
 0xa25   : > { %15927 = vmatprep.mubr.msk.f32.mxu0 %vm19080_vm0, %v19081_v3  ;;  %15956 = vmatprep.mubr.msk.f32.mxu1 %vm19080_vm0, %v19081_v3 }
 0xa27   : > { %17376 = vmatpush3.bf16.msra.mxu0 %v13673_v15  ;;  %17394 = vmatpush3.bf16.msra.mxu1 %v18789_v14 }
 0xa28   : > { %17377 = vmatprep.subr.bf16.mxu0 %v19079_v1  ;;  %17395 = vmatprep.subr.bf16.mxu1 %v19079_v1 }
 0xa2b   : > { %17379 = vmatpush3.bf16.msra.mxu0 %v13674_v18  ;;  %17397 = vmatpush3.bf16.msra.mxu1 %v18791_v17 }
 0xa2c   : > { %17380 = vmatprep.subr.bf16.mxu0 %v19079_v1  ;;  %17398 = vmatprep.subr.bf16.mxu1 %v19079_v1 }
 0xa2f   : > { %17382 = vmatpush3.bf16.msra.mxu0 %v13675_v22  ;;  %17400 = vmatpush3.bf16.msra.mxu1 %v18793_v21 }
 0xa30   : > { %17383 = vmatprep.subr.bf16.mxu0 %v19079_v1  ;;  %17401 = vmatprep.subr.bf16.mxu1 %v19079_v1 }
 0xa33   : > { %17385 = vmatpush3.bf16.msra.mxu0 %v13676_v24  ;;  %17403 = vmatpush3.bf16.msra.mxu1 %v18795_v23 }
 0xa34   : > { %17386 = vmatprep.subr.bf16.mxu0 %v19079_v1  ;;  %17404 = vmatprep.subr.bf16.mxu1 %v19079_v1 }
 0xa37   : > { %17388 = vmatpush3.bf16.msra.mxu0 %v13677_v26  ;;  %17406 = vmatpush3.bf16.msra.mxu1 %v18796_v25 }
 0xa38   : > { %15925 = vmatprep.subr.mxu0 %v19081_v3  ;;  %15954 = vmatprep.subr.mxu1 %v19081_v3  ;;  %v4028_v31 = vpop.f32.mrb[38].mxu0  ;;  %v4101_v33 = vpop.f32.mrb[38].mxu1 }
 0xa39   : > { %v15465_v35 = vpop.f32.mrb[39].mxu0  ;;  %v15494_v36 = vpop.f32.mrb[39].mxu1 }
 0xa3b   : > { %15926 = vmatpush3.msk.msra.mxu0 %vm435_vm2, %v5135_v29  ;;  %15955 = vmatpush3.msk.msra.mxu1 %vm435_vm2, %v5148_v30 }
 0xa3c   : > { %15928 = vmatmul.mubr.msk.f32.vlgmr.msra.gmra.mrb[54].mxu0 %vm431_vm3, %v20059_v20  ;;  %15957 = vmatmul.mubr.msk.f32.vlgmr.msra.gmra.mrb[54].mxu1 %vm431_vm3, %v20059_v20 }
 0xa3d   : > { %15959 = vmatprep.subr.mxu0 %v19081_v3  ;;  %15961 = vmatprep.mubr.msk.f32.mxu0 %vm19080_vm0, %v19081_v3 }
 0xa3e   : > { %15974 = vmatprep.subr.mxu1 %v19081_v3  ;;  %15976 = vmatprep.mubr.msk.f32.mxu1 %vm19080_vm0, %v19081_v3 }
 0xa52   : > { %v4174_v37 = vpop.f32.mrb[40].mxu0  ;;  %v4247_v38 = vpop.f32.mrb[40].mxu1 }
 0xa53   : > { %v15523_v39 = vpop.f32.mrb[41].mxu0  ;;  %v15552_v19 = vpop.f32.mrb[41].mxu1 }
 0xa6d   : > { %v4320_v40 = vpop.f32.mrb[42].mxu0  ;;  %v4393_v41 = vpop.f32.mrb[42].mxu1 }
 0xa6e   : > { %v15581_v42 = vpop.f32.mrb[43].mxu0  ;;  %v15610_v43 = vpop.f32.mrb[43].mxu1 }
 0xa88   : > { %v4623_v44 = vpop.f32.mrb[44].mxu0  ;;  %v4696_v20 = vpop.f32.mrb[44].mxu1 }
 0xa89   : > { %v15639_v45 = vpop.f32.mrb[45].mxu0  ;;  %v15668_v46 = vpop.f32.mrb[45].mxu1  ;;  %15960 = vmatpush3.xpose.msk.msra.mxu0 %vm2064_vm4, %v4623_v44 }
 0xa8a   : > { %15964 = vmatprep.subr.mxu0 %v19081_v3 }
 0xa8c   : > { %15962 = vmatmul.mubr.msk.f32.vlgmr.msra.gmra.mrb[56].mxu0 %vm2064_vm4, %v4028_v31 }
 0xa8d   : > { %15965 = vmatpush3.xpose.msk.msra.mxu0 %vm2064_vm4, %v4696_v20  ;;  %15966 = vmatprep.mubr.msk.f32.mxu0 %vm19080_vm0, %v19081_v3 }
 0xa8e   : > { %15969 = vmatprep.subr.mxu0 %v19081_v3 }
 0xa90   : > { %15967 = vmatmul.mubr.msk.f32.vlgmr.msra.gmra.mrb[58].mxu0 %vm2064_vm4, %v4101_v33 }
 0xa91   : > { %15971 = vmatprep.mubr.msk.f32.mxu0 %vm19080_vm0, %v19081_v3 }
 0xaa3   : > { %v4769_v47 = vpop.f32.mrb[46].mxu0  ;;  %v4842_v48 = vpop.f32.mrb[46].mxu1 }
 0xaa4   : > { %v15697_v49 = vpop.f32.mrb[47].mxu0  ;;  %v15726_v50 = vpop.f32.mrb[47].mxu1  ;;  %15970 = vmatpush3.xpose.msk.msra.mxu0 %vm2064_vm4, %v4769_v47  ;;  %15975 = vmatpush3.xpose.msk.msra.mxu1 %vm2064_vm4, %v4842_v48 }
 0xaa5   : > { %15979 = vmatprep.subr.mxu0 %v19081_v3  ;;  %15984 = vmatprep.subr.mxu1 %v19081_v3 }
 0xaa7   : > { %15972 = vmatmul.mubr.msk.f32.vlgmr.msra.gmra.mrb[60].mxu0 %vm2064_vm4, %v4174_v37  ;;  %15977 = vmatmul.mubr.msk.f32.vlgmr.msra.gmra.mrb[56].mxu1 %vm2064_vm4, %v4247_v38 }
 0xaa8   : > { %15981 = vmatprep.mubr.msk.f32.mxu0 %vm19080_vm0, %v19081_v3  ;;  %15986 = vmatprep.mubr.msk.f32.mxu1 %vm19080_vm0, %v19081_v3 }
 0xabe   : > { %v4915_v51 = vpop.f32.mrb[48].mxu0  ;;  %v4988_v52 = vpop.f32.mrb[48].mxu1 }
 0xabf   : > { %v15755_v54 = vpop.f32.mrb[49].mxu0  ;;  %v15784_v56 = vpop.f32.mrb[49].mxu1  ;;  %15980 = vmatpush3.xpose.msk.msra.mxu0 %vm2064_vm4, %v4915_v51  ;;  %15985 = vmatpush3.xpose.msk.msra.mxu1 %vm2064_vm4, %v4988_v52 }
 0xac0   : > { %15989 = vmatprep.subr.mxu0 %v19081_v3  ;;  %15994 = vmatprep.subr.mxu1 %v19081_v3 }
 0xac2   : > { %15982 = vmatmul.mubr.msk.f32.vlgmr.msra.gmra.mrb[62].mxu0 %vm2064_vm4, %v4320_v40  ;;  %15987 = vmatmul.mubr.msk.f32.vlgmr.msra.gmra.mrb[58].mxu1 %vm2064_vm4, %v4393_v41 }
 0xac3   : > { %15991 = vmatprep.mubr.msk.f32.mxu0 %vm19080_vm0, %v19081_v3  ;;  %15996 = vmatprep.mubr.msk.f32.mxu1 %vm19080_vm0, %v19081_v3 }
 0xad9   : > { %v5218_v53 = vpop.f32.mrb[50].mxu0  ;;  %v5291_v58 = vpop.f32.mrb[50].mxu1 }
 0xada   : > { %v15813_v60 = vpop.f32.mrb[51].mxu0  ;;  %v15842_v55 = vpop.f32.mrb[51].mxu1  ;;  %15990 = vmatpush3.msra.mxu0 %v5218_v53  ;;  %15995 = vmatpush3.msra.mxu1 %v5291_v58 }
 0xadb   : > { %15999 = vmatprep.subr.mxu0 %v19081_v3  ;;  %16004 = vmatprep.subr.mxu1 %v19081_v3 }
 0xaf4   : > { %v20623_v61 = vpop.f32.mrb[52].mxu0  ;;  %v20625_v62 = vpop.f32.mrb[52].mxu1 }
 0xaf5   : > { %v15871_v57 = vpop.f32.mrb[53].mxu0  ;;  %v15900_v63 = vpop.f32.mrb[53].mxu1 }
 0xb0f   : > { %v20627_v0 = vpop.f32.mrb[54].mxu0  ;;  %v20629_v2 = vpop.f32.mrb[54].mxu1 }
 0xb10   : > { %v15929_v4 = vpop.f32.mrb[55].mxu0  ;;  %v15958_v59 = vpop.f32.mrb[55].mxu1 }
 0xb5f   : > { %v5659_v5 = vpop.f32.mrb[56].mxu0 }
 0xb60   : > { %v15963_v6 = vpop.f32.mrb[57].mxu0  ;;  %v6043_v7 = vsel %vm2521_vm5, %v5659_v5, -inf }
 0xb61   : > { %6044 = vmax.xlane.f32.xlu0 %v6043_v7 }
 0xb63   : > { %v5735_v8 = vpop.f32.mrb[58].mxu0 }
 0xb64   : > { %v15968_v9 = vpop.f32.mrb[59].mxu0  ;;  %v6046_v10 = vsel %vm2521_vm5, %v5735_v8, -inf }
 0xb65   : > { %6047 = vmax.xlane.f32.xlu1 %v6046_v10 }
 0xb7a   : > { %v5811_v11 = vpop.f32.mrb[60].mxu0  ;;  %v5887_v12 = vpop.f32.mrb[56].mxu1 }
 0xb7b   : > { %v15973_v13 = vpop.f32.mrb[61].mxu0  ;;  %v15978_v14 = vpop.f32.mrb[57].mxu1  ;;  %v6052_v15 = vsel %vm2521_vm5, %v5887_v12, -inf  ;;  %v6049_v17 = vsel %vm2521_vm5, %v5811_v11, -inf }
 0xb7c   : > { %6053 = vmax.xlane.f32.xlu1 %v6052_v15  ;;  %6050 = vmax.xlane.f32.xlu0 %v6049_v17  ;;  %v13684_v13 = vld [vmem:[%s21703_s2 + $0x38] sm:$0xff]   ;;  %v13685_v14 = vld [vmem:[%s21703_s2 + $0x40] sm:$0xff]  }
 0xb95   : > { %v5963_v18 = vpop.f32.mrb[62].mxu0  ;;  %v6039_v21 = vpop.f32.mrb[58].mxu1 }
 0xb96   : > { %v15983_v22 = vpop.f32.mrb[63].mxu0  ;;  %v15988_v23 = vpop.f32.mrb[59].mxu1  ;;  %v6058_v24 = vsel %vm2521_vm5, %v6039_v21, -inf  ;;  %v6055_v25 = vsel %vm2521_vm5, %v5963_v18, -inf }
 0xb97   : > { %6059 = vmax.xlane.f32.xlu1 %v6058_v24  ;;  %6056 = vmax.xlane.f32.xlu0 %v6055_v25  ;;  %v13688_v23 = vld [vmem:[%s21703_s2 + $0x58] sm:$0xff]   ;;  %v13687_v25 = vld [vmem:[%s21703_s2 + $0x50] sm:$0xff]  }
 0xbee   : > { %v6045_v26 = vpop.xlane.xlu0 %6044 }
 0xbef   : > { %v6061_v27 = vsub.f32 %v5659_v5, %v6045_v26 }
 0xbf1   : > { %v6067_v28 = vmul.f32 1.442695, %v6061_v27 }
 0xbf2   : > { %v6048_v29 = vpop.xlane.xlu1 %6047 }
 0xbf3   : > { %19008 = vpow2.f32 %v6067_v28  ;;  %v6062_v30 = vsub.f32 %v5735_v8, %v6048_v29 }
 0xbf5   : > { %v6069_v31 = vmul.f32 1.442695, %v6062_v30 }
 0xbf7   : > { %19010 = vpow2.f32 %v6069_v31 }
 0xbfd   : > { %v19009_v33 = vpop.eup %19008 }
 0xbfe   : > { %v6079_v35 = vsel %vm2521_vm5, %v19009_v33, 0.0 }
 0xbff   : > { %6080 = vadd.xlane.f32.xlu0 %v6079_v35 }
 0xc01   : > { %v19011_v36 = vpop.eup %19010 }
 0xc02   : > { %v6082_v37 = vsel %vm2521_vm5, %v19011_v36, 0.0 }
 0xc03   : > { %6083 = vadd.xlane.f32.xlu1 %v6082_v37 }
 0xc09   : > { %v6054_v38 = vpop.xlane.xlu1 %6053  ;;  %v6051_v39 = vpop.xlane.xlu0 %6050 }
 0xc0a   : > { %v6064_v19 = vsub.f32 %v5887_v12, %v6054_v38  ;;  %v6063_v40 = vsub.f32 %v5811_v11, %v6051_v39 }
 0xc0c   : > { %v6073_v41 = vmul.f32 1.442695, %v6064_v19  ;;  %v6071_v42 = vmul.f32 1.442695, %v6063_v40 }
 0xc0e   : > { %19012 = vpow2.f32 %v6073_v41 }
 0xc0f   : > { %19014 = vpow2.f32 %v6071_v42 }
 0xc18   : > { %v19013_v43 = vpop.eup %19012 }
 0xc19   : > { %v19015_v44 = vpop.eup %19014  ;;  %v6088_v20 = vsel %vm2521_vm5, %v19013_v43, 0.0 }
 0xc1a   : > { %6089 = vadd.xlane.f32.xlu1 %v6088_v20  ;;  %v6085_v45 = vsel %vm2521_vm5, %v19015_v44, 0.0 }
 0xc1b   : > { %6086 = vadd.xlane.f32.xlu0 %v6085_v45 }
 0xc24   : > { %v6060_v46 = vpop.xlane.xlu1 %6059  ;;  %v6057_v47 = vpop.xlane.xlu0 %6056 }
 0xc25   : > { %v6066_v48 = vsub.f32 %v6039_v21, %v6060_v46  ;;  %v6065_v49 = vsub.f32 %v5963_v18, %v6057_v47  ;;  %v13686_v18 = vld [vmem:[%s21703_s2 + $0x48] sm:$0xff]  }
 0xc27   : > { %v6077_v50 = vmul.f32 1.442695, %v6066_v48  ;;  %v6075_v51 = vmul.f32 1.442695, %v6065_v49 }
 0xc29   : > { %19016 = vpow2.f32 %v6077_v50 }
 0xc2a   : > { %19018 = vpow2.f32 %v6075_v51 }
 0xc33   : > { %v19017_v52 = vpop.eup %19016 }
 0xc34   : > { %v19019_v54 = vpop.eup %19018  ;;  %v6094_v56 = vsel %vm2521_vm5, %v19017_v52, 0.0 }
 0xc35   : > { %6095 = vadd.xlane.f32.xlu1 %v6094_v56  ;;  %v6091_v53 = vsel %vm2521_vm5, %v19019_v54, 0.0 }
 0xc36   : > { %6092 = vadd.xlane.f32.xlu0 %v6091_v53  ;;  %v11598_v53 = vld [vmem:[%s21706_s5 + $0x10] ss:$0 sm:$0xff] }
 0xc8c   : > { %v6081_v58 = vpop.xlane.xlu0 %6080 }
 0xc8d   : > { %19020 = vrcp.f32 %v6081_v58 }
 0xc90   : > { %v6084_v60 = vpop.xlane.xlu1 %6083 }
 0xc91   : > { %19022 = vrcp.f32 %v6084_v60 }
 0xc97   : > { %v19021_v55 = vpop.eup %19020 }
 0xc98   : > { %v6103_v57 = vmul.f32 %v19021_v55, %v19009_v33 }
 0xc9a   : > { %15992 = vmatmul.mubr.msk.f32.vlgmr.msra.gmra.mrb[64].mxu0 %vm2521_vm5, %v6103_v57 }
 0xc9b   : > { %v19023_v63 = vpop.eup %19022  ;;  %16000 = vmatpush3.msra.mxu0 %v20623_v61  ;;  %16001 = vmatprep.mubr.msk.f32.mxu0 %vm19080_vm0, %v19081_v3 }
 0xc9c   : > { %v6104_v4 = vmul.f32 %v19023_v63, %v19011_v36  ;;  %16009 = vmatprep.subr.mxu0 %v19081_v3  ;;  %v18935_v63 = vld [vmem:[%s21704_s3 + $0x64] ss:$8 sps:$4 sm:$0xff]  }
 0xc9e   : > { %15997 = vmatmul.mubr.msk.f32.vlgmr.msra.gmra.mrb[60].mxu1 %vm2521_vm5, %v6104_v4  ;;  %v18937_v4 = vld [vmem:[%s21704_s3 + $0x60] ss:$8 sps:$4 sm:$0xff]  }
 0xc9f   : > { %16005 = vmatpush3.msra.mxu1 %v20625_v62  ;;  %16006 = vmatprep.mubr.msk.f32.mxu1 %vm19080_vm0, %v19081_v3 }
 0xca0   : > { %16014 = vmatprep.subr.mxu1 %v19081_v3 }
 0xca7   : > { %v6090_v59 = vpop.xlane.xlu1 %6089 }
 0xca8   : > { %19024 = vrcp.f32 %v6090_v59  ;;  %v6087_v5 = vpop.xlane.xlu0 %6086 }
 0xca9   : > { %19026 = vrcp.f32 %v6087_v5 }
 0xcb2   : > { %v19025_v61 = vpop.eup %19024 }
 0xcb3   : > { %v19027_v6 = vpop.eup %19026  ;;  %v6106_v7 = vmul.f32 %v19025_v61, %v19013_v43 }
 0xcb4   : > { %v6105_v8 = vmul.f32 %v19027_v6, %v19015_v44 }
 0xcb5   : > { %16007 = vmatmul.mubr.msk.f32.vlgmr.msra.gmra.mrb[62].mxu1 %vm2521_vm5, %v6106_v7 }
 0xcb6   : > { %16002 = vmatmul.mubr.msk.f32.vlgmr.msra.gmra.mrb[66].mxu0 %vm2521_vm5, %v6105_v8  ;;  %16015 = vmatpush3.msra.mxu1 %v20629_v2  ;;  %v18940_v8 = vld [vmem:[%s21704_s3 + $0x70] ss:$8 sps:$4 sm:$0xff]  }
 0xcb7   : > { %16010 = vmatpush3.msra.mxu0 %v20627_v0  ;;  %16011 = vmatprep.mubr.msk.f32.mxu0 %vm19080_vm0, %v19081_v3  ;;  %v13683_v0 = vld [vmem:[%s21703_s2 + $0x30] sm:$0xff]  }
 0xcb8   : > { %16016 = vmatprep.mubr.msk.f32.mxu1 %vm19080_vm0, %v19081_v3  ;;  %17407 = vmatprep.subr.bf16.mxu0 %v19079_v1 }
 0xcb9   : > { %17410 = vmatprep.subr.bf16.mxu1 %v19079_v1 }
 0xcc2   : > { %v6096_v62 = vpop.xlane.xlu1 %6095 }
 0xcc3   : > { %19028 = vrcp.f32 %v6096_v62  ;;  %v6093_v9 = vpop.xlane.xlu0 %6092  ;;  %v18941_v62 = vld [vmem:[%s21704_s3 + $0x84] ss:$8 sps:$4 sm:$0xff]  }
 0xcc4   : > { %19030 = vrcp.f32 %v6093_v9  ;;  %v18943_v9 = vld [vmem:[%s21704_s3 + $0x80] ss:$8 sps:$4 sm:$0xff]  }
 0xccd   : > { %v19029_v10 = vpop.eup %19028 }
 0xcce   : > { %v19031_v11 = vpop.eup %19030  ;;  %v6108_v12 = vmul.f32 %v19029_v10, %v19017_v52  ;;  %v18944_v10 = vld [vmem:[%s21704_s3 + $0x94] ss:$8 sps:$4 sm:$0xff]  }
 0xccf   : > { %v6107_v2 = vmul.f32 %v19031_v11, %v19019_v54  ;;  %v18946_v11 = vld [vmem:[%s21704_s3 + $0x90] ss:$8 sps:$4 sm:$0xff]  }
 0xcd0   : > { %16017 = vmatmul.mubr.msk.f32.vlgmr.msra.gmra.mrb[64].mxu1 %vm2521_vm5, %v6108_v12  ;;  %v18947_v12 = vld [vmem:[%s21704_s3 + $0xa4] ss:$8 sps:$4 sm:$0xff]  }
 0xcd1   : > { %16012 = vmatmul.mubr.msk.f32.vlgmr.msra.gmra.mrb[68].mxu0 %vm2521_vm5, %v6107_v2  ;;  %16030 = vmatprep.mubr.msk.f32.mxu1 %vm19080_vm0, %v19081_v3  ;;  %v18949_v2 = vld [vmem:[%s21704_s3 + $0xa0] ss:$8 sps:$4 sm:$0xff]  }
 0xcd2   : > { %17409 = vmatpush3.bf16.msra.mxu0 %v13683_v0  ;;  %16023 = vmatprep.mubr.msk.f32.mxu0 %vm19080_vm0, %v19081_v3  ;;  %v18950_v0 = vld [vmem:[%s21704_s3 + $0xb4] ss:$8 sps:$4 sm:$0xff]  }
 0xcd3   : > { %17413 = vmatprep.subr.bf16.mxu0 %v19079_v1  ;;  %17412 = vmatpush3.bf16.msra.mxu1 %v13684_v13  ;;  %v18952_v13 = vld [vmem:[%s21704_s3 + $0xb0] ss:$8 sps:$4 sm:$0xff]  }
 0xcd4   : > { %17416 = vmatprep.subr.bf16.mxu1 %v19079_v1 }
 0xd6d   : > { %v6178_v15 = vpop.f32.mrb[64].mxu0 }
 0xd6e   : > { %v15993_v17 = vpop.f32.mrb[65].mxu0  ;;  %16024 = vmatmul.mubr.msk.f32.vlgmr.msra.gmra.mrb[70].mxu0 %vm2064_vm4, %v6178_v15  ;;  %v13689_v15 = vld [vmem:[%s21705_s4 + $0x80] sm:$0xff]  }
 0xd6f   : > { %17415 = vmatpush3.bf16.msra.mxu0 %v13685_v14  ;;  %16037 = vmatprep.mubr.msk.f32.mxu0 %vm19080_vm0, %v19081_v3  ;;  %v13697_v14 = vld [vmem:[%s21705_s4 + $0xc0] sm:$0xff]   ;;  %v13698_v17 = vld [vmem:[%s21705_s4 + $0xc8] sm:$0xff]  }
 0xd70   : > { %17419 = vmatprep.subr.bf16.mxu0 %v19079_v1 }
 0xd71   : > { %v6251_v21 = vpop.f32.mrb[60].mxu1 }
 0xd72   : > { %v15998_v22 = vpop.f32.mrb[61].mxu1  ;;  %16031 = vmatmul.mubr.msk.f32.vlgmr.msra.gmra.mrb[66].mxu1 %vm2064_vm4, %v6251_v21  ;;  %v13699_v21 = vld [vmem:[%s21705_s4 + $0xd0] sm:$0xff]  }
 0xd73   : > { %17418 = vmatpush3.bf16.msra.mxu1 %v13686_v18  ;;  %16044 = vmatprep.mubr.msk.f32.mxu1 %vm19080_vm0, %v19081_v3  ;;  %v13690_v18 = vld [vmem:[%s21705_s4 + $0x88] sm:$0xff]   ;;  %v13691_v22 = vld [vmem:[%s21705_s4 + $0x90] sm:$0xff]  }
 0xd74   : > { %17422 = vmatprep.subr.bf16.mxu1 %v19079_v1 }
 0xd88   : > { %v6397_v24 = vpop.f32.mrb[62].mxu1 }
 0xd89   : > { %v6324_v26 = vpop.f32.mrb[66].mxu0  ;;  %v16008_v27 = vpop.f32.mrb[63].mxu1  ;;  %16045 = vmatmul.mubr.msk.f32.vlgmr.msra.gmra.mrb[68].mxu1 %vm2064_vm4, %v6397_v24  ;;  %v13692_v24 = vld [vmem:[%s21705_s4 + $0x98] sm:$0xff]  }
 0xd8a   : > { %v16003_v28 = vpop.f32.mrb[67].mxu0  ;;  %16038 = vmatmul.mubr.msk.f32.vlgmr.msra.gmra.mrb[72].mxu0 %vm2064_vm4, %v6324_v26  ;;  %17424 = vmatpush3.bf16.msra.mxu1 %v13688_v23  ;;  %v13700_v23 = vld [vmem:[%s21705_s4 + $0xd8] sm:$0xff]   ;;  %v13693_v26 = vld [vmem:[%s21705_s4 + $0xa0] sm:$0xff]   ;;  %v13702_v27 = vld [vmem:[%s21705_s4 + $0xe8] sm:$0xff]  }
 0xd8b   : > { %17421 = vmatpush3.bf16.msra.mxu0 %v13687_v25  ;;  %16051 = vmatprep.mubr.msk.f32.mxu0 %vm19080_vm0, %v19081_v3  ;;  %v13701_v25 = vld [vmem:[%s21705_s4 + $0xe0] sm:$0xff]   ;;  %v13694_v28 = vld [vmem:[%s21705_s4 + $0xa8] sm:$0xff]  }
 0xd8c   : > { %16058 = vmatprep.mubr.msk.f32.mxu1 %vm19080_vm0, %v19081_v3  ;;  %17426 = vmatprep.subr.bf16.mxu0 %v18935_v63 }
 0xd8d   : > { %17450 = vmatprep.subr.bf16.mxu1 %v13697_v14 }
 0xda3   : > { %v6543_v29 = vpop.f32.mrb[64].mxu1 }
 0xda4   : > { %v6470_v30 = vpop.f32.mrb[68].mxu0  ;;  %v16018_v31 = vpop.f32.mrb[65].mxu1  ;;  %16059 = vmatmul.mubr.msk.f32.vlgmr.msra.gmra.mrb[70].mxu1 %vm2064_vm4, %v6543_v29  ;;  %v13703_v29 = vld [vmem:[%s21705_s4 + $0xf0] sm:$0xff]  }
 0xda5   : > { %v16013_v33 = vpop.f32.mrb[69].mxu0  ;;  %16052 = vmatmul.mubr.msk.f32.vlgmr.msra.gmra.mrb[74].mxu0 %vm2064_vm4, %v6470_v30  ;;  %17452 = vmatpush3.bf16.msra.mxu1 %v13689_v15 }
 0xda6   : > { %7159 = vmatprep.mubr.f32.mxu0 %v19081_v3  ;;  %17428 = vmatpush1.bf16.msra.mxu0 %v18937_v4 }
 0xda7   : > { %17454 = vmatprep.subr.bf16.mxu1 %v13698_v17 }
 0xda9   : > { %17456 = vmatpush3.bf16.msra.mxu1 %v13690_v18 }
 0xdaa   : > { %17458 = vmatprep.subr.bf16.mxu1 %v13699_v21 }
 0xdad   : > { %17460 = vmatpush3.bf16.msra.mxu1 %v13691_v22 }
 0xdae   : > { %17462 = vmatprep.subr.bf16.mxu1 %v13700_v23  ;;  %v11648_v23 = vld [vmem:[%s21706_s5 + $0x15] ss:$0 sm:$0xff] }
 0xdb1   : > { %17464 = vmatpush3.bf16.msra.mxu1 %v13692_v24 }
 0xdb2   : > { %17466 = vmatprep.subr.bf16.mxu1 %v13701_v25  ;;  %v11649_v25 = vld [vmem:[%s21706_s5 + $0x16] ss:$0 sm:$0xff] }
 0xdb5   : > { %17468 = vmatpush3.bf16.msra.mxu1 %v13693_v26 }
 0xdb6   : > { %17470 = vmatprep.subr.bf16.mxu1 %v13702_v27 }
 0xdb9   : > { %17472 = vmatpush3.bf16.msra.mxu1 %v13694_v28  ;;  %v18954_v28 = vld [vmem:[%s21702_s1 + $0x7ec] sm:$0xff]  }
 0xdba   : > { %17474 = vmatprep.subr.bf16.mxu1 %v13703_v29  ;;  %v13716_v29 = vld [vmem:[%s21702_s1 + $0x7b8] sm:$0xff]  }
 0xe41   : > { %v6641_v35 = vpop.f32.mrb[70].mxu0 }
 0xe42   : > { %v16025_v36 = vpop.f32.mrb[71].mxu0  ;;  %v7010_v38 = vsel %vm273_vm1, %v6641_v35, 0.0 }
 0xe43   : > { %v11599_v36 = vld [vmem:[%s21706_s5 + $0x11] ss:$0 sm:$0xff] }
 0xe45   : > { %v6714_v37 = vpop.f32.mrb[66].mxu1 }
 0xe46   : > { %v7011_v39 = vsel %vm273_vm1, %v6714_v37, 0.0  ;;  %v16032_v19 = vpop.f32.mrb[67].mxu1 }
 0xe47   : > { %v7012_v40 = vadd.f32 %v7011_v39, %v7010_v38  ;;  %v11600_v38 = vld [vmem:[%s21706_s5 + $0x12] ss:$0 sm:$0xff] }
 0xe5c   : > { %v6860_v41 = vpop.f32.mrb[68].mxu1 }
 0xe5d   : > { %v6787_v42 = vpop.f32.mrb[72].mxu0  ;;  %v16046_v43 = vpop.f32.mrb[69].mxu1  ;;  %v7015_v46 = vsel %vm273_vm1, %v6860_v41, 0.0  ;;  %v13704_v41 = vld [vmem:[%s21705_s4 + $0xf8] sm:$0xff]  }
 0xe5e   : > { %v7013_v44 = vsel %vm273_vm1, %v6787_v42, 0.0  ;;  %v16039_v20 = vpop.f32.mrb[73].mxu0  ;;  %v13696_v42 = vld [vmem:[%s21705_s4 + $0xb8] sm:$0xff]  }
 0xe5f   : > { %v7014_v45 = vadd.f32 %v7013_v44, %v7012_v40  ;;  %v13695_v40 = vld [vmem:[%s21705_s4 + $0xb0] sm:$0xff]  }
 0xe60   : > { %17476 = vmatpush3.bf16.msra.mxu1 %v13695_v40  ;;  %v11613_v43 = vld [vmem:[%s21706_s5 + $0x13] ss:$8 sm:$0x3] }
 0xe61   : > { %v7016_v47 = vadd.f32 %v7015_v46, %v7014_v45  ;;  %17478 = vmatprep.subr.bf16.mxu1 %v13704_v41  ;;  %v7085_v44 = vrot.slane %v11613_v43, %v19969_v32  ;;  %v7089_v20 = vrot.slane %v11613_v43, %v19974_v34  ;;  %v18816_v40 = vld [vmem:[%s21702_s1 + $0x814] sm:$0xff]  ;;  %v13721_v41 = vld [vmem:[%s21702_s1 + $0x7e0] sm:$0xff]   ;;  %v11701_v43 = vld [vmem:[%s21702_s1 + $0x81c] sm:$0x1] }
 0xe64   : > { %17480 = vmatpush3.bf16.msra.mxu1 %v13696_v42  ;;  %v11688_v42 = vld [vmem:[%s21702_s1 + $0x7e8] sm:$0x1] }
 0xe65   : > { %17499 = vmatprep.subr.bf16.mxu1 %v19079_v1 }
 0xe77   : > { %v7006_v48 = vpop.f32.mrb[70].mxu1 }
 0xe78   : > { %v6933_v49 = vpop.f32.mrb[74].mxu0  ;;  %v16060_v50 = vpop.f32.mrb[71].mxu1  ;;  %v7019_v56 = vsel %vm273_vm1, %v7006_v48, 0.0 }
 0xe79   : > { %v7017_v51 = vsel %vm273_vm1, %v6933_v49, 0.0  ;;  %v16053_v52 = vpop.f32.mrb[75].mxu0 }
 0xe7a   : > { %v7018_v54 = vadd.f32 %v7017_v51, %v7016_v47  ;;  %v11647_v52 = vld [vmem:[%s21706_s5 + $0x14] ss:$0 sm:$0xff] }
 0xe7c   : > { %v7020_v58 = vadd.f32 %v7019_v56, %v7018_v54 }
 0xe7e   : > { %v7023_v60 = vadd.f32 %v11598_v53, %v7020_v58 }
 0xe80   : > { %v7024_v55 = vadd.f32 %v7023_v60, %v20049_v16  ;;  %v18938_v16 = vld [vmem:[%s21704_s3 + $0x74] ss:$8 sps:$4 sm:$0xff]  }
 0xe81   : > { %17430 = vmatprep.subr.bf16.mxu0 %v18938_v16  ;;  %v18801_v16 = vld [vmem:[%s21702_s1 + $0x794] sm:$0xff]  }
 0xe82   : > { %v7027_v57 = vsel %vm273_vm1, %v7024_v55, 0.0  ;;  %17432 = vmatpush1.bf16.msra.mxu0 %v18940_v8  ;;  %v13707_v8 = vld [vmem:[%s21702_s1 + $0x760] sm:$0xff]  }
 0xe83   : > { %7028 = vadd.xlane.f32.xlu0 %v7027_v57  ;;  %17434 = vmatprep.subr.bf16.mxu0 %v18941_v62  ;;  %v18953_v57 = vld [vmem:[%s21702_s1 + $0x784] sm:$0xff]   ;;  %v18803_v62 = vld [vmem:[%s21702_s1 + $0x79c] sm:$0xff]  }
 0xe86   : > { %17436 = vmatpush1.bf16.msra.mxu0 %v18943_v9  ;;  %v13708_v9 = vld [vmem:[%s21702_s1 + $0x768] sm:$0xff]  }
 0xe87   : > { %17438 = vmatprep.subr.bf16.mxu0 %v18944_v10  ;;  %v18805_v10 = vld [vmem:[%s21702_s1 + $0x7a4] sm:$0xff]  }
 0xe8a   : > { %17440 = vmatpush1.bf16.msra.mxu0 %v18946_v11  ;;  %v13709_v11 = vld [vmem:[%s21702_s1 + $0x770] sm:$0xff]  }
 0xe8b   : > { %17442 = vmatprep.subr.bf16.mxu0 %v18947_v12  ;;  %v18806_v12 = vld [vmem:[%s21702_s1 + $0x7ac] sm:$0xff] }
 0xe8e   : > { %17444 = vmatpush1.bf16.msra.mxu0 %v18949_v2  ;;  %v13710_v2 = vld [vmem:[%s21702_s1 + $0x778] sm:$0xff]  }
 0xe8f   : > { %17446 = vmatprep.subr.bf16.mxu0 %v18950_v0  ;;  %v11662_v0 = vld [vmem:[%s21702_s1 + $0x780] sm:$0x1] }
 0xe90   : > { %v7414_v14 = vunpack.c.l.bf16 %v11662_v0 }
 0xe92   : > { %17448 = vmatpush1.bf16.msra.mxu0 %v18952_v13  ;;  %v11675_v13 = vld [vmem:[%s21702_s1 + $0x7b4] sm:$0x1] }
 0xe93   : > { %17481 = vmatprep.subr.bf16.mxu0 %v19079_v1  ;;  %v7427_v15 = vunpack.c.l.bf16 %v11675_v13 }
 0xf10   : > { %v7029_v59 = vpop.xlane.xlu0 %7028 }
 0xf11   : > { %v7030_v5 = vmul.f32 0.010416667, %v7029_v59 }
 0xf13   : > { %v7031_v61 = vsub.f32 %v7024_v55, %v7030_v5  ;;  %v13705_v55 = vld [vmem:[%s21702_s1 + $0x750] sm:$0xff]  }
 0xf15   : > { %v7032_v6 = vmul.f32 %v7031_v61, %v7031_v61 }
 0xf17   : > { %v7033_v7 = vsel %vm273_vm1, %v7032_v6, 0.0  ;;  %v18799_v6 = vld [vmem:[%s21702_s1 + $0x78c] sm:$0xff]  }
 0xf18   : > { %7034 = vadd.xlane.f32.xlu1 %v7033_v7  ;;  %v13706_v7 = vld [vmem:[%s21702_s1 + $0x758] sm:$0xff]  }
 0xfa5   : > { %v7035_v30 = vpop.xlane.xlu1 %7034 }
 0xfa6   : > { %v7036_v31 = vmul.f32 0.010416667, %v7035_v30 }
 0xfa8   : > { %v7037_v33 = vadd.f32 1e-05, %v7036_v31  ;;  %v18809_v31 = vld [vmem:[%s21702_s1 + $0x7f4] sm:$0xff]  }
 0xfaa   : > { %19032 = vrsqrt.f32 %v7037_v33  ;;  %v13717_v33 = vld [vmem:[%s21702_s1 + $0x7c0] sm:$0xff]  }
 0xfb4   : > { %v19033_v35 = vpop.eup %19032 }
 0xfb5   : > { %v7039_v37 = vmul.f32 %v19033_v35, %v7031_v61  ;;  %v18811_v35 = vld [vmem:[%s21702_s1 + $0x7fc] sm:$0xff]  }
 0xfb7   : > { %v7040_v39 = vmul.f32 %v11599_v36, %v7039_v37  ;;  %v13718_v36 = vld [vmem:[%s21702_s1 + $0x7c8] sm:$0xff]  }
 0xfb8   : > { %v18813_v37 = vld [vmem:[%s21702_s1 + $0x804] sm:$0xff]  }
 0xfb9   : > { %v7041_v19 = vadd.f32 %v11600_v38, %v7040_v39  ;;  %v13719_v38 = vld [vmem:[%s21702_s1 + $0x7d0] sm:$0xff]  }
 0xfba   : > { %v18815_v39 = vld [vmem:[%s21702_s1 + $0x80c] sm:$0xff]  }
 0xfbb   : > { %11614 = vmatmul.mubr.msk.f32.vlgmr.msra.gmra.mrb[76].mxu0 %vm273_vm1, %v7041_v19 }
 0xfbc   : > { %16087 = vmatprep.mubr.msk.f32.mxu0 %vm19080_vm0, %v19081_v3  ;;  %17483 = vmatpush3.bf16.msra.mxu0 %v13705_v55  ;;  %v11727_v55 = vld [vmem:[%s21702_s1 + $0x884] sm:$0x1] }
 0xfbd   : > { %17484 = vmatprep.subr.bf16.mxu0 %v19079_v1 }
 0xfc0   : > { %17486 = vmatpush3.bf16.msra.mxu0 %v13706_v7  ;;  %v13740_v7 = vld [vmem:[%s21702_s1 + $0x898] sm:$0xff]  }
 0xfc1   : > { %17487 = vmatprep.subr.bf16.mxu0 %v19079_v1 }
 0xfc4   : > { %17489 = vmatpush3.bf16.msra.mxu0 %v13707_v8  ;;  %v13741_v8 = vld [vmem:[%s21702_s1 + $0x8a0] sm:$0xff]  }
 0xfc5   : > { %17490 = vmatprep.subr.bf16.mxu0 %v19079_v1 }
 0xfc8   : > { %17492 = vmatpush3.bf16.msra.mxu0 %v13708_v9  ;;  %v13742_v9 = vld [vmem:[%s21702_s1 + $0x8a8] sm:$0xff]  }
 0xfc9   : > { %17493 = vmatprep.subr.bf16.mxu0 %v19079_v1 }
 0xfcc   : > { %17495 = vmatpush3.bf16.msra.mxu0 %v13709_v11  ;;  %v13743_v11 = vld [vmem:[%s21702_s1 + $0x8b0] sm:$0xff]  }
 0xfcd   : > { %17496 = vmatprep.subr.bf16.mxu0 %v19079_v1 }
 0xfd0   : > { %17498 = vmatpush3.bf16.msra.mxu0 %v13710_v2  ;;  %v11765_v2 = vld [vmem:[%s21702_s1 + $0x8ec] sm:$0x1] }
 0xfd1   : > { %16085 = vmatprep.subr.mxu0 %v19081_v3  ;;  %v8025_v13 = vunpack.c.l.bf16 %v11765_v2  ;;  %v13785_v2 = vld [vmem:[%s21702_s1 + $0xa40] sm:$0xff]  }
 0xfd4   : > { %16086 = vmatpush3.msk.msra.mxu0 %vm435_vm2, %v7414_v14  ;;  %v18957_v14 = vld [vmem:[%s21702_s1 + $0x924] sm:$0xff]  }
 0xfd5   : > { %17517 = vmatprep.subr.bf16.mxu0 %v19079_v1 }
0x108e   : > { %v7161_v45 = vpop.f32.mrb[76].mxu0 }
0x108f   : > { %v7162_v46 = vadd.f32 %v7161_v45, %v7085_v44  ;;  %v7163_v47 = vpop.f32.mrb[77].mxu0  ;;  %v7440_v44 = vunpack.c.l.bf16 %v11688_v42  ;;  %v18955_v45 = vld [vmem:[%s21702_s1 + $0x854] sm:$0xff]   ;;  %v18853_v42 = vld [vmem:[%s21702_s1 + $0x9a4] sm:$0xff]  }
0x1090   : > { %v7164_v48 = vadd.f32 %v7163_v47, %v7089_v20  ;;  %v7453_v20 = vunpack.c.l.bf16 %v11701_v43  ;;  %v18819_v47 = vld [vmem:[%s21702_s1 + $0x85c] sm:$0xff]   ;;  %v13763_v43 = vld [vmem:[%s21702_s1 + $0x970] sm:$0xff]  }
0x1091   : > { %v7166_v50 = vmax.f32 %v7162_v46, 0.0  ;;  %v13727_v46 = vld [vmem:[%s21702_s1 + $0x820] sm:$0xff]  }
0x1092   : > { %v7167_v49 = vmax.f32 %v7164_v48, 0.0  ;;  %v13728_v48 = vld [vmem:[%s21702_s1 + $0x828] sm:$0xff]  }
0x1094   : > { %7298 = vmatprep.mubr.f32.mxu1 %v7167_v49  ;;  %v18821_v49 = vld [vmem:[%s21702_s1 + $0x864] sm:$0xff]  }
0x1095   : > { %7299 = vmatmul.mubr.f32.vlgmr.msra.gmra.mrb[72].mxu1 %v7166_v50  ;;  %v13729_v50 = vld [vmem:[%s21702_s1 + $0x830] sm:$0xff]  }
0x1096   : > { %16116 = vmatprep.mubr.msk.f32.mxu1 %vm19080_vm0, %v19081_v3  ;;  %17501 = vmatpush3.bf16.msra.mxu1 %v18953_v57 }
0x1097   : > { %17502 = vmatprep.subr.bf16.mxu1 %v19079_v1 }
0x109a   : > { %17504 = vmatpush3.bf16.msra.mxu1 %v18799_v6  ;;  %v18831_v6 = vld [vmem:[%s21702_s1 + $0x8cc] sm:$0xff]  }
0x109b   : > { %17505 = vmatprep.subr.bf16.mxu1 %v19079_v1 }
0x109e   : > { %17507 = vmatpush3.bf16.msra.mxu1 %v18801_v16  ;;  %v18833_v16 = vld [vmem:[%s21702_s1 + $0x8d4] sm:$0xff]  }
0x109f   : > { %17508 = vmatprep.subr.bf16.mxu1 %v19079_v1 }
0x10a2   : > { %17510 = vmatpush3.bf16.msra.mxu1 %v18803_v62  ;;  %v18835_v62 = vld [vmem:[%s21702_s1 + $0x8dc] sm:$0xff]  }
0x10a3   : > { %17511 = vmatprep.subr.bf16.mxu1 %v19079_v1 }
0x10a6   : > { %17513 = vmatpush3.bf16.msra.mxu1 %v18805_v10  ;;  %v18836_v10 = vld [vmem:[%s21702_s1 + $0x8e4] sm:$0xff] }
0x10a7   : > { %17514 = vmatprep.subr.bf16.mxu1 %v19079_v1 }
0x10aa   : > { %17516 = vmatpush3.bf16.msra.mxu1 %v18806_v12  ;;  %v11752_v12 = vld [vmem:[%s21702_s1 + $0x8b8] sm:$0x1] }
0x10ab   : > { %16114 = vmatprep.subr.mxu1 %v19081_v3  ;;  %v8012_v0 = vunpack.c.l.bf16 %v11752_v12  ;;  %v18873_v12 = vld [vmem:[%s21702_s1 + $0xa74] sm:$0xff]  }
0x10ae   : > { %16115 = vmatpush3.msk.msra.mxu1 %vm435_vm2, %v7427_v15  ;;  %v13749_v15 = vld [vmem:[%s21702_s1 + $0x8f0] sm:$0xff]  }
0x10af   : > { %17535 = vmatprep.subr.bf16.mxu1 %v19079_v1 }
0x1168   : > { %v14481_v51 = vpop.f32.mrb[72].mxu1 }
0x1169   : > { %v14482_v54 = vpop.f32.mrb[73].mxu1 }
0x116a   : > { %v14483_v56 = vadd.f32 %v14482_v54, %v14481_v51  ;;  %v18823_v51 = vld [vmem:[%s21702_s1 + $0x86c] sm:$0xff]   ;;  %v18825_v54 = vld [vmem:[%s21702_s1 + $0x874] sm:$0xff]  }
0x116c   : > { %v7301_v53 = vadd.f32 %v14483_v56, %v11647_v52  ;;  %v13730_v52 = vld [vmem:[%s21702_s1 + $0x838] sm:$0xff]   ;;  %v13731_v56 = vld [vmem:[%s21702_s1 + $0x840] sm:$0xff]  }
0x116e   : > { %v7304_v58 = vadd.f32 %v7301_v53, %v7041_v19  ;;  %v13720_v19 = vld [vmem:[%s21702_s1 + $0x7d8] sm:$0xff]  }
0x116f   : > { %v18826_v53 = vld [vmem:[%s21702_s1 + $0x87c] sm:$0xff] }
0x1170   : > { %v7307_v60 = vsel %vm273_vm1, %v7304_v58, 0.0 }
0x1171   : > { %7308 = vadd.xlane.f32.xlu0 %v7307_v60  ;;  %v11714_v60 = vld [vmem:[%s21702_s1 + $0x850] sm:$0x1] }
0x1172   : > { %v7466_v57 = vunpack.c.l.bf16 %v11714_v60  ;;  %v18863_v60 = vld [vmem:[%s21702_s1 + $0xa0c] sm:$0xff]  }
0x11fe   : > { %v7309_v63 = vpop.xlane.xlu0 %7308 }
0x11ff   : > { %v7310_v4 = vmul.f32 0.010416667, %v7309_v63  ;;  %v7479_v63 = vunpack.c.l.bf16 %v11727_v55  ;;  %v13774_v55 = vld [vmem:[%s21702_s1 + $0x9d8] sm:$0xff]  }
0x1201   : > { %v7311_v59 = vsub.f32 %v7304_v58, %v7310_v4  ;;  %v13732_v58 = vld [vmem:[%s21702_s1 + $0x848] sm:$0xff]   ;;  %v18956_v4 = vld [vmem:[%s21702_s1 + $0x8bc] sm:$0xff]  }
0x1203   : > { %v7312_v5 = vmul.f32 %v7311_v59, %v7311_v59 }
0x1205   : > { %v7313_v61 = vsel %vm273_vm1, %v7312_v5, 0.0  ;;  %v18829_v5 = vld [vmem:[%s21702_s1 + $0x8c4] sm:$0xff]  }
0x1206   : > { %7314 = vadd.xlane.f32.xlu1 %v7313_v61  ;;  %v13739_v61 = vld [vmem:[%s21702_s1 + $0x890] sm:$0xff]  }
0x1293   : > { %v7315_v17 = vpop.xlane.xlu1 %7314 }
0x1294   : > { %v7316_v18 = vmul.f32 0.010416667, %v7315_v17  ;;  %v18839_v17 = vld [vmem:[%s21702_s1 + $0x92c] sm:$0xff]  }
0x1296   : > { %v7317_v21 = vadd.f32 1e-05, %v7316_v18  ;;  %v13750_v18 = vld [vmem:[%s21702_s1 + $0x8f8] sm:$0xff]  }
0x1298   : > { %19034 = vrsqrt.f32 %v7317_v21  ;;  %v18841_v21 = vld [vmem:[%s21702_s1 + $0x934] sm:$0xff]  }
0x12a2   : > { %v19035_v22 = vpop.eup %19034 }
0x12a3   : > { %v7319_v24 = vmul.f32 %v19035_v22, %v7311_v59  ;;  %v13738_v59 = vld [vmem:[%s21702_s1 + $0x888] sm:$0xff]   ;;  %v13751_v22 = vld [vmem:[%s21702_s1 + $0x900] sm:$0xff]  }
0x12a5   : > { %v7320_v26 = vmul.f32 %v11648_v23, %v7319_v24  ;;  %v18843_v23 = vld [vmem:[%s21702_s1 + $0x93c] sm:$0xff]   ;;  %v13752_v24 = vld [vmem:[%s21702_s1 + $0x908] sm:$0xff]  }
0x12a7   : > { %v20889_v27 = vadd.f32 %v11649_v25, %v7320_v26  ;;  %v18845_v25 = vld [vmem:[%s21702_s1 + $0x944] sm:$0xff]   ;;  %v13753_v26 = vld [vmem:[%s21702_s1 + $0x910] sm:$0xff]  }
0x12a9   : > { %v20899_v30 = vsel %vm273_vm1, %v20889_v27, 1.0 }
0x12aa   : > { %16088 = vmatmul.mubr.msk.f32.vlgmr.msra.gmra.mrb[78].mxu0 %vm431_vm3, %v20899_v30  ;;  %16117 = vmatmul.mubr.msk.f32.vlgmr.msra.gmra.mrb[74].mxu1 %vm431_vm3, %v20899_v30 }
0x12ab   : > { %17519 = vmatpush3.bf16.msra.mxu0 %v13716_v29  ;;  %17537 = vmatpush3.bf16.msra.mxu1 %v18954_v28  ;;  %v18846_v28 = vld [vmem:[%s21702_s1 + $0x94c] sm:$0xff]  ;;  %v13754_v29 = vld [vmem:[%s21702_s1 + $0x918] sm:$0xff]  }
0x12ac   : > { %17520 = vmatprep.subr.bf16.mxu0 %v19079_v1  ;;  %17538 = vmatprep.subr.bf16.mxu1 %v19079_v1 }
0x12ad   : > { %16145 = vmatprep.mubr.msk.f32.mxu0 %vm19080_vm0, %v19081_v3  ;;  %16174 = vmatprep.mubr.msk.f32.mxu1 %vm19080_vm0, %v19081_v3 }
0x12af   : > { %17522 = vmatpush3.bf16.msra.mxu0 %v13717_v33  ;;  %17540 = vmatpush3.bf16.msra.mxu1 %v18809_v31  ;;  %v11778_v31 = vld [vmem:[%s21702_s1 + $0x920] sm:$0x1]  ;;  %v11791_v33 = vld [vmem:[%s21702_s1 + $0x954] sm:$0x1] }
0x12b0   : > { %17523 = vmatprep.subr.bf16.mxu0 %v19079_v1  ;;  %17541 = vmatprep.subr.bf16.mxu1 %v19079_v1 }
0x12b3   : > { %17525 = vmatpush3.bf16.msra.mxu0 %v13718_v36  ;;  %17543 = vmatpush3.bf16.msra.mxu1 %v18811_v35  ;;  %v8038_v35 = vunpack.c.l.bf16 %v11778_v31  ;;  %v8051_v36 = vunpack.c.l.bf16 %v11791_v33  ;;  %v18883_v31 = vld [vmem:[%s21702_s1 + $0xadc] sm:$0xff]   ;;  %v13796_v33 = vld [vmem:[%s21702_s1 + $0xaa8] sm:$0xff]  }
0x12b4   : > { %17526 = vmatprep.subr.bf16.mxu0 %v19079_v1  ;;  %17544 = vmatprep.subr.bf16.mxu1 %v19079_v1 }
0x12b7   : > { %17528 = vmatpush3.bf16.msra.mxu0 %v13719_v38  ;;  %17546 = vmatpush3.bf16.msra.mxu1 %v18813_v37  ;;  %v18958_v37 = vld [vmem:[%s21702_s1 + $0x98c] sm:$0xff]   ;;  %v13760_v38 = vld [vmem:[%s21702_s1 + $0x958] sm:$0xff]  }
0x12b8   : > { %17529 = vmatprep.subr.bf16.mxu0 %v19079_v1  ;;  %17547 = vmatprep.subr.bf16.mxu1 %v19079_v1 }
0x12bb   : > { %17531 = vmatpush3.bf16.msra.mxu0 %v13720_v19  ;;  %17549 = vmatpush3.bf16.msra.mxu1 %v18815_v39  ;;  %v18849_v39 = vld [vmem:[%s21702_s1 + $0x994] sm:$0xff]   ;;  %v13761_v19 = vld [vmem:[%s21702_s1 + $0x960] sm:$0xff]  }
0x12bc   : > { %17532 = vmatprep.subr.bf16.mxu0 %v19079_v1  ;;  %17550 = vmatprep.subr.bf16.mxu1 %v19079_v1 }
0x12bf   : > { %17534 = vmatpush3.bf16.msra.mxu0 %v13721_v41  ;;  %17552 = vmatpush3.bf16.msra.mxu1 %v18816_v40  ;;  %v18851_v40 = vld [vmem:[%s21702_s1 + $0x99c] sm:$0xff]   ;;  %v13762_v41 = vld [vmem:[%s21702_s1 + $0x968] sm:$0xff]  }
0x12c0   : > { %16143 = vmatprep.subr.mxu0 %v19081_v3  ;;  %16172 = vmatprep.subr.mxu1 %v19081_v3 }
0x12c3   : > { %16144 = vmatpush3.msk.msra.mxu0 %vm435_vm2, %v7440_v44  ;;  %16173 = vmatpush3.msk.msra.mxu1 %vm435_vm2, %v7453_v20  ;;  %v18855_v44 = vld [vmem:[%s21702_s1 + $0x9ac] sm:$0xff]   ;;  %v13764_v20 = vld [vmem:[%s21702_s1 + $0x978] sm:$0xff]  }
0x12c4   : > { %16146 = vmatmul.mubr.msk.f32.vlgmr.msra.gmra.mrb[80].mxu0 %vm431_vm3, %v20899_v30  ;;  %16175 = vmatmul.mubr.msk.f32.vlgmr.msra.gmra.mrb[76].mxu1 %vm431_vm3, %v20899_v30 }
0x12c5   : > { %17553 = vmatprep.subr.bf16.mxu0 %v19079_v1  ;;  %17571 = vmatprep.subr.bf16.mxu1 %v19079_v1 }
0x12c6   : > { %17555 = vmatpush3.bf16.msra.mxu0 %v13727_v46  ;;  %17573 = vmatpush3.bf16.msra.mxu1 %v18955_v45  ;;  %v18856_v45 = vld [vmem:[%s21702_s1 + $0x9b4] sm:$0xff]  ;;  %v13765_v46 = vld [vmem:[%s21702_s1 + $0x980] sm:$0xff]  }
0x12c7   : > { %17556 = vmatprep.subr.bf16.mxu0 %v19079_v1  ;;  %17574 = vmatprep.subr.bf16.mxu1 %v19079_v1 }
0x12c8   : > { %16203 = vmatprep.mubr.msk.f32.mxu0 %vm19080_vm0, %v19081_v3  ;;  %16232 = vmatprep.mubr.msk.f32.mxu1 %vm19080_vm0, %v19081_v3 }
0x12ca   : > { %17558 = vmatpush3.bf16.msra.mxu0 %v13728_v48  ;;  %17576 = vmatpush3.bf16.msra.mxu1 %v18819_v47  ;;  %v11804_v47 = vld [vmem:[%s21702_s1 + $0x988] sm:$0x1]  ;;  %v11817_v48 = vld [vmem:[%s21702_s1 + $0x9bc] sm:$0x1] }
0x12cb   : > { %17559 = vmatprep.subr.bf16.mxu0 %v19079_v1  ;;  %17577 = vmatprep.subr.bf16.mxu1 %v19079_v1 }
0x12ce   : > { %17561 = vmatpush3.bf16.msra.mxu0 %v13729_v50  ;;  %17579 = vmatpush3.bf16.msra.mxu1 %v18821_v49  ;;  %v8064_v49 = vunpack.c.l.bf16 %v11804_v47  ;;  %v8077_v50 = vunpack.c.l.bf16 %v11817_v48 }
0x12cf   : > { %17562 = vmatprep.subr.bf16.mxu0 %v19079_v1  ;;  %17580 = vmatprep.subr.bf16.mxu1 %v19079_v1 }
0x12d2   : > { %17564 = vmatpush3.bf16.msra.mxu0 %v13730_v52  ;;  %17582 = vmatpush3.bf16.msra.mxu1 %v18823_v51  ;;  %v18959_v51 = vld [vmem:[%s21702_s1 + $0x9f4] sm:$0xff]   ;;  %v13771_v52 = vld [vmem:[%s21702_s1 + $0x9c0] sm:$0xff]  }
0x12d3   : > { %17565 = vmatprep.subr.bf16.mxu0 %v19079_v1  ;;  %17583 = vmatprep.subr.bf16.mxu1 %v19079_v1 }
0x12d6   : > { %17567 = vmatpush3.bf16.msra.mxu0 %v13731_v56  ;;  %17585 = vmatpush3.bf16.msra.mxu1 %v18825_v54  ;;  %v18859_v54 = vld [vmem:[%s21702_s1 + $0x9fc] sm:$0xff]   ;;  %v13772_v56 = vld [vmem:[%s21702_s1 + $0x9c8] sm:$0xff]  }
0x12d7   : > { %17568 = vmatprep.subr.bf16.mxu0 %v19079_v1  ;;  %17586 = vmatprep.subr.bf16.mxu1 %v19079_v1 }
0x12da   : > { %17570 = vmatpush3.bf16.msra.mxu0 %v13732_v58  ;;  %17588 = vmatpush3.bf16.msra.mxu1 %v18826_v53  ;;  %v18861_v53 = vld [vmem:[%s21702_s1 + $0xa04] sm:$0xff]   ;;  %v13773_v58 = vld [vmem:[%s21702_s1 + $0x9d0] sm:$0xff]  }
0x12db   : > { %16201 = vmatprep.subr.mxu0 %v19081_v3  ;;  %16230 = vmatprep.subr.mxu1 %v19081_v3 }
0x12de   : > { %16202 = vmatpush3.msk.msra.mxu0 %vm435_vm2, %v7466_v57  ;;  %16231 = vmatpush3.msk.msra.mxu1 %vm435_vm2, %v7479_v63  ;;  %v18865_v57 = vld [vmem:[%s21702_s1 + $0xa14] sm:$0xff]   ;;  %v13775_v63 = vld [vmem:[%s21702_s1 + $0x9e0] sm:$0xff]  }
0x12df   : > { %16204 = vmatmul.mubr.msk.f32.vlgmr.msra.gmra.mrb[82].mxu0 %vm431_vm3, %v20899_v30  ;;  %16233 = vmatmul.mubr.msk.f32.vlgmr.msra.gmra.mrb[78].mxu1 %vm431_vm3, %v20899_v30 }
0x12e0   : > { %17589 = vmatprep.subr.bf16.mxu0 %v19079_v1  ;;  %17607 = vmatprep.subr.bf16.mxu1 %v19079_v1 }
0x12e1   : > { %17591 = vmatpush3.bf16.msra.mxu0 %v13738_v59  ;;  %17609 = vmatpush3.bf16.msra.mxu1 %v18956_v4  ;;  %v18866_v4 = vld [vmem:[%s21702_s1 + $0xa1c] sm:$0xff]  ;;  %v13776_v59 = vld [vmem:[%s21702_s1 + $0x9e8] sm:$0xff]  }
0x12e2   : > { %17592 = vmatprep.subr.bf16.mxu0 %v19079_v1  ;;  %17610 = vmatprep.subr.bf16.mxu1 %v19079_v1 }
0x12e3   : > { %16261 = vmatprep.mubr.msk.f32.mxu0 %vm19080_vm0, %v19081_v3  ;;  %16290 = vmatprep.mubr.msk.f32.mxu1 %vm19080_vm0, %v19081_v3 }
0x12e5   : > { %17594 = vmatpush3.bf16.msra.mxu0 %v13739_v61  ;;  %17612 = vmatpush3.bf16.msra.mxu1 %v18829_v5  ;;  %v11842_v5 = vld [vmem:[%s21702_s1 + $0x9f0] sm:$0x1]  ;;  %v11855_v61 = vld [vmem:[%s21702_s1 + $0xa24] sm:$0x1] }
0x12e6   : > { %17595 = vmatprep.subr.bf16.mxu0 %v19079_v1  ;;  %17613 = vmatprep.subr.bf16.mxu1 %v19079_v1 }
0x12e9   : > { %17597 = vmatpush3.bf16.msra.mxu0 %v13740_v7  ;;  %17615 = vmatpush3.bf16.msra.mxu1 %v18831_v6  ;;  %v8607_v6 = vunpack.c.l.bf16 %v11842_v5  ;;  %v8620_v7 = vunpack.c.l.bf16 %v11855_v61 }
0x12ea   : > { %17598 = vmatprep.subr.bf16.mxu0 %v19079_v1  ;;  %17616 = vmatprep.subr.bf16.mxu1 %v19079_v1 }
0x12ed   : > { %17600 = vmatpush3.bf16.msra.mxu0 %v13741_v8  ;;  %17618 = vmatpush3.bf16.msra.mxu1 %v18833_v16  ;;  %v18960_v16 = vld [vmem:[%s21702_s1 + $0xa5c] sm:$0xff]   ;;  %v13782_v8 = vld [vmem:[%s21702_s1 + $0xa28] sm:$0xff]  }
0x12ee   : > { %17601 = vmatprep.subr.bf16.mxu0 %v19079_v1  ;;  %17619 = vmatprep.subr.bf16.mxu1 %v19079_v1 }
0x12f1   : > { %17603 = vmatpush3.bf16.msra.mxu0 %v13742_v9  ;;  %17621 = vmatpush3.bf16.msra.mxu1 %v18835_v62  ;;  %v18869_v62 = vld [vmem:[%s21702_s1 + $0xa64] sm:$0xff]   ;;  %v13783_v9 = vld [vmem:[%s21702_s1 + $0xa30] sm:$0xff]  }
0x12f2   : > { %17604 = vmatprep.subr.bf16.mxu0 %v19079_v1  ;;  %17622 = vmatprep.subr.bf16.mxu1 %v19079_v1 }
0x12f5   : > { %17606 = vmatpush3.bf16.msra.mxu0 %v13743_v11  ;;  %17624 = vmatpush3.bf16.msra.mxu1 %v18836_v10  ;;  %v18871_v10 = vld [vmem:[%s21702_s1 + $0xa6c] sm:$0xff]   ;;  %v13784_v11 = vld [vmem:[%s21702_s1 + $0xa38] sm:$0xff]  }
0x12f6   : > { %16259 = vmatprep.subr.mxu0 %v19081_v3  ;;  %16288 = vmatprep.subr.mxu1 %v19081_v3 }
0x12f9   : > { %16260 = vmatpush3.msk.msra.mxu0 %vm435_vm2, %v8012_v0  ;;  %16289 = vmatpush3.msk.msra.mxu1 %vm435_vm2, %v8025_v13  ;;  %v18875_v0 = vld [vmem:[%s21702_s1 + $0xa7c] sm:$0xff]   ;;  %v13786_v13 = vld [vmem:[%s21702_s1 + $0xa48] sm:$0xff]  }
0x12fa   : > { %16262 = vmatmul.mubr.msk.f32.vlgmr.msra.gmra.mrb[84].mxu0 %vm431_vm3, %v20899_v30  ;;  %16291 = vmatmul.mubr.msk.f32.vlgmr.msra.gmra.mrb[80].mxu1 %vm431_vm3, %v20899_v30 }
0x12fb   : > { %17625 = vmatprep.subr.bf16.mxu0 %v19079_v1  ;;  %17643 = vmatprep.subr.bf16.mxu1 %v19079_v1 }
0x12fc   : > { %17627 = vmatpush3.bf16.msra.mxu0 %v13749_v15  ;;  %17645 = vmatpush3.bf16.msra.mxu1 %v18957_v14  ;;  %v18876_v14 = vld [vmem:[%s21702_s1 + $0xa84] sm:$0xff]  ;;  %v13787_v15 = vld [vmem:[%s21702_s1 + $0xa50] sm:$0xff]  }
0x12fd   : > { %17628 = vmatprep.subr.bf16.mxu0 %v19079_v1  ;;  %17646 = vmatprep.subr.bf16.mxu1 %v19079_v1 }
0x12fe   : > { %16319 = vmatprep.mubr.msk.f32.mxu0 %vm19080_vm0, %v19081_v3  ;;  %16348 = vmatprep.mubr.msk.f32.mxu1 %vm19080_vm0, %v19081_v3 }
0x1300   : > { %17630 = vmatpush3.bf16.msra.mxu0 %v13750_v18  ;;  %17648 = vmatpush3.bf16.msra.mxu1 %v18839_v17  ;;  %v11868_v17 = vld [vmem:[%s21702_s1 + $0xa58] sm:$0x1]  ;;  %v11881_v18 = vld [vmem:[%s21702_s1 + $0xa8c] sm:$0x1] }
0x1301   : > { %17631 = vmatprep.subr.bf16.mxu0 %v19079_v1  ;;  %17649 = vmatprep.subr.bf16.mxu1 %v19079_v1 }
0x1304   : > { %17633 = vmatpush3.bf16.msra.mxu0 %v13751_v22  ;;  %17651 = vmatpush3.bf16.msra.mxu1 %v18841_v21  ;;  %v8633_v21 = vunpack.c.l.bf16 %v11868_v17  ;;  %v8646_v22 = vunpack.c.l.bf16 %v11881_v18 }
0x1305   : > { %17634 = vmatprep.subr.bf16.mxu0 %v19079_v1  ;;  %17652 = vmatprep.subr.bf16.mxu1 %v19079_v1 }
0x1308   : > { %17636 = vmatpush3.bf16.msra.mxu0 %v13752_v24  ;;  %17654 = vmatpush3.bf16.msra.mxu1 %v18843_v23  ;;  %v18961_v23 = vld [vmem:[%s21702_s1 + $0xac4] sm:$0xff]   ;;  %v13793_v24 = vld [vmem:[%s21702_s1 + $0xa90] sm:$0xff]  }
0x1309   : > { %17637 = vmatprep.subr.bf16.mxu0 %v19079_v1  ;;  %17655 = vmatprep.subr.bf16.mxu1 %v19079_v1 }
0x130c   : > { %17639 = vmatpush3.bf16.msra.mxu0 %v13753_v26  ;;  %17657 = vmatpush3.bf16.msra.mxu1 %v18845_v25  ;;  %v18879_v25 = vld [vmem:[%s21702_s1 + $0xacc] sm:$0xff]   ;;  %v13794_v26 = vld [vmem:[%s21702_s1 + $0xa98] sm:$0xff]  }
0x130d   : > { %17640 = vmatprep.subr.bf16.mxu0 %v19079_v1  ;;  %17658 = vmatprep.subr.bf16.mxu1 %v19079_v1 }
0x1310   : > { %17642 = vmatpush3.bf16.msra.mxu0 %v13754_v29  ;;  %17660 = vmatpush3.bf16.msra.mxu1 %v18846_v28  ;;  %v18881_v28 = vld [vmem:[%s21702_s1 + $0xad4] sm:$0xff]   ;;  %v13795_v29 = vld [vmem:[%s21702_s1 + $0xaa0] sm:$0xff]  }
0x1311   : > { %16317 = vmatprep.subr.mxu0 %v19081_v3  ;;  %16346 = vmatprep.subr.mxu1 %v19081_v3 }
0x1314   : > { %16318 = vmatpush3.msk.msra.mxu0 %vm435_vm2, %v8038_v35  ;;  %16347 = vmatpush3.msk.msra.mxu1 %vm435_vm2, %v8051_v36  ;;  %v18885_v35 = vld [vmem:[%s21702_s1 + $0xae4] sm:$0xff]   ;;  %v13797_v36 = vld [vmem:[%s21702_s1 + $0xab0] sm:$0xff]  }
0x1315   : > { %16320 = vmatmul.mubr.msk.f32.vlgmr.msra.gmra.mrb[86].mxu0 %vm431_vm3, %v20899_v30  ;;  %16349 = vmatmul.mubr.msk.f32.vlgmr.msra.gmra.mrb[82].mxu1 %vm431_vm3, %v20899_v30 }
0x1316   : > { %17661 = vmatprep.subr.bf16.mxu0 %v19079_v1  ;;  %17679 = vmatprep.subr.bf16.mxu1 %v19079_v1 }
0x1317   : > { %17663 = vmatpush3.bf16.msra.mxu0 %v13760_v38  ;;  %17681 = vmatpush3.bf16.msra.mxu1 %v18958_v37  ;;  %v18886_v37 = vld [vmem:[%s21702_s1 + $0xaec] sm:$0xff]  ;;  %v13798_v38 = vld [vmem:[%s21702_s1 + $0xab8] sm:$0xff]  }
0x1318   : > { %17664 = vmatprep.subr.bf16.mxu0 %v19079_v1  ;;  %17682 = vmatprep.subr.bf16.mxu1 %v19079_v1 }
0x1319   : > { %16377 = vmatprep.mubr.msk.f32.mxu0 %vm19080_vm0, %v19081_v3  ;;  %16406 = vmatprep.mubr.msk.f32.mxu1 %vm19080_vm0, %v19081_v3 }
0x131b   : > { %17666 = vmatpush3.bf16.msra.mxu0 %v13761_v19  ;;  %17684 = vmatpush3.bf16.msra.mxu1 %v18849_v39  ;;  %v11894_v39 = vld [vmem:[%s21702_s1 + $0xac0] sm:$0x1]  ;;  %v11907_v19 = vld [vmem:[%s21702_s1 + $0xaf4] sm:$0x1] }
0x131c   : > { %17667 = vmatprep.subr.bf16.mxu0 %v19079_v1  ;;  %17685 = vmatprep.subr.bf16.mxu1 %v19079_v1 }
0x131f   : > { %17669 = vmatpush3.bf16.msra.mxu0 %v13762_v41  ;;  %17687 = vmatpush3.bf16.msra.mxu1 %v18851_v40  ;;  %v8659_v40 = vunpack.c.l.bf16 %v11894_v39  ;;  %v8672_v41 = vunpack.c.l.bf16 %v11907_v19 }
0x1320   : > { %17670 = vmatprep.subr.bf16.mxu0 %v19079_v1  ;;  %17688 = vmatprep.subr.bf16.mxu1 %v19079_v1 }
0x1323   : > { %17672 = vmatpush3.bf16.msra.mxu0 %v13763_v43  ;;  %17690 = vmatpush3.bf16.msra.mxu1 %v18853_v42 }
0x1324   : > { %17673 = vmatprep.subr.bf16.mxu0 %v19079_v1  ;;  %17691 = vmatprep.subr.bf16.mxu1 %v19079_v1 }
0x1327   : > { %17675 = vmatpush3.bf16.msra.mxu0 %v13764_v20  ;;  %17693 = vmatpush3.bf16.msra.mxu1 %v18855_v44 }
0x1328   : > { %17676 = vmatprep.subr.bf16.mxu0 %v19079_v1  ;;  %17694 = vmatprep.subr.bf16.mxu1 %v19079_v1 }
0x132b   : > { %17678 = vmatpush3.bf16.msra.mxu0 %v13765_v46  ;;  %17696 = vmatpush3.bf16.msra.mxu1 %v18856_v45 }
0x132c   : > { %16375 = vmatprep.subr.mxu0 %v19081_v3  ;;  %16404 = vmatprep.subr.mxu1 %v19081_v3 }
0x132f   : > { %16376 = vmatpush3.msk.msra.mxu0 %vm435_vm2, %v8064_v49  ;;  %16405 = vmatpush3.msk.msra.mxu1 %vm435_vm2, %v8077_v50 }
0x1330   : > { %16378 = vmatmul.mubr.msk.f32.vlgmr.msra.gmra.mrb[88].mxu0 %vm431_vm3, %v20899_v30  ;;  %16407 = vmatmul.mubr.msk.f32.vlgmr.msra.gmra.mrb[84].mxu1 %vm431_vm3, %v20899_v30 }
0x1331   : > { %17697 = vmatprep.subr.bf16.mxu0 %v19079_v1  ;;  %17715 = vmatprep.subr.bf16.mxu1 %v19079_v1 }
0x1332   : > { %17699 = vmatpush3.bf16.msra.mxu0 %v13771_v52  ;;  %17717 = vmatpush3.bf16.msra.mxu1 %v18959_v51 }
0x1333   : > { %17700 = vmatprep.subr.bf16.mxu0 %v19079_v1  ;;  %17718 = vmatprep.subr.bf16.mxu1 %v19079_v1 }
0x1334   : > { %16435 = vmatprep.mubr.msk.f32.mxu0 %vm19080_vm0, %v19081_v3  ;;  %16464 = vmatprep.mubr.msk.f32.mxu1 %vm19080_vm0, %v19081_v3 }
0x1336   : > { %17702 = vmatpush3.bf16.msra.mxu0 %v13772_v56  ;;  %17720 = vmatpush3.bf16.msra.mxu1 %v18859_v54 }
0x1337   : > { %17703 = vmatprep.subr.bf16.mxu0 %v19079_v1  ;;  %17721 = vmatprep.subr.bf16.mxu1 %v19079_v1 }
0x133a   : > { %17705 = vmatpush3.bf16.msra.mxu0 %v13773_v58  ;;  %17723 = vmatpush3.bf16.msra.mxu1 %v18861_v53 }
0x133b   : > { %17706 = vmatprep.subr.bf16.mxu0 %v19079_v1  ;;  %17724 = vmatprep.subr.bf16.mxu1 %v19079_v1 }
0x133e   : > { %17708 = vmatpush3.bf16.msra.mxu0 %v13774_v55  ;;  %17726 = vmatpush3.bf16.msra.mxu1 %v18863_v60 }
0x133f   : > { %17709 = vmatprep.subr.bf16.mxu0 %v19079_v1  ;;  %17727 = vmatprep.subr.bf16.mxu1 %v19079_v1 }
0x1342   : > { %17711 = vmatpush3.bf16.msra.mxu0 %v13775_v63  ;;  %17729 = vmatpush3.bf16.msra.mxu1 %v18865_v57 }
0x1343   : > { %17712 = vmatprep.subr.bf16.mxu0 %v19079_v1  ;;  %17730 = vmatprep.subr.bf16.mxu1 %v19079_v1 }
0x1346   : > { %17714 = vmatpush3.bf16.msra.mxu0 %v13776_v59  ;;  %17732 = vmatpush3.bf16.msra.mxu1 %v18866_v4 }
0x1347   : > { %16433 = vmatprep.subr.mxu0 %v19081_v3  ;;  %16462 = vmatprep.subr.mxu1 %v19081_v3 }
0x134a   : > { %16434 = vmatpush3.msk.msra.mxu0 %vm435_vm2, %v8607_v6  ;;  %16463 = vmatpush3.msk.msra.mxu1 %vm435_vm2, %v8620_v7 }
0x134b   : > { %16436 = vmatmul.mubr.msk.f32.vlgmr.msra.gmra.mrb[90].mxu0 %vm431_vm3, %v20899_v30  ;;  %16465 = vmatmul.mubr.msk.f32.vlgmr.msra.gmra.mrb[86].mxu1 %vm431_vm3, %v20899_v30 }
0x134c   : > { %17733 = vmatprep.subr.bf16.mxu0 %v19079_v1  ;;  %17751 = vmatprep.subr.bf16.mxu1 %v19079_v1 }
0x134d   : > { %17735 = vmatpush3.bf16.msra.mxu0 %v13782_v8  ;;  %17753 = vmatpush3.bf16.msra.mxu1 %v18960_v16 }
0x134e   : > { %17736 = vmatprep.subr.bf16.mxu0 %v19079_v1  ;;  %17754 = vmatprep.subr.bf16.mxu1 %v19079_v1 }
0x134f   : > { %16493 = vmatprep.mubr.msk.f32.mxu0 %vm19080_vm0, %v19081_v3  ;;  %16522 = vmatprep.mubr.msk.f32.mxu1 %vm19080_vm0, %v19081_v3 }
0x1351   : > { %17738 = vmatpush3.bf16.msra.mxu0 %v13783_v9  ;;  %17756 = vmatpush3.bf16.msra.mxu1 %v18869_v62 }
0x1352   : > { %17739 = vmatprep.subr.bf16.mxu0 %v19079_v1  ;;  %17757 = vmatprep.subr.bf16.mxu1 %v19079_v1 }
0x1355   : > { %17741 = vmatpush3.bf16.msra.mxu0 %v13784_v11  ;;  %17759 = vmatpush3.bf16.msra.mxu1 %v18871_v10 }
0x1356   : > { %17742 = vmatprep.subr.bf16.mxu0 %v19079_v1  ;;  %17760 = vmatprep.subr.bf16.mxu1 %v19079_v1 }
0x1359   : > { %17744 = vmatpush3.bf16.msra.mxu0 %v13785_v2  ;;  %17762 = vmatpush3.bf16.msra.mxu1 %v18873_v12 }
0x135a   : > { %17745 = vmatprep.subr.bf16.mxu0 %v19079_v1  ;;  %17763 = vmatprep.subr.bf16.mxu1 %v19079_v1 }
0x135d   : > { %17747 = vmatpush3.bf16.msra.mxu0 %v13786_v13  ;;  %17765 = vmatpush3.bf16.msra.mxu1 %v18875_v0 }
0x135e   : > { %17748 = vmatprep.subr.bf16.mxu0 %v19079_v1  ;;  %17766 = vmatprep.subr.bf16.mxu1 %v19079_v1 }
0x1361   : > { %17750 = vmatpush3.bf16.msra.mxu0 %v13787_v15  ;;  %17768 = vmatpush3.bf16.msra.mxu1 %v18876_v14 }
0x1362   : > { %16491 = vmatprep.subr.mxu0 %v19081_v3  ;;  %16520 = vmatprep.subr.mxu1 %v19081_v3 }
0x1365   : > { %16492 = vmatpush3.msk.msra.mxu0 %vm435_vm2, %v8633_v21  ;;  %16521 = vmatpush3.msk.msra.mxu1 %vm435_vm2, %v8646_v22 }
0x1366   : > { %16494 = vmatmul.mubr.msk.f32.vlgmr.msra.gmra.mrb[92].mxu0 %vm431_vm3, %v20899_v30  ;;  %16523 = vmatmul.mubr.msk.f32.vlgmr.msra.gmra.mrb[88].mxu1 %vm431_vm3, %v20899_v30 }
0x1367   : > { %17769 = vmatprep.subr.bf16.mxu0 %v19079_v1  ;;  %17787 = vmatprep.subr.bf16.mxu1 %v19079_v1 }
0x1368   : > { %17771 = vmatpush3.bf16.msra.mxu0 %v13793_v24  ;;  %17789 = vmatpush3.bf16.msra.mxu1 %v18961_v23 }
0x1369   : > { %17772 = vmatprep.subr.bf16.mxu0 %v19079_v1  ;;  %17790 = vmatprep.subr.bf16.mxu1 %v19079_v1 }
0x136a   : > { %16551 = vmatprep.mubr.msk.f32.mxu0 %vm19080_vm0, %v19081_v3  ;;  %16580 = vmatprep.mubr.msk.f32.mxu1 %vm19080_vm0, %v19081_v3 }
0x136c   : > { %17774 = vmatpush3.bf16.msra.mxu0 %v13794_v26  ;;  %17792 = vmatpush3.bf16.msra.mxu1 %v18879_v25 }
0x136d   : > { %17775 = vmatprep.subr.bf16.mxu0 %v19079_v1  ;;  %17793 = vmatprep.subr.bf16.mxu1 %v19079_v1 }
0x1370   : > { %17777 = vmatpush3.bf16.msra.mxu0 %v13795_v29  ;;  %17795 = vmatpush3.bf16.msra.mxu1 %v18881_v28 }
0x1371   : > { %17778 = vmatprep.subr.bf16.mxu0 %v19079_v1  ;;  %17796 = vmatprep.subr.bf16.mxu1 %v19079_v1 }
0x1374   : > { %17780 = vmatpush3.bf16.msra.mxu0 %v13796_v33  ;;  %17798 = vmatpush3.bf16.msra.mxu1 %v18883_v31 }
0x1375   : > { %17781 = vmatprep.subr.bf16.mxu0 %v19079_v1  ;;  %17799 = vmatprep.subr.bf16.mxu1 %v19079_v1 }
0x1378   : > { %17783 = vmatpush3.bf16.msra.mxu0 %v13797_v36  ;;  %17801 = vmatpush3.bf16.msra.mxu1 %v18885_v35 }
0x1379   : > { %17784 = vmatprep.subr.bf16.mxu0 %v19079_v1  ;;  %17802 = vmatprep.subr.bf16.mxu1 %v19079_v1 }
0x137c   : > { %17786 = vmatpush3.bf16.msra.mxu0 %v13798_v38  ;;  %17804 = vmatpush3.bf16.msra.mxu1 %v18886_v37 }
0x137d   : > { %16549 = vmatprep.subr.mxu0 %v19081_v3  ;;  %16578 = vmatprep.subr.mxu1 %v19081_v3  ;;  %v7552_v42 = vpop.f32.mrb[78].mxu0  ;;  %v7625_v43 = vpop.f32.mrb[74].mxu1 }
0x137e   : > { %v16089_v44 = vpop.f32.mrb[79].mxu0  ;;  %v16118_v20 = vpop.f32.mrb[75].mxu1 }
0x1380   : > { %16550 = vmatpush3.msk.msra.mxu0 %vm435_vm2, %v8659_v40  ;;  %16579 = vmatpush3.msk.msra.mxu1 %vm435_vm2, %v8672_v41 }
0x1381   : > { %16552 = vmatmul.mubr.msk.f32.vlgmr.msra.gmra.mrb[94].mxu0 %vm431_vm3, %v20899_v30  ;;  %16581 = vmatmul.mubr.msk.f32.vlgmr.msra.gmra.mrb[90].mxu1 %vm431_vm3, %v20899_v30 }
0x1382   : > { %16583 = vmatprep.subr.mxu0 %v19081_v3  ;;  %16585 = vmatprep.mubr.msk.f32.mxu0 %vm19080_vm0, %v19081_v3 }
0x1383   : > { %16598 = vmatprep.subr.mxu1 %v19081_v3  ;;  %16600 = vmatprep.mubr.msk.f32.mxu1 %vm19080_vm0, %v19081_v3 }
0x1397   : > { %v7698_v45 = vpop.f32.mrb[80].mxu0  ;;  %v7771_v46 = vpop.f32.mrb[76].mxu1 }
0x1398   : > { %v16147_v47 = vpop.f32.mrb[81].mxu0  ;;  %v16176_v48 = vpop.f32.mrb[77].mxu1 }
0x13b2   : > { %v7844_v49 = vpop.f32.mrb[82].mxu0  ;;  %v7917_v50 = vpop.f32.mrb[78].mxu1 }
0x13b3   : > { %v16205_v51 = vpop.f32.mrb[83].mxu0  ;;  %v16234_v52 = vpop.f32.mrb[79].mxu1 }
0x13cd   : > { %v8147_v54 = vpop.f32.mrb[84].mxu0  ;;  %v8220_v30 = vpop.f32.mrb[80].mxu1 }
0x13ce   : > { %v16263_v56 = vpop.f32.mrb[85].mxu0  ;;  %v16292_v53 = vpop.f32.mrb[81].mxu1  ;;  %16584 = vmatpush3.xpose.msk.msra.mxu0 %vm2064_vm4, %v8147_v54 }
0x13cf   : > { %16588 = vmatprep.subr.mxu0 %v19081_v3 }
0x13d1   : > { %16586 = vmatmul.mubr.msk.f32.vlgmr.msra.gmra.mrb[96].mxu0 %vm2064_vm4, %v7552_v42 }
0x13d2   : > { %16589 = vmatpush3.xpose.msk.msra.mxu0 %vm2064_vm4, %v8220_v30  ;;  %16590 = vmatprep.mubr.msk.f32.mxu0 %vm19080_vm0, %v19081_v3 }
0x13d3   : > { %16593 = vmatprep.subr.mxu0 %v19081_v3 }
0x13d5   : > { %16591 = vmatmul.mubr.msk.f32.vlgmr.msra.gmra.mrb[98].mxu0 %vm2064_vm4, %v7625_v43 }
0x13d6   : > { %16595 = vmatprep.mubr.msk.f32.mxu0 %vm19080_vm0, %v19081_v3 }
0x13e8   : > { %v8293_v58 = vpop.f32.mrb[86].mxu0  ;;  %v8366_v60 = vpop.f32.mrb[82].mxu1 }
0x13e9   : > { %v16321_v55 = vpop.f32.mrb[87].mxu0  ;;  %v16350_v57 = vpop.f32.mrb[83].mxu1  ;;  %16594 = vmatpush3.xpose.msk.msra.mxu0 %vm2064_vm4, %v8293_v58  ;;  %16599 = vmatpush3.xpose.msk.msra.mxu1 %vm2064_vm4, %v8366_v60 }
0x13ea   : > { %16603 = vmatprep.subr.mxu0 %v19081_v3  ;;  %16608 = vmatprep.subr.mxu1 %v19081_v3 }
0x13ec   : > { %16596 = vmatmul.mubr.msk.f32.vlgmr.msra.gmra.mrb[100].mxu0 %vm2064_vm4, %v7698_v45  ;;  %16601 = vmatmul.mubr.msk.f32.vlgmr.msra.gmra.mrb[92].mxu1 %vm2064_vm4, %v7771_v46 }
0x13ed   : > { %16605 = vmatprep.mubr.msk.f32.mxu0 %vm19080_vm0, %v19081_v3  ;;  %16610 = vmatprep.mubr.msk.f32.mxu1 %vm19080_vm0, %v19081_v3 }
0x1403   : > { %v8439_v63 = vpop.f32.mrb[88].mxu0  ;;  %v8512_v4 = vpop.f32.mrb[84].mxu1 }
0x1404   : > { %v16379_v59 = vpop.f32.mrb[89].mxu0  ;;  %v16408_v5 = vpop.f32.mrb[85].mxu1  ;;  %16604 = vmatpush3.xpose.msk.msra.mxu0 %vm2064_vm4, %v8439_v63  ;;  %16609 = vmatpush3.xpose.msk.msra.mxu1 %vm2064_vm4, %v8512_v4 }
0x1405   : > { %16613 = vmatprep.subr.mxu0 %v19081_v3  ;;  %16618 = vmatprep.subr.mxu1 %v19081_v3 }
0x1407   : > { %16606 = vmatmul.mubr.msk.f32.vlgmr.msra.gmra.mrb[102].mxu0 %vm2064_vm4, %v7844_v49  ;;  %16611 = vmatmul.mubr.msk.f32.vlgmr.msra.gmra.mrb[94].mxu1 %vm2064_vm4, %v7917_v50 }
0x1408   : > { %16615 = vmatprep.mubr.msk.f32.mxu0 %vm19080_vm0, %v19081_v3  ;;  %16620 = vmatprep.mubr.msk.f32.mxu1 %vm19080_vm0, %v19081_v3 }
0x141e   : > { %v8742_v61 = vpop.f32.mrb[90].mxu0  ;;  %v8815_v6 = vpop.f32.mrb[86].mxu1 }
0x141f   : > { %v16437_v7 = vpop.f32.mrb[91].mxu0  ;;  %v16466_v16 = vpop.f32.mrb[87].mxu1  ;;  %16614 = vmatpush3.msra.mxu0 %v8742_v61  ;;  %16619 = vmatpush3.msra.mxu1 %v8815_v6 }
0x1420   : > { %16623 = vmatprep.subr.mxu0 %v19081_v3  ;;  %16628 = vmatprep.subr.mxu1 %v19081_v3 }
0x1439   : > { %v21463_v8 = vpop.f32.mrb[92].mxu0  ;;  %v21465_v62 = vpop.f32.mrb[88].mxu1 }
0x143a   : > { %v16495_v9 = vpop.f32.mrb[93].mxu0  ;;  %v16524_v10 = vpop.f32.mrb[89].mxu1 }
0x1454   : > { %v21467_v11 = vpop.f32.mrb[94].mxu0  ;;  %v21469_v12 = vpop.f32.mrb[90].mxu1 }
0x1455   : > { %v16553_v2 = vpop.f32.mrb[95].mxu0  ;;  %v16582_v0 = vpop.f32.mrb[91].mxu1 }
0x14a4   : > { %v9183_v13 = vpop.f32.mrb[96].mxu0 }
0x14a5   : > { %v16587_v14 = vpop.f32.mrb[97].mxu0  ;;  %v9567_v15 = vsel %vm2521_vm5, %v9183_v13, -inf }
0x14a6   : > { %9568 = vmax.xlane.f32.xlu0 %v9567_v15 }
0x14a8   : > { %v9259_v17 = vpop.f32.mrb[98].mxu0 }
0x14a9   : > { %v16592_v18 = vpop.f32.mrb[99].mxu0  ;;  %v9570_v21 = vsel %vm2521_vm5, %v9259_v17, -inf }
0x14aa   : > { %9571 = vmax.xlane.f32.xlu1 %v9570_v21 }
0x14bf   : > { %v9335_v22 = vpop.f32.mrb[100].mxu0  ;;  %v9411_v23 = vpop.f32.mrb[92].mxu1 }
0x14c0   : > { %v16597_v24 = vpop.f32.mrb[101].mxu0  ;;  %v16602_v25 = vpop.f32.mrb[93].mxu1  ;;  %v9576_v26 = vsel %vm2521_vm5, %v9411_v23, -inf  ;;  %v9573_v28 = vsel %vm2521_vm5, %v9335_v22, -inf }
0x14c1   : > { %9577 = vmax.xlane.f32.xlu1 %v9576_v26  ;;  %9574 = vmax.xlane.f32.xlu0 %v9573_v28  ;;  %v13805_v24 = vld [vmem:[%s21703_s2 + $0x68] sm:$0xff]   ;;  %v13806_v25 = vld [vmem:[%s21703_s2 + $0x70] sm:$0xff]  }
0x14da   : > { %v9487_v29 = vpop.f32.mrb[102].mxu0  ;;  %v9563_v31 = vpop.f32.mrb[94].mxu1 }
0x14db   : > { %v16607_v33 = vpop.f32.mrb[103].mxu0  ;;  %v16612_v35 = vpop.f32.mrb[95].mxu1  ;;  %v9582_v36 = vsel %vm2521_vm5, %v9563_v31, -inf  ;;  %v9579_v37 = vsel %vm2521_vm5, %v9487_v29, -inf }
0x14dc   : > { %9583 = vmax.xlane.f32.xlu1 %v9582_v36  ;;  %9580 = vmax.xlane.f32.xlu0 %v9579_v37  ;;  %v13809_v35 = vld [vmem:[%s21703_s2 + $0x88] sm:$0xff]   ;;  %v13808_v37 = vld [vmem:[%s21703_s2 + $0x80] sm:$0xff]  }
0x1533   : > { %v9569_v38 = vpop.xlane.xlu0 %9568 }
0x1534   : > { %v9585_v39 = vsub.f32 %v9183_v13, %v9569_v38 }
0x1536   : > { %v9591_v19 = vmul.f32 1.442695, %v9585_v39 }
0x1537   : > { %v9572_v40 = vpop.xlane.xlu1 %9571 }
0x1538   : > { %19036 = vpow2.f32 %v9591_v19  ;;  %v9586_v41 = vsub.f32 %v9259_v17, %v9572_v40 }
0x153a   : > { %v9593_v42 = vmul.f32 1.442695, %v9586_v41 }
0x153c   : > { %19038 = vpow2.f32 %v9593_v42 }
0x1542   : > { %v19037_v43 = vpop.eup %19036 }
0x1543   : > { %v9603_v44 = vsel %vm2521_vm5, %v19037_v43, 0.0 }
0x1544   : > { %9604 = vadd.xlane.f32.xlu0 %v9603_v44 }
0x1546   : > { %v19039_v20 = vpop.eup %19038 }
0x1547   : > { %v9606_v45 = vsel %vm2521_vm5, %v19039_v20, 0.0 }
0x1548   : > { %9607 = vadd.xlane.f32.xlu1 %v9606_v45 }
0x154e   : > { %v9578_v46 = vpop.xlane.xlu1 %9577  ;;  %v9575_v47 = vpop.xlane.xlu0 %9574 }
0x154f   : > { %v9588_v48 = vsub.f32 %v9411_v23, %v9578_v46  ;;  %v9587_v49 = vsub.f32 %v9335_v22, %v9575_v47 }
0x1551   : > { %v9597_v50 = vmul.f32 1.442695, %v9588_v48  ;;  %v9595_v51 = vmul.f32 1.442695, %v9587_v49 }
0x1553   : > { %19040 = vpow2.f32 %v9597_v50 }
0x1554   : > { %19042 = vpow2.f32 %v9595_v51 }
0x155d   : > { %v19041_v52 = vpop.eup %19040 }
0x155e   : > { %v19043_v54 = vpop.eup %19042  ;;  %v9612_v30 = vsel %vm2521_vm5, %v19041_v52, 0.0 }
0x155f   : > { %9613 = vadd.xlane.f32.xlu1 %v9612_v30  ;;  %v9609_v56 = vsel %vm2521_vm5, %v19043_v54, 0.0 }
0x1560   : > { %9610 = vadd.xlane.f32.xlu0 %v9609_v56 }
0x1569   : > { %v9584_v53 = vpop.xlane.xlu1 %9583  ;;  %v9581_v58 = vpop.xlane.xlu0 %9580 }
0x156a   : > { %v9590_v60 = vsub.f32 %v9563_v31, %v9584_v53  ;;  %v9589_v55 = vsub.f32 %v9487_v29, %v9581_v58  ;;  %v13807_v29 = vld [vmem:[%s21703_s2 + $0x78] sm:$0xff]  }
0x156c   : > { %v9601_v57 = vmul.f32 1.442695, %v9590_v60  ;;  %v9599_v63 = vmul.f32 1.442695, %v9589_v55 }
0x156e   : > { %19044 = vpow2.f32 %v9601_v57 }
0x156f   : > { %19046 = vpow2.f32 %v9599_v63 }
0x1578   : > { %v19045_v4 = vpop.eup %19044 }
0x1579   : > { %v19047_v59 = vpop.eup %19046  ;;  %v9618_v5 = vsel %vm2521_vm5, %v19045_v4, 0.0 }
0x157a   : > { %9619 = vadd.xlane.f32.xlu1 %v9618_v5  ;;  %v9615_v61 = vsel %vm2521_vm5, %v19047_v59, 0.0 }
0x157b   : > { %9616 = vadd.xlane.f32.xlu0 %v9615_v61 }
0x15d1   : > { %v9605_v6 = vpop.xlane.xlu0 %9604 }
0x15d2   : > { %19048 = vrcp.f32 %v9605_v6 }
0x15d5   : > { %v9608_v7 = vpop.xlane.xlu1 %9607 }
0x15d6   : > { %19050 = vrcp.f32 %v9608_v7 }
0x15dc   : > { %v19049_v16 = vpop.eup %19048 }
0x15dd   : > { %v9627_v9 = vmul.f32 %v19049_v16, %v19037_v43  ;;  %v18962_v16 = vld [vmem:[%s21704_s3 + $0xc4] ss:$8 sps:$4 sm:$0xff]  }
0x15df   : > { %16616 = vmatmul.mubr.msk.f32.vlgmr.msra.gmra.mrb[104].mxu0 %vm2521_vm5, %v9627_v9  ;;  %v18964_v9 = vld [vmem:[%s21704_s3 + $0xc0] ss:$8 sps:$4 sm:$0xff]  }
0x15e0   : > { %v19051_v10 = vpop.eup %19050  ;;  %16624 = vmatpush3.msra.mxu0 %v21463_v8  ;;  %16625 = vmatprep.mubr.msk.f32.mxu0 %vm19080_vm0, %v19081_v3 }
0x15e1   : > { %v9628_v2 = vmul.f32 %v19051_v10, %v19039_v20  ;;  %16633 = vmatprep.subr.mxu0 %v19081_v3 }
0x15e3   : > { %16621 = vmatmul.mubr.msk.f32.vlgmr.msra.gmra.mrb[96].mxu1 %vm2521_vm5, %v9628_v2 }
0x15e4   : > { %16629 = vmatpush3.msra.mxu1 %v21465_v62  ;;  %16630 = vmatprep.mubr.msk.f32.mxu1 %vm19080_vm0, %v19081_v3 }
0x15e5   : > { %16638 = vmatprep.subr.mxu1 %v19081_v3 }
0x15ec   : > { %v9614_v0 = vpop.xlane.xlu1 %9613 }
0x15ed   : > { %19052 = vrcp.f32 %v9614_v0  ;;  %v9611_v13 = vpop.xlane.xlu0 %9610 }
0x15ee   : > { %19054 = vrcp.f32 %v9611_v13 }
0x15f7   : > { %v19053_v8 = vpop.eup %19052 }
0x15f8   : > { %v19055_v14 = vpop.eup %19054  ;;  %v9630_v15 = vmul.f32 %v19053_v8, %v19041_v52 }
0x15f9   : > { %v9629_v17 = vmul.f32 %v19055_v14, %v19043_v54  ;;  %v18967_v14 = vld [vmem:[%s21704_s3 + $0xd0] ss:$8 sps:$4 sm:$0xff]  }
0x15fa   : > { %16631 = vmatmul.mubr.msk.f32.vlgmr.msra.gmra.mrb[98].mxu1 %vm2521_vm5, %v9630_v15  ;;  %v18968_v15 = vld [vmem:[%s21704_s3 + $0xe4] ss:$8 sps:$4 sm:$0xff]  }
0x15fb   : > { %16626 = vmatmul.mubr.msk.f32.vlgmr.msra.gmra.mrb[106].mxu0 %vm2521_vm5, %v9629_v17  ;;  %16639 = vmatpush3.msra.mxu1 %v21469_v12  ;;  %v18970_v17 = vld [vmem:[%s21704_s3 + $0xe0] ss:$8 sps:$4 sm:$0xff]  }
0x15fc   : > { %16634 = vmatpush3.msra.mxu0 %v21467_v11  ;;  %16635 = vmatprep.mubr.msk.f32.mxu0 %vm19080_vm0, %v19081_v3  ;;  %v13804_v11 = vld [vmem:[%s21703_s2 + $0x60] sm:$0xff]  }
0x15fd   : > { %16640 = vmatprep.mubr.msk.f32.mxu1 %vm19080_vm0, %v19081_v3  ;;  %17805 = vmatprep.subr.bf16.mxu0 %v19079_v1 }
0x15fe   : > { %17808 = vmatprep.subr.bf16.mxu1 %v19079_v1 }
0x1607   : > { %v9620_v62 = vpop.xlane.xlu1 %9619 }
0x1608   : > { %19056 = vrcp.f32 %v9620_v62  ;;  %v9617_v18 = vpop.xlane.xlu0 %9616  ;;  %v18971_v62 = vld [vmem:[%s21704_s3 + $0xf4] ss:$8 sps:$4 sm:$0xff]  }
0x1609   : > { %19058 = vrcp.f32 %v9617_v18  ;;  %v18973_v18 = vld [vmem:[%s21704_s3 + $0xf0] ss:$8 sps:$4 sm:$0xff]  }
0x1612   : > { %v19057_v21 = vpop.eup %19056 }
0x1613   : > { %v19059_v22 = vpop.eup %19058  ;;  %v9632_v23 = vmul.f32 %v19057_v21, %v19045_v4  ;;  %v18974_v21 = vld [vmem:[%s21704_s3 + $0x104] ss:$8 sps:$4 sm:$0xff]  }
0x1614   : > { %v9631_v12 = vmul.f32 %v19059_v22, %v19047_v59  ;;  %v11956_v59 = vld [vmem:[%s21706_s5 + $0x20] ss:$0 sm:$0xff] }
0x1615   : > { %16641 = vmatmul.mubr.msk.f32.vlgmr.msra.gmra.mrb[100].mxu1 %vm2521_vm5, %v9632_v23  ;;  %v18976_v22 = vld [vmem:[%s21704_s3 + $0x100] ss:$8 sps:$4 sm:$0xff]   ;;  %v18977_v23 = vld [vmem:[%s21704_s3 + $0x114] ss:$8 sps:$4 sm:$0xff]  }
0x1616   : > { %16636 = vmatmul.mubr.msk.f32.vlgmr.msra.gmra.mrb[108].mxu0 %vm2521_vm5, %v9631_v12  ;;  %16654 = vmatprep.mubr.msk.f32.mxu1 %vm19080_vm0, %v19081_v3  ;;  %v18979_v12 = vld [vmem:[%s21704_s3 + $0x110] ss:$8 sps:$4 sm:$0xff]  }
0x1617   : > { %17807 = vmatpush3.bf16.msra.mxu0 %v13804_v11  ;;  %16647 = vmatprep.mubr.msk.f32.mxu0 %vm19080_vm0, %v19081_v3  ;;  %v13818_v11 = vld [vmem:[%s21705_s4 + $0x140] sm:$0xff]  }
0x1618   : > { %17811 = vmatprep.subr.bf16.mxu0 %v19079_v1  ;;  %17810 = vmatpush3.bf16.msra.mxu1 %v13805_v24  ;;  %v13810_v24 = vld [vmem:[%s21705_s4 + $0x100] sm:$0xff]  }
0x1619   : > { %17814 = vmatprep.subr.bf16.mxu1 %v19079_v1 }
0x16b2   : > { %v9702_v26 = vpop.f32.mrb[104].mxu0 }
0x16b3   : > { %v16617_v28 = vpop.f32.mrb[105].mxu0  ;;  %16648 = vmatmul.mubr.msk.f32.vlgmr.msra.gmra.mrb[110].mxu0 %vm2064_vm4, %v9702_v26  ;;  %v13811_v26 = vld [vmem:[%s21705_s4 + $0x108] sm:$0xff]  }
0x16b4   : > { %17813 = vmatpush3.bf16.msra.mxu0 %v13806_v25  ;;  %16661 = vmatprep.mubr.msk.f32.mxu0 %vm19080_vm0, %v19081_v3  ;;  %v13819_v25 = vld [vmem:[%s21705_s4 + $0x148] sm:$0xff]   ;;  %v13820_v28 = vld [vmem:[%s21705_s4 + $0x150] sm:$0xff]  }
0x16b5   : > { %17817 = vmatprep.subr.bf16.mxu0 %v19079_v1 }
0x16b6   : > { %v9775_v31 = vpop.f32.mrb[96].mxu1 }
0x16b7   : > { %v16622_v33 = vpop.f32.mrb[97].mxu1  ;;  %16655 = vmatmul.mubr.msk.f32.vlgmr.msra.gmra.mrb[102].mxu1 %vm2064_vm4, %v9775_v31  ;;  %v13821_v31 = vld [vmem:[%s21705_s4 + $0x158] sm:$0xff]  }
0x16b8   : > { %17816 = vmatpush3.bf16.msra.mxu1 %v13807_v29  ;;  %16668 = vmatprep.mubr.msk.f32.mxu1 %vm19080_vm0, %v19081_v3  ;;  %v13812_v29 = vld [vmem:[%s21705_s4 + $0x110] sm:$0xff]   ;;  %v13813_v33 = vld [vmem:[%s21705_s4 + $0x118] sm:$0xff]  }
0x16b9   : > { %17820 = vmatprep.subr.bf16.mxu1 %v19079_v1 }
0x16cd   : > { %v9921_v36 = vpop.f32.mrb[98].mxu1 }
0x16ce   : > { %v9848_v38 = vpop.f32.mrb[106].mxu0  ;;  %v16632_v39 = vpop.f32.mrb[99].mxu1  ;;  %16669 = vmatmul.mubr.msk.f32.vlgmr.msra.gmra.mrb[104].mxu1 %vm2064_vm4, %v9921_v36  ;;  %v13814_v36 = vld [vmem:[%s21705_s4 + $0x120] sm:$0xff]  }
0x16cf   : > { %v16627_v19 = vpop.f32.mrb[107].mxu0  ;;  %16662 = vmatmul.mubr.msk.f32.vlgmr.msra.gmra.mrb[112].mxu0 %vm2064_vm4, %v9848_v38  ;;  %17822 = vmatpush3.bf16.msra.mxu1 %v13809_v35  ;;  %v13822_v35 = vld [vmem:[%s21705_s4 + $0x160] sm:$0xff]   ;;  %v13815_v38 = vld [vmem:[%s21705_s4 + $0x128] sm:$0xff]   ;;  %v13824_v39 = vld [vmem:[%s21705_s4 + $0x170] sm:$0xff]  }
0x16d0   : > { %17819 = vmatpush3.bf16.msra.mxu0 %v13808_v37  ;;  %16675 = vmatprep.mubr.msk.f32.mxu0 %vm19080_vm0, %v19081_v3  ;;  %v13823_v37 = vld [vmem:[%s21705_s4 + $0x168] sm:$0xff]  }
0x16d1   : > { %16682 = vmatprep.mubr.msk.f32.mxu1 %vm19080_vm0, %v19081_v3  ;;  %17824 = vmatprep.subr.bf16.mxu0 %v18962_v16 }
0x16d2   : > { %17848 = vmatprep.subr.bf16.mxu1 %v13818_v11 }
0x16e8   : > { %v10067_v1 = vpop.f32.mrb[100].mxu1 }
0x16e9   : > { %v9994_v40 = vpop.f32.mrb[108].mxu0  ;;  %v16642_v41 = vpop.f32.mrb[101].mxu1  ;;  %16683 = vmatmul.mubr.msk.f32.vlgmr.msra.gmra.mrb[106].mxu1 %vm2064_vm4, %v10067_v1 }
0x16ea   : > { %v16637_v42 = vpop.f32.mrb[109].mxu0  ;;  %16676 = vmatmul.mubr.msk.f32.vlgmr.msra.gmra.mrb[114].mxu0 %vm2064_vm4, %v9994_v40  ;;  %17850 = vmatpush3.bf16.msra.mxu1 %v13810_v24 }
0x16eb   : > { %10683 = vmatprep.mubr.f32.mxu0 %v19081_v3  ;;  %17826 = vmatpush1.bf16.msra.mxu0 %v18964_v9  ;;  %v11957_v42 = vld [vmem:[%s21706_s5 + $0x21] ss:$0 sm:$0xff] }
0x16ec   : > { %17852 = vmatprep.subr.bf16.mxu1 %v13819_v25 }
0x16ee   : > { %17854 = vmatpush3.bf16.msra.mxu1 %v13811_v26 }
0x16ef   : > { %17856 = vmatprep.subr.bf16.mxu1 %v13820_v28 }
0x16f2   : > { %17858 = vmatpush3.bf16.msra.mxu1 %v13812_v29 }
0x16f3   : > { %17860 = vmatprep.subr.bf16.mxu1 %v13821_v31 }
0x16f6   : > { %17862 = vmatpush3.bf16.msra.mxu1 %v13813_v33 }
0x16f7   : > { %17864 = vmatprep.subr.bf16.mxu1 %v13822_v35 }
0x16fa   : > { %17866 = vmatpush3.bf16.msra.mxu1 %v13814_v36 }
0x16fb   : > { %17868 = vmatprep.subr.bf16.mxu1 %v13823_v37 }
0x16fe   : > { %17870 = vmatpush3.bf16.msra.mxu1 %v13815_v38 }
0x16ff   : > { %17872 = vmatprep.subr.bf16.mxu1 %v13824_v39 }
0x1786   : > { %v10165_v43 = vpop.f32.mrb[110].mxu0 }
0x1787   : > { %v16649_v44 = vpop.f32.mrb[111].mxu0  ;;  %v10534_v45 = vsel %vm273_vm1, %v10165_v43, 0.0 }
0x1788   : > { %v11958_v44 = vld [vmem:[%s21706_s5 + $0x22] ss:$0 sm:$0xff] }
0x178a   : > { %v10238_v20 = vpop.f32.mrb[102].mxu1 }
0x178b   : > { %v10535_v46 = vsel %vm273_vm1, %v10238_v20, 0.0  ;;  %v16656_v47 = vpop.f32.mrb[103].mxu1 }
0x178c   : > { %v10536_v48 = vadd.f32 %v10535_v46, %v10534_v45  ;;  %v13816_v46 = vld [vmem:[%s21705_s4 + $0x130] sm:$0xff]   ;;  %v13825_v47 = vld [vmem:[%s21705_s4 + $0x178] sm:$0xff]  }
0x178d   : > { %17874 = vmatpush3.bf16.msra.mxu1 %v13816_v46 }
0x178e   : > { %17876 = vmatprep.subr.bf16.mxu1 %v13825_v47 }
0x17a1   : > { %v10384_v49 = vpop.f32.mrb[104].mxu1 }
0x17a2   : > { %v10311_v50 = vpop.f32.mrb[112].mxu0  ;;  %v16670_v51 = vpop.f32.mrb[105].mxu1  ;;  %v10539_v56 = vsel %vm273_vm1, %v10384_v49, 0.0  ;;  %v11971_v49 = vld [vmem:[%s21706_s5 + $0x23] ss:$8 sm:$0x3] }
0x17a3   : > { %v10537_v52 = vsel %vm273_vm1, %v10311_v50, 0.0  ;;  %v16663_v54 = vpop.f32.mrb[113].mxu0  ;;  %v10609_v50 = vrot.slane %v11971_v49, %v19969_v32  ;;  %v10613_v51 = vrot.slane %v11971_v49, %v19974_v34 }
0x17a4   : > { %v10538_v30 = vadd.f32 %v10537_v52, %v10536_v48  ;;  %v13817_v48 = vld [vmem:[%s21705_s4 + $0x138] sm:$0xff]  }
0x17a5   : > { %17878 = vmatpush3.bf16.msra.mxu1 %v13817_v48 }
0x17a6   : > { %v10540_v53 = vadd.f32 %v10539_v56, %v10538_v30 }
0x17bc   : > { %v10530_v3 = vpop.f32.mrb[106].mxu1 }
0x17bd   : > { %v10457_v58 = vpop.f32.mrb[114].mxu0  ;;  %v16684_v60 = vpop.f32.mrb[107].mxu1  ;;  %v10543_v4 = vsel %vm273_vm1, %v10530_v3, 0.0 }
0x17be   : > { %v10541_v55 = vsel %vm273_vm1, %v10457_v58, 0.0  ;;  %v16677_v57 = vpop.f32.mrb[115].mxu0  ;;  %v12005_v60 = vld [vmem:[%s21706_s5 + $0x24] ss:$0 sm:$0xff] }
0x17bf   : > { %v10542_v63 = vadd.f32 %v10541_v55, %v10540_v53 }
0x17c1   : > { %v10544_v5 = vadd.f32 %v10543_v4, %v10542_v63 }
0x17c3   : > { %v10547_v61 = vadd.f32 %v11956_v59, %v10544_v5 }
0x17c5   : > { %v10548_v6 = vadd.f32 %v10547_v61, %v20889_v27  ;;  %v18965_v27 = vld [vmem:[%s21704_s3 + $0xd4] ss:$8 sps:$4 sm:$0xff]  }
0x17c6   : > { %17828 = vmatprep.subr.bf16.mxu0 %v18965_v27  ;;  %v12007_v27 = vld [vmem:[%s21706_s5 + $0x26] ss:$0 sm:$0xff] }
0x17c7   : > { %v10551_v7 = vsel %vm273_vm1, %v10548_v6, 0.0  ;;  %17830 = vmatpush1.bf16.msra.mxu0 %v18967_v14 }
0x17c8   : > { %10552 = vadd.xlane.f32.xlu0 %v10551_v7  ;;  %17832 = vmatprep.subr.bf16.mxu0 %v18968_v15  ;;  %v10846_v15 = vld [vmem:[%s21707_s6] ss:$0 sm:$0xff] }
0x17cb   : > { %17834 = vmatpush1.bf16.msra.mxu0 %v18970_v17 }
0x17cc   : > { %17836 = vmatprep.subr.bf16.mxu0 %v18971_v62 }
0x17cf   : > { %17838 = vmatpush1.bf16.msra.mxu0 %v18973_v18 }
0x17d0   : > { %17840 = vmatprep.subr.bf16.mxu0 %v18974_v21 }
0x17d3   : > { %17842 = vmatpush1.bf16.msra.mxu0 %v18976_v22 }
0x17d4   : > { %17844 = vmatprep.subr.bf16.mxu0 %v18977_v23 }
0x17d7   : > { %17846 = vmatpush1.bf16.msra.mxu0 %v18979_v12 }
0x1855   : > { %v10553_v10 = vpop.xlane.xlu0 %10552 }
0x1856   : > { %v10554_v2 = vmul.f32 0.010416667, %v10553_v10 }
0x1858   : > { %v10555_v0 = vsub.f32 %v10548_v6, %v10554_v2 }
0x185a   : > { %v10556_v13 = vmul.f32 %v10555_v0, %v10555_v0 }
0x185c   : > { %v10557_v8 = vsel %vm273_vm1, %v10556_v13, 0.0  ;;  %v12006_v13 = vld [vmem:[%s21706_s5 + $0x25] ss:$0 sm:$0xff] }
0x185d   : > { %10558 = vadd.xlane.f32.xlu1 %v10557_v8 }
0x18ea   : > { %v10559_v19 = vpop.xlane.xlu1 %10558 }
0x18eb   : > { %v10560_v1 = vmul.f32 0.010416667, %v10559_v19 }
0x18ed   : > { %v10561_v40 = vadd.f32 1e-05, %v10560_v1 }
0x18ef   : > { %19060 = vrsqrt.f32 %v10561_v40 }
0x18f9   : > { %v19061_v41 = vpop.eup %19060 }
0x18fa   : > { %v10563_v43 = vmul.f32 %v19061_v41, %v10555_v0 }
0x18fc   : > { %v10564_v20 = vmul.f32 %v11957_v42, %v10563_v43 }
0x18fe   : > { %v10565_v45 = vadd.f32 %v11958_v44, %v10564_v20 }
0x1900   : > { %11972 = vmatmul.mubr.msk.f32.vlgmr.msra.gmra.mrb[116].mxu0 %vm273_vm1, %v10565_v45 }
0x19d3   : > { %v10685_v52 = vpop.f32.mrb[116].mxu0 }
0x19d4   : > { %v10686_v54 = vadd.f32 %v10685_v52, %v10609_v50  ;;  %v10687_v30 = vpop.f32.mrb[117].mxu0 }
0x19d5   : > { %v10688_v56 = vadd.f32 %v10687_v30, %v10613_v51 }
0x19d6   : > { %v10690_v3 = vmax.f32 %v10686_v54, 0.0 }
0x19d7   : > { %v10691_v53 = vmax.f32 %v10688_v56, 0.0 }
0x19d9   : > { %10822 = vmatprep.mubr.f32.mxu1 %v10691_v53 }
0x19da   : > { %10823 = vmatmul.mubr.f32.vlgmr.msra.gmra.mrb[108].mxu1 %v10690_v3 }
0x1aad   : > { %v14810_v58 = vpop.f32.mrb[108].mxu1 }
0x1aae   : > { %v14811_v55 = vpop.f32.mrb[109].mxu1 }
0x1aaf   : > { %v14812_v57 = vadd.f32 %v14811_v55, %v14810_v58  ;;  %v10934_v55 = vld [vmem:[%s21707_s6 + $0x8] sm:$0x18] }
0x1ab1   : > { %v10825_v63 = vadd.f32 %v14812_v57, %v12005_v60  ;;  %v10933_v57 = vld [vmem:[%s21707_s6] sm:$0x18] }
0x1ab3   : > { %v10828_v4 = vadd.f32 %v10825_v63, %v10565_v45  ;;  %v10939_v63 = vrot.slane %v10934_v55, 3 }
0x1ab5   : > { %v10831_v59 = vsel %vm273_vm1, %v10828_v4, 0.0  ;;  %12010 = vmatprep.subr.msk.mxu0 %vm10941_vm7, %v10939_v63 }
0x1ab6   : > { %10832 = vadd.xlane.f32.xlu0 %v10831_v59 }
0x1b43   : > { %v10833_v5 = vpop.xlane.xlu0 %10832 }
0x1b44   : > { %v10834_v61 = vmul.f32 0.010416667, %v10833_v5 }
0x1b46   : > { %v10835_v6 = vsub.f32 %v10828_v4, %v10834_v61  ;;  %v10938_v4 = vrot.slane %v10933_v57, 3 }
0x1b48   : > { %v10836_v7 = vmul.f32 %v10835_v6, %v10835_v6  ;;  %10948 = vmatpush1.xpose.msra.mxu0 %v10938_v4 }
0x1b4a   : > { %v10837_v16 = vsel %vm273_vm1, %v10836_v7, 0.0  ;;  %v12009_v7 = vld [vmem:[%s21707_s6 + $0x2] ss:$8 sm:$0x3] }
0x1b4b   : > { %10838 = vadd.xlane.f32.xlu1 %v10837_v16 }
0x1bd8   : > { %v10839_v9 = vpop.xlane.xlu1 %10838 }
0x1bd9   : > { %v10840_v10 = vmul.f32 0.010416667, %v10839_v9 }
0x1bdb   : > { %v10841_v2 = vadd.f32 1e-05, %v10840_v10 }
0x1bdd   : > { %19062 = vrsqrt.f32 %v10841_v2 }
0x1be7   : > { %v19063_v0 = vpop.eup %19062 }
0x1be8   : > { %v10843_v8 = vmul.f32 %v19063_v0, %v10835_v6  ;;  %v12008_v6 = vld [vmem:[%s21707_s6 + $0x1] ss:$8 sm:$0x3]  ;;  %v10928_v0 = vrot.slane %v12009_v7, %v19974_v34 }
0x1be9   : > { %v10915_v16 = vrot.slane %v12008_v6, %v19974_v34  ;;  %v10911_v9 = vrot.slane %v12008_v6, %v19969_v32 }
0x1bea   : > { %v10844_v14 = vmul.f32 %v12006_v13, %v10843_v8  ;;  %v10924_v8 = vrot.slane %v12009_v7, %v19969_v32 }
0x1bec   : > { %v10845_v17 = vadd.f32 %v12007_v27, %v10844_v14 }
0x1bee   : > { %v10847_v62 = vmul.f32 %v10846_v15, %v10845_v17 }
0x1bf0   : > { %v10848_v18 = vsel %vm273_vm1, %v10847_v62, 0.0  ;;  %v10935_v62 = vld [vmem:[%s21707_s6 + $0x5] ss:$0 sm:$0xff] }
0x1bf1   : > { %10849 = vadd.xlane.f32.xlu0 %v10848_v18 }
0x1c7e   : > { %v10850_v21 = vpop.xlane.xlu0 %10849 }
0x1c7f   : > { %v10851_v22 = vrot.slane %v10850_v21, 4 }
0x1c81   : > { %v10852_v23 = vmax.f32 %v10850_v21, %v10851_v22 }
0x1c83   : > { %v10853_v12 = vrot.slane %v10852_v23, 2 }
0x1c85   : > { %v10854_v11 = vmax.f32 %v10852_v23, %v10853_v12 }
0x1c87   : > { %v10855_v24 = vrot.slane %v10854_v11, 1 }
0x1c89   : > { %v10856_v25 = vmax.f32 %v10854_v11, %v10855_v24 }
0x1c8b   : > { %v10857_v26 = vsub.f32 %v10850_v21, %v10856_v25 }
0x1c8d   : > { %v10858_v28 = vmul.f32 1.442695, %v10857_v26 }
0x1c8f   : > { %19064 = vpow2.f32 %v10858_v28 }
0x1c99   : > { %v19065_v29 = vpop.eup %19064 }
0x1c9a   : > { %v10860_v31 = vrot.slane %v19065_v29, 4 }
0x1c9c   : > { %v10861_v33 = vadd.f32 %v19065_v29, %v10860_v31 }
0x1c9e   : > { %v10862_v35 = vrot.slane %v10861_v33, 2 }
0x1ca0   : > { %v10863_v36 = vadd.f32 %v10862_v35, %v10861_v33 }
0x1ca2   : > { %v10864_v37 = vrot.slane %v10863_v36, 1 }
0x1ca4   : > { %v10865_v38 = vadd.f32 %v10864_v37, %v10863_v36 }
0x1ca6   : > { %19066 = vrcp.f32 %v10865_v38 }
0x1cb0   : > { %v19067_v39 = vpop.eup %19066 }
0x1cb1   : > { %v10867_v19 = vmul.f32 %v19067_v39, %v19065_v29 }
0x1cb3   : > { %v10868_v1 = vmul.f32 %v10867_v19, %v10845_v17 }
0x1cb5   : > { %v10869_v40 = vsel %vm273_vm1, %v10868_v1, 0.0 }
0x1cb6   : > { %v10870_v41 = vrot.slane %v10869_v40, 4 }
0x1cb8   : > { %v10871_v42 = vadd.f32 %v10870_v41, %v10869_v40 }
0x1cba   : > { %v10872_v43 = vrot.slane %v10871_v42, 2 }
0x1cbc   : > { %v10873_v44 = vadd.f32 %v10872_v43, %v10871_v42 }
0x1cbe   : > { %v10874_v20 = vrot.slane %v10873_v44, 1 }
0x1cc0   : > { %v10875_v45 = vadd.f32 %v10874_v20, %v10873_v44 }
0x1cc2   : > { %10877 = vrot.lane.b32.xlu1 %v10875_v45, %s19082_s15 }
0x1d34   : > { %v10878_v46 = vpop.permute.xlu1 %10877 }
0x1d35   : > { %v10880_v47 = vsel %vm273_vm1, %v10845_v17, %v10878_v46  ;;  %v10887_v48 = vsel %vm10886_vm6, %v10878_v46, 0.0 }
0x1d36   : > { %v10885_v49 = vsel %vm435_vm2, %v10880_v47, 0.0 }
0x1d37   : > { %v10888_v50 = vadd.f32 %v10887_v48, %v10885_v49 }
0x1d39   : > { %10889 = vadd.xlane.f32.xlu0 %v10888_v50 }
0x1dc6   : > { %v10890_v51 = vpop.xlane.xlu0 %10889 }
0x1dc7   : > { %v10892_v52 = vmul.f32 0.0052083335, %v10890_v51 }
0x1dc9   : > { %v10893_v54 = vsub.f32 %v10880_v47, %v10892_v52  ;;  %v10894_v30 = vsub.f32 %v10878_v46, %v10892_v52 }
0x1dcb   : > { %v10895_v56 = vmul.f32 %v10893_v54, %v10893_v54  ;;  %v10896_v53 = vmul.f32 %v10894_v30, %v10894_v30 }
0x1dcd   : > { %v10897_v3 = vsel %vm435_vm2, %v10895_v56, 0.0  ;;  %v10898_v58 = vsel %vm10886_vm6, %v10896_v53, 0.0 }
0x1dce   : > { %v10899_v60 = vadd.f32 %v10898_v58, %v10897_v3 }
0x1dd0   : > { %10900 = vadd.xlane.f32.xlu0 %v10899_v60 }
0x1e5d   : > { %v10901_v59 = vpop.xlane.xlu0 %10900 }
0x1e5e   : > { %v10902_v5 = vmul.f32 0.0052083335, %v10901_v59 }
0x1e60   : > { %v10903_v61 = vadd.f32 1e-05, %v10902_v5 }
0x1e62   : > { %19068 = vrsqrt.f32 %v10903_v61 }
0x1e6c   : > { %v19069_v10 = vpop.eup %19068 }
0x1e6d   : > { %v10906_v2 = vmul.f32 %v19069_v10, %v10894_v30  ;;  %v10905_v13 = vmul.f32 %v19069_v10, %v10893_v54 }
0x1e6f   : > { %v10919_v27 = vmul.f32 %v10915_v16, %v10906_v2  ;;  %v10918_v14 = vmul.f32 %v10911_v9, %v10905_v13 }
0x1e71   : > { %v10932_v15 = vadd.f32 %v10928_v0, %v10919_v27  ;;  %v10931_v17 = vadd.f32 %v10924_v8, %v10918_v14 }
0x1e73   : > { %12011 = vmatprep.mubr.msk.f32.mxu0 %vm10941_vm7, %v10932_v15 }
0x1e74   : > { %11012 = vmatmul.mubr.f32.vlgmr.msra.gmra.mrb[118].mxu0 %v10931_v17 }
0x1f47   : > { %v11013_v18 = vpop.f32.mrb[118].mxu0 }
0x1f48   : > { %v11014_v34 = vadd.f32 %v11013_v18, %v10935_v62  ;;  %v11015_v21 = vpop.f32.mrb[119].mxu0 }
0x1f4a   : > { %11018 = vst.msk [vmem:[%s271_s30] sm:$0x1] %vm11017_vm8, %v11014_v34 }
0x1f4b PF: > { %s17_s24 = sadd.s32 1, %s19077_s24  }
0x1f4c   : > { %p14_p4 = scmp.ge.s32.totalorder %s17_s24, 6  }
0x1f4e   :  { %16 = sbr.rel (!%p14_p4) target bundleno = 1 (0x1), region = 99 }

</bundles_post_ra>
